<compile_context>
chip_gen: v6e
topology: v6e:2x2x1
jax: 0.10.0
libtpu: 0.0.40
codegen_flags: <defaults>
</compile_context>

<pallas_src>
import math
import re
from functools import partial

import jax
import jax.numpy as jnp
from jax import lax
from jax.experimental import pallas as pl
from jax.experimental.pallas import tpu as pltpu


def _round_up(x, m):
    return (x + m - 1) // m * m


def _lane_pad(n):
    return _round_up(n, 128)


def _tpu_generation_and_vmem():
    """Best-effort (generation, per-core VMEM bytes).  Defensive: never raises."""
    gen = 6
    try:
        kind = jax.devices()[0].device_kind
        m = re.search(r"v(\d+)", str(kind).lower())
        if m:
            gen = int(m.group(1))
    except Exception:
        pass
    vmem = 64 * 2**20 if gen >= 7 else 128 * 2**20
    try:
        vmem = int(pltpu.get_tpu_info().vmem_capacity_bytes)
    except Exception:
        pass
    return gen, vmem


def decoder_kernel(x_ref, w1_ref, b1_ref, w2_ref, b2_ref, o_ref, *, precision):
    # fc1 on the MXU with f32 accumulation; bias + ReLU on the VPU in f32.
    h = jnp.dot(x_ref[...], w1_ref[...],
                preferred_element_type=jnp.float32, precision=precision)
    h = jnp.maximum(h + b1_ref[...], 0.0)          # b1 is [1, g*hidden], f32
    # fc2: cast activation to the weight dtype for the MXU inputs only
    # (no-op for f32 weights; intentional bf16 cast on the bf16-transfer path).
    # Accumulation / bias add remain in f32.
    y = jnp.dot(h.astype(w2_ref.dtype), w2_ref[...],
                preferred_element_type=jnp.float32, precision=precision)
    o_ref[...] = (y + b2_ref[...]).astype(o_ref.dtype)   # b2 is [1, g*out], f32


def decoder_forward(x, w1, b1, w2, b2, *, tile_b=32768,
                    transfer_dtype="auto", out_dtype=None):
    """Fused Decoder forward.

    x:  [B, latent_dim]
    w1: [latent_dim, hidden]   b1: [hidden]
    w2: [hidden, out_dim]      b2: [out_dim]
    transfer_dtype: "auto" (bf16 on TPU when x is f32), None (keep x.dtype),
                    or an explicit dtype.
    returns [B, out_dim] (dtype = transfer dtype unless out_dtype is given).
    """
    B, latent = x.shape
    hidden = w1.shape[1]
    out_dim = w2.shape[1]

    gen, vmem_cap = _tpu_generation_and_vmem()

    # ---- transfer / output dtypes ---------------------------------------
    if isinstance(transfer_dtype, str) and transfer_dtype == "auto":
        cdtype = jnp.dtype(jnp.bfloat16) if x.dtype == jnp.float32 else x.dtype
    elif transfer_dtype is None:
        cdtype = x.dtype
    else:
        cdtype = jnp.dtype(transfer_dtype)
    odtype = jnp.dtype(out_dtype) if out_dtype is not None else cdtype
    precision = (lax.Precision.HIGHEST if cdtype == jnp.float32
                 else lax.Precision.DEFAULT)

    # ---- generation-aware lane-dense row-grouping factor -----------------
    # Group g consecutive batch rows so blocks are lane-dense.  Weights become
    # block-diagonal (g copies via kron); grouped views of x / y are free
    # contiguous reshapes of the row-major [B, F] arrays.
    out_g = 128 // math.gcd(out_dim, 128)
    in_g = 128 // math.gcd(latent, 128)
    if gen >= 6:
        g = in_g * out_g // math.gcd(in_g, out_g)   # lane-dense x AND y
        if g > 16:                                  # pathological dims
            g = min(out_g, 16)
    else:
        # v5e: weak MXU -> keep kron FLOP inflation small (output-dense only).
        g = min(out_g, 4)
    if g > 16:
        g = 1

    # ---- pack (block-diagonal) weights & tiled biases --------------------
    w1_blk = jnp.kron(jnp.eye(g, dtype=w1.dtype), w1).astype(cdtype)   # [g*lat, g*hid]
    w2_blk = jnp.kron(jnp.eye(g, dtype=w2.dtype), w2).astype(cdtype)   # [g*hid, g*out]
    b1_blk = jnp.tile(b1.astype(jnp.float32), g).reshape(1, g * hidden)
    b2_blk = jnp.tile(b2.astype(jnp.float32), g).reshape(1, g * out_dim)
    x = x.astype(cdtype)

    # ---- VMEM budget (lane-padded; only x/out tiles are double-buffered) --
    in_item = jnp.dtype(cdtype).itemsize
    out_item = jnp.dtype(odtype).itemsize
    per_grouped_row = (
        2 * _lane_pad(g * latent) * in_item       # x tile, double-buffered
        + 2 * _lane_pad(g * out_dim) * out_item   # out tile, double-buffered
        + _lane_pad(g * hidden) * 4               # f32 fc1 accumulator / ReLU
        + _lane_pad(g * hidden) * in_item         # h cast for fc2 MXU input
        + _lane_pad(g * out_dim) * 4)             # f32 fc2 accumulator
    fixed_bytes = 2 * ((w1_blk.size + w2_blk.size) * in_item
                       + (b1_blk.size + b2_blk.size) * 4)   # resident (conservative 2x)
    budget = int(0.70 * vmem_cap)
    max_rows = max(8, ((budget - fixed_bytes) // per_grouped_row) // 8 * 8)

    # ---- batch tiling / padding ------------------------------------------
    row_quantum = 8 * g                                     # keep sublane dim %8
    tb = _round_up(max(1, min(tile_b, B)), row_quantum)      # batch rows per step
    if B >= 2 * row_quantum:                                  # >=2 grid steps so both
        tb = min(tb, _round_up((B + 1) // 2, row_quantum))    # v7x TCs get work
    tb = min(tb, max_rows * g)                                # fit the VMEM budget
    tb = max(tb, row_quantum)
    b_pad = _round_up(B, tb)
    if b_pad != B:
        x = jnp.pad(x, ((0, b_pad - B), (0, 0)))
    xg = x.reshape(b_pad // g, g * latent)                    # free contiguous view

    rows = tb // g                                            # grouped rows / tile
    num_tiles = b_pad // tb

    need = rows * per_grouped_row + fixed_bytes + (2 << 20)   # + internal slack
    vmem_limit = int(min(max(need, 16 * 2**20), int(0.85 * vmem_cap)))

    yg = pl.pallas_call(
        partial(decoder_kernel, precision=precision),
        out_shape=jax.ShapeDtypeStruct((b_pad // g, g * out_dim), odtype),
        grid=(num_tiles,),
        in_specs=[
            pl.BlockSpec((rows, g * latent), lambda i: (i, 0)),   # x tile
            pl.BlockSpec(w1_blk.shape, lambda i: (0, 0)),         # VMEM-resident
            pl.BlockSpec(b1_blk.shape, lambda i: (0, 0)),
            pl.BlockSpec(w2_blk.shape, lambda i: (0, 0)),
            pl.BlockSpec(b2_blk.shape, lambda i: (0, 0)),
        ],
        out_specs=pl.BlockSpec((rows, g * out_dim), lambda i: (i, 0)),
        compiler_params=pltpu.CompilerParams(
            dimension_semantics=("parallel",),    # megacore sharding on v7x
            vmem_limit_bytes=vmem_limit,
        ),
    )(xg, w1_blk, b1_blk, w2_blk, b2_blk)

    return yg.reshape(b_pad, out_dim)[:B]          # free view + drop pad rows


def reference_forward(x, w1, b1, w2, b2):
    h = jnp.maximum(x @ w1 + b1, 0.0)
    return h @ w2 + b2


if __name__ == "__main__":
    latent_dim = 16
    hidden_dim = 64
    output_dim = 32   # stands in for input_dim == output_dim of the autoencoder
    batch = 8

    key = jax.random.PRNGKey(0)
    kx, k1, k2, k3, k4 = jax.random.split(key, 5)

    x = jax.random.normal(kx, (batch, latent_dim), dtype=jnp.float32)
    w1 = jax.random.normal(k1, (latent_dim, hidden_dim), dtype=jnp.float32) * 0.1
    b1 = jax.random.normal(k2, (hidden_dim,), dtype=jnp.float32) * 0.1
    w2 = jax.random.normal(k3, (hidden_dim, output_dim), dtype=jnp.float32) * 0.1
    b2 = jax.random.normal(k4, (output_dim,), dtype=jnp.float32) * 0.1

    ref = reference_forward(x, w1, b1, w2, b2)

    # 1) exact f32 path (HIGHEST precision), single tile
    out_f32 = decoder_forward(x, w1, b1, w2, b2, transfer_dtype=jnp.float32)
    jax.block_until_ready(out_f32)
    assert out_f32.shape == (batch, output_dim)
    assert out_f32.dtype == jnp.float32
    assert jnp.allclose(out_f32, ref, atol=1e-4, rtol=1e-4)

    # 2) multi-tile + tail padding path (B not a multiple of the tile), f32
    xb = jax.random.normal(kx, (200, latent_dim), dtype=jnp.float32)
    out_b = decoder_forward(xb, w1, b1, w2, b2, tile_b=64,
                            transfer_dtype=jnp.float32)
    jax.block_until_ready(out_b)
    ref_b = reference_forward(xb, w1, b1, w2, b2)
    assert out_b.shape == (200, output_dim)
    assert jnp.allclose(out_b, ref_b, atol=1e-4, rtol=1e-4)

    # 3) default path: bf16 HBM transfer (halves memory traffic), f32 accumulate
    out_def = decoder_forward(x, w1, b1, w2, b2)
    jax.block_until_ready(out_def)
    assert out_def.shape == (batch, output_dim)
    assert jnp.allclose(out_def.astype(jnp.float32), ref, atol=5e-2, rtol=5e-2)

    print("KERNEL_OK")
</pallas_src>

<mosaic_0001>
module attributes {stable_mosaic.version = 11 : i64} {
  func.func @decoder_kernel(%arg0: i32, %arg1: memref<8x128xf32, #tpu.memory_space<vmem>>, %arg2: memref<128x512xf32, #tpu.memory_space<vmem>>, %arg3: memref<1x512xf32, #tpu.memory_space<vmem>>, %arg4: memref<512x256xf32, #tpu.memory_space<vmem>>, %arg5: memref<1x256xf32, #tpu.memory_space<vmem>>, %arg6: memref<8x256xf32, #tpu.memory_space<vmem>>) attributes {dimension_semantics = [#tpu.dimension_semantics<parallel>], iteration_bounds = array<i64: 1>, scalar_prefetch = 0 : i64, scratch_operands = 0 : i64, tpu.core_type = #tpu.core_type<tc>, window_params = [{transform_indices = @transform_0, window_bounds = array<i64: 8, 128>}, {pipeline_mode = #tpu.pipeline_mode<synchronous>, transform_indices = @transform_1, window_bounds = array<i64: 128, 512>}, {pipeline_mode = #tpu.pipeline_mode<synchronous>, transform_indices = @transform_2, window_bounds = array<i64: 1, 512>}, {pipeline_mode = #tpu.pipeline_mode<synchronous>, transform_indices = @transform_3, window_bounds = array<i64: 512, 256>}, {pipeline_mode = #tpu.pipeline_mode<synchronous>, transform_indices = @transform_4, window_bounds = array<i64: 1, 256>}, {transform_indices = @transform_5, window_bounds = array<i64: 8, 256>}]} {
    %c0 = arith.constant 0 : index
    %c0_0 = arith.constant 0 : index
    %0 = vector.load %arg1[%c0, %c0_0] : memref<8x128xf32, #tpu.memory_space<vmem>>, vector<8x128xf32>
    %c0_1 = arith.constant 0 : index
    %c0_2 = arith.constant 0 : index
    %1 = vector.load %arg2[%c0_1, %c0_2] : memref<128x512xf32, #tpu.memory_space<vmem>>, vector<128x512xf32>
    %cst = arith.constant dense<0.000000e+00> : vector<8x512xf32>
    %2 = tpu.matmul %0, %1, %cst {dimension_numbers = #tpu.dot_dimension_numbers<[1], [0], [0], [1], [0, 0, 1, 1], [], []>, precision = #tpu.contract_precision<fp32>} : vector<8x128xf32>, vector<128x512xf32>, vector<8x512xf32> -> vector<8x512xf32>
    %c0_3 = arith.constant 0 : index
    %c0_4 = arith.constant 0 : index
    %3 = vector.load %arg3[%c0_3, %c0_4] : memref<1x512xf32, #tpu.memory_space<vmem>>, vector<1x512xf32>
    %4 = vector.broadcast %3 : vector<1x512xf32> to vector<8x512xf32>
    %5 = arith.addf %2, %4 : vector<8x512xf32>
    %cst_5 = arith.constant 0.000000e+00 : f32
    %6 = vector.broadcast %cst_5 : f32 to vector<8x512xf32>
    %7 = arith.maximumf %5, %6 : vector<8x512xf32>
    %c0_6 = arith.constant 0 : index
    %c0_7 = arith.constant 0 : index
    %8 = vector.load %arg4[%c0_6, %c0_7] : memref<512x256xf32, #tpu.memory_space<vmem>>, vector<512x256xf32>
    %cst_8 = arith.constant dense<0.000000e+00> : vector<8x256xf32>
    %9 = tpu.matmul %7, %8, %cst_8 {dimension_numbers = #tpu.dot_dimension_numbers<[1], [0], [0], [1], [0, 0, 1, 1], [], []>, precision = #tpu.contract_precision<fp32>} : vector<8x512xf32>, vector<512x256xf32>, vector<8x256xf32> -> vector<8x256xf32>
    %c0_9 = arith.constant 0 : index
    %c0_10 = arith.constant 0 : index
    %10 = vector.load %arg5[%c0_9, %c0_10] : memref<1x256xf32, #tpu.memory_space<vmem>>, vector<1x256xf32>
    %11 = vector.broadcast %10 : vector<1x256xf32> to vector<8x256xf32>
    %12 = arith.addf %9, %11 : vector<8x256xf32>
    %c0_11 = arith.constant 0 : index
    %c0_12 = arith.constant 0 : index
    %13 = vector.load %arg6[%c0_11, %c0_12] : memref<8x256xf32, #tpu.memory_space<vmem>>, vector<8x256xf32>
    tpu.vector_store %arg6[%c0_11, %c0_12], %12 {strides = array<i32>} : memref<8x256xf32, #tpu.memory_space<vmem>>, vector<8x256xf32>,
    return
  }
  func.func @transform_0(%arg0: i32) -> (i32, i32) {
    %c0_i32 = arith.constant 0 : i32
    %c0_i32_0 = arith.constant 0 : i32
    return %arg0, %c0_i32 : i32, i32
  }
  func.func @transform_1(%arg0: i32) -> (i32, i32) {
    %c0_i32 = arith.constant 0 : i32
    %c0_i32_0 = arith.constant 0 : i32
    %c0_i32_1 = arith.constant 0 : i32
    return %c0_i32, %c0_i32_0 : i32, i32
  }
  func.func @transform_2(%arg0: i32) -> (i32, i32) {
    %c0_i32 = arith.constant 0 : i32
    %c0_i32_0 = arith.constant 0 : i32
    %c0_i32_1 = arith.constant 0 : i32
    return %c0_i32, %c0_i32_0 : i32, i32
  }
  func.func @transform_3(%arg0: i32) -> (i32, i32) {
    %c0_i32 = arith.constant 0 : i32
    %c0_i32_0 = arith.constant 0 : i32
    %c0_i32_1 = arith.constant 0 : i32
    return %c0_i32, %c0_i32_0 : i32, i32
  }
  func.func @transform_4(%arg0: i32) -> (i32, i32) {
    %c0_i32 = arith.constant 0 : i32
    %c0_i32_0 = arith.constant 0 : i32
    %c0_i32_1 = arith.constant 0 : i32
    return %c0_i32, %c0_i32_0 : i32, i32
  }
  func.func @transform_5(%arg0: i32) -> (i32, i32) {
    %c0_i32 = arith.constant 0 : i32
    %c0_i32_0 = arith.constant 0 : i32
    return %arg0, %c0_i32 : i32, i32
  }
}

</mosaic_0001>

<bundles_post_ra>
// kernel: tpu_custom_call.1
= control target key start
LH: loop header
LB: loop body
LE: loop exit
PB: predicated region body
PF: predicated region fallthrough
CT: control target
= control target key end

     0   :  { %10 = vsyncpa [#allocation3], 0  ;;  %s8338_s0 = inlined_call_operand.hbm [shape: f32[8,128], index: 0, kind: input, shape index: {}]   ;;  %s8339_s1 = inlined_call_operand.hbm [shape: f32[128,512], index: 1, kind: input, shape index: {}]   ;;  %s8340_s2 = inlined_call_operand.hbm [shape: f32[1,512], index: 2, kind: input, shape index: {}]   ;;  %s8341_s3 = inlined_call_operand.hbm [shape: f32[512,256], index: 3, kind: input, shape index: {}]   ;;  %s8342_s4 = inlined_call_operand.vmem [shape: f32[1,256], index: 4, kind: input, shape index: {}]   ;;  %s8343_s5 = inlined_call_operand.hbm [shape: f32[8,256], index: 5, kind: output, shape index: {}]  }
   0x1   :  { %11 = vsyncpa [#allocation6], 0 }
   0x2   :  { %12 = vsyncpa [#allocation9], 0 }
   0x3   :  { %13 = vsyncpa [#allocation4], 0  ;;  %s4718_s18 = smov [#allocation5]  }
   0x4   :  { %s29_s19 = sshll.u32 %s4718_s18, 4  ;;  %s30_s19 = int_to_ptr.vmem [resolvable:$true] %s29_s19 }
   0x5   :  { %s4618_s20 = scalar_lea.vmem %s30_s19, 8192  ;;  %p4623_p1 = scmp.lt.s32.totalorder %s30_s19, %s30_s19 }
   0x6   :  { %p4619_p0 = scmp.ne.s32.totalorder %s30_s19, %s4618_s20  ;;  %p4624_p2 = scmp.lt.s32.totalorder %s4618_s20, %s4618_s20 }
   0x8   :  { %p4625_p3 = por %p4624_p2, %p4623_p1 }
   0xa   :  { %p4626_p4 = pnand %p4625_p3, %p4619_p0 }
   0xc   :  { %4629 = shalt.err (!%p4626_p4)
}
   0xd   :  { %s4719_s21 = smov 512   ;;  %s4720_s22 = smov 32  }
   0xe   :  { %35 = dma.hbm_to_vmem [thread:$0]  %s8339_s1, 8192, %s30_s19, [#allocation6], %s4719_s21, %s4719_s21, %s4720_s22  }
   0xf   :  { %s4721_s25 = smov [#allocation2]   ;;  %s4722_s27 = smov [#allocation7]  }
  0x10   :  { %s20_s26 = sshll.u32 %s4721_s25, 4  ;;  %s42_s28 = sshll.u32 %s4722_s27, 4  ;;  %s21_s26 = int_to_ptr.vmem [resolvable:$true] %s20_s26  ;;  %s43_s28 = int_to_ptr.vmem [resolvable:$true] %s42_s28 }
  0x11   :  { %s4638_s29 = scalar_lea.vmem %s21_s26, 128  ;;  %p4643_p6 = scmp.lt.s32.totalorder %s21_s26, %s21_s26 }
  0x12   :  { %p4639_p5 = scmp.ne.s32.totalorder %s21_s26, %s4638_s29  ;;  %p4644_p7 = scmp.lt.s32.totalorder %s4638_s29, %s4638_s29 }
  0x14   :  { %p4645_p8 = por %p4644_p7, %p4643_p6 }
  0x16   :  { %p4646_p9 = pnand %p4645_p8, %p4639_p5 }
  0x18   :  { %4649 = shalt.err (!%p4646_p9)
}
  0x19   :  { %23 = dma.hbm_to_vmem [thread:$0]  %s8338_s0, 128, %s21_s26, [#allocation3]  }
  0x1a   :  { %s4658_s7 = scalar_lea.vmem %s43_s28, 64  ;;  %p4663_p11 = scmp.lt.s32.totalorder %s43_s28, %s43_s28 }
  0x1b   :  { %p4659_p10 = scmp.ne.s32.totalorder %s43_s28, %s4658_s7  ;;  %p4664_p12 = scmp.lt.s32.totalorder %s4658_s7, %s4658_s7 }
  0x1d   :  { %p4665_p13 = por %p4664_p12, %p4663_p11 }
  0x1f   :  { %p4666_p0 = pnand %p4665_p13, %p4659_p10 }
  0x21   :  { %4669 = shalt.err (!%p4666_p0)
}
  0x22   :  { %45 = dma.hbm_to_vmem [thread:$0]  %s8340_s2, 64, %s43_s28, [#allocation6]  }
  0x23   :  { %s4723_s9 = smov [#allocation8]  }
  0x24   :  { %s51_s10 = sshll.u32 %s4723_s9, 4  ;;  %s52_s10 = int_to_ptr.vmem [resolvable:$true] %s51_s10 }
  0x25   :  { %s4678_s11 = scalar_lea.vmem %s52_s10, 16384  ;;  %p4683_p2 = scmp.lt.s32.totalorder %s52_s10, %s52_s10 }
  0x26   :  { %p4679_p1 = scmp.ne.s32.totalorder %s52_s10, %s4678_s11  ;;  %p4684_p3 = scmp.lt.s32.totalorder %s4678_s11, %s4678_s11 }
  0x28   :  { %p4685_p4 = por %p4684_p3, %p4683_p2 }
  0x2a   :  { %p4686_p5 = pnand %p4685_p4, %p4679_p1 }
  0x2c   :  { %4689 = shalt.err (!%p4686_p5)
}
  0x2d   :  { %s4724_s0 = smov 256   ;;  %s4725_s12 = smov 16  }
  0x2e   :  { %57 = dma.hbm_to_vmem [thread:$0]  %s8341_s3, 16384, %s52_s10, [#allocation9], %s4724_s0, %s4724_s0, %s4725_s12  }
  0x2f   :  { %4710 = dma.done.wait [#allocation3], 128  }
  0x30   :  { %4711 = vsyncadd [#allocation3], 4294967168 }
  0x31   :  { %4712 = dma.done.wait [#allocation6], 8256  }
  0x32   :  { %4713 = vsyncadd [#allocation6], 4294959040 }
  0x33   :  { %4714 = dma.done.wait [#allocation9], 16384  }
  0x34   :  { %4715 = vsyncadd [#allocation9], 4294950912  ;;  %v8358_v0 = vmov 0.0   ;;  %v134_v1 = vld [vmem:[#allocation5 + $0x1e8] sm:$0xff]  ;;  %v133_v2 = vld [vmem:[#allocation5 + $0x1e0] sm:$0xff] }
  0x35   :  { %255 = vmatprep.mubr.f32.mxu0 %v8358_v0  ;;  %491 = vmatprep.mubr.f32.mxu1 %v8358_v0  ;;  %v130_v3 = vld [vmem:[#allocation5 + $0x1c8] sm:$0xff]  ;;  %v4772_v4 = vand.u32 4294901760, %v134_v1  ;;  %v4774_v5 = vand.u32 4294901760, %v133_v2  ;;  %v129_v7 = vld [vmem:[#allocation5 + $0x1c0] sm:$0xff] }
  0x36   :  { %v4776_v6 = vand.u32 4294901760, %v130_v3  ;;  %v126_v8 = vld [vmem:[#allocation5 + $0x1a8] sm:$0xff]  ;;  %v125_v9 = vld [vmem:[#allocation5 + $0x1a0] sm:$0xff]  ;;  %v4778_v10 = vand.u32 4294901760, %v129_v7 }
  0x37   :  { %v4780_v11 = vand.u32 4294901760, %v126_v8  ;;  %v4782_v12 = vand.u32 4294901760, %v125_v9  ;;  %v122_v13 = vld [vmem:[#allocation5 + $0x188] sm:$0xff]  ;;  %v121_v14 = vld [vmem:[#allocation5 + $0x180] sm:$0xff]  ;;  %160 = vmatprep.subr.mxu0 %v4772_v4  ;;  %v4792_v19 = vsub.f32 %v134_v1, %v4772_v4  ;;  %v4805_v24 = vsub.f32 %v133_v2, %v4774_v5 }
  0x38   :  { %v118_v15 = vld [vmem:[#allocation5 + $0x168] sm:$0xff]  ;;  %v4785_v16 = vand.u32 4294901760, %v122_v13  ;;  %v4787_v17 = vand.u32 4294901760, %v121_v14  ;;  %v4794_v20 = vld [vmem:[#allocation5 + $0x160] sm:$0xff]  ;;  %162 = vmatpush1.msra.mxu0 %v4774_v5  ;;  %v4811_v26 = vsub.f32 %v130_v3, %v4776_v6  ;;  %v4825_v32 = vsub.f32 %v129_v7, %v4778_v10 }
  0x39   :  { %v4789_v18 = vand.u32 4294901760, %v118_v15  ;;  %v4796_v21 = vld [vmem:[#allocation5 + $0x148] sm:$0xff]  ;;  %v4798_v22 = vld [vmem:[#allocation5 + $0x140] sm:$0xff]  ;;  %v4802_v23 = vand.u32 4294901760, %v4794_v20  ;;  %164 = vmatprep.subr.mxu0 %v4776_v6  ;;  %v8356_v30 = vand.u32 4294901760, %v4792_v19  ;;  %v8355_v34 = vand.u32 4294901760, %v4805_v24 }
  0x3a   :  { %v4808_v25 = vand.u32 4294901760, %v4796_v21  ;;  %v4813_v27 = vld [vmem:[#allocation5 + $0x128] sm:$0xff]  ;;  %v4815_v28 = vld [vmem:[#allocation5 + $0x120] sm:$0xff]  ;;  %v4822_v31 = vand.u32 4294901760, %v4798_v22  ;;  %166 = vmatpush1.msra.mxu0 %v4778_v10  ;;  %v8353_v35 = vand.u32 4294901760, %v4811_v26  ;;  %v4834_v36 = vsub.f32 %v126_v8, %v4780_v11 }
  0x3b   :  { %v4817_v29 = vld [vmem:[#allocation5 + $0x108] sm:$0xff]  ;;  %v4828_v33 = vand.u32 4294901760, %v4813_v27  ;;  %v4837_v37 = vand.u32 4294901760, %v4815_v28  ;;  %v4839_v38 = vld [vmem:[#allocation5 + $0x100] sm:$0xff]  ;;  %168 = vmatprep.subr.mxu0 %v4780_v11  ;;  %v270_v39 = vsub.f32 %v4792_v19, %v8356_v30  ;;  %v8351_v40 = vand.u32 4294901760, %v4825_v32 }
  0x3c   :  { %8884 = vst [vmem:[#allocation15_spill] sm:$0xff] %v4822_v31  ;;  %v4847_v41 = vsub.f32 %v125_v9, %v4782_v12  ;;  %v4850_v42 = vand.u32 4294901760, %v4817_v29  ;;  %170 = vmatpush1.msra.mxu0 %v4782_v12  ;;  %v276_v43 = vsub.f32 %v4805_v24, %v8355_v34  ;;  %v282_v44 = vsub.f32 %v4811_v26, %v8353_v35  ;;  %v4863_v47 = vld [vmem:[#allocation5 + $0xe8] sm:$0xff]  ;;  %v4873_v52 = vld [vmem:[#allocation5 + $0xe0] sm:$0xff] }
  0x3d   :  { %8885 = vst [vmem:[#allocation16_spill] sm:$0xff] %v4828_v33  ;;  %8886 = vst [vmem:[#allocation17_spill] sm:$0xff] %v4837_v37  ;;  %v8350_v45 = vand.u32 4294901760, %v4834_v36  ;;  %v4861_v46 = vsub.f32 %v122_v13, %v4785_v16  ;;  %172 = vmatprep.subr.mxu0 %v4785_v16  ;;  %v271_v48 = vand.u32 4294901760, %v270_v39  ;;  %v288_v49 = vsub.f32 %v4825_v32, %v8351_v40  ;;  %v4880_v57 = vld [vmem:[#allocation5 + $0xc8] sm:$0xff]  ;;  %v4892_v62 = vld [vmem:[#allocation5 + $0xc0] sm:$0xff] }
  0x3e   :  { %8887 = vst [vmem:[#allocation18_spill] sm:$0xff] %v4850_v42  ;;  %v8348_v50 = vand.u32 4294901760, %v4847_v41  ;;  %v4871_v51 = vand.u32 4294901760, %v4839_v38  ;;  %174 = vmatpush1.msra.mxu0 %v4787_v17  ;;  %v277_v53 = vand.u32 4294901760, %v276_v43  ;;  %v283_v54 = vand.u32 4294901760, %v282_v44  ;;  %v4904_v7 = vld [vmem:[#allocation5 + $0xa8] sm:$0xff] }
  0x3f   :  { %v294_v55 = vsub.f32 %v4834_v36, %v8350_v45  ;;  %v8346_v56 = vand.u32 4294901760, %v4861_v46  ;;  %176 = vmatprep.subr.mxu0 %v4789_v18  ;;  %272 = vmatprep.subr.mxu1 %v271_v48  ;;  %v289_v58 = vand.u32 4294901760, %v288_v49  ;;  %v4887_v60 = vsub.f32 %v121_v14, %v4787_v17  ;;  %v4982_v45 = vld [vmem:[#allocation5 + $0x60] sm:$0xff]  ;;  %v4995_v35 = vld [vmem:[#allocation5 + $0x48] sm:$0xff] }
  0x40   :  { %8888 = vst [vmem:[#allocation19_spill] sm:$0xff] %v4871_v51  ;;  %v300_v59 = vsub.f32 %v4847_v41, %v8348_v50  ;;  %v4890_v61 = vand.u32 4294901760, %v4863_v47  ;;  %178 = vmatpush1.msra.mxu0 %v4802_v23  ;;  %278 = vmatpush1.msra.mxu1 %v277_v53  ;;  %v4899_v2 = vsub.f32 %v118_v15, %v4789_v18  ;;  %v4902_v3 = vand.u32 4294901760, %v4873_v52  ;;  %v4915_v15 = vld [vmem:[#allocation5 + $0xa0] sm:$0xff] }
  0x41   :  { %v295_v63 = vand.u32 4294901760, %v294_v55  ;;  %v306_v1 = vsub.f32 %v4861_v46, %v8346_v56  ;;  %180 = vmatprep.subr.mxu0 %v4808_v25  ;;  %284 = vmatprep.subr.mxu1 %v283_v54  ;;  %v8345_v9 = vand.u32 4294901760, %v4887_v60  ;;  %v4910_v13 = vsub.f32 %v4794_v20, %v4802_v23  ;;  %v5005_v34 = vld [vmem:[#allocation5 + $0x40] sm:$0xff] }
  0x42   :  { %8889 = vst [vmem:[#allocation20_spill] sm:$0xff] %v4890_v61  ;;  %8890 = vst [vmem:[#allocation21_spill] sm:$0xff] %v4902_v3  ;;  %v301_v8 = vand.u32 4294901760, %v300_v59  ;;  %v4913_v14 = vand.u32 4294901760, %v4880_v57  ;;  %182 = vmatpush1.msra.mxu0 %v4822_v31  ;;  %290 = vmatpush1.msra.mxu1 %v289_v58  ;;  %v8344_v43 = vand.u32 4294901760, %v4899_v2  ;;  %v4921_v44 = vsub.f32 %v4796_v21, %v4808_v25  ;;  %v4938_v21 = vld [vmem:[#allocation5 + $0x88] sm:$0xff] }
  0x43   :  { %v307_v39 = vand.u32 4294901760, %v306_v1  ;;  %v4924_v48 = vand.u32 4294901760, %v4892_v62  ;;  %184 = vmatprep.subr.mxu0 %v4828_v33  ;;  %296 = vmatprep.subr.mxu1 %v295_v63  ;;  %v312_v20 = vsub.f32 %v4887_v60, %v8345_v9  ;;  %v8347_v49 = vand.u32 4294901760, %v4910_v13  ;;  %v4961_v9 = vld [vmem:[#allocation5 + $0x80] sm:$0xff] }
  0x44   :  { %8891 = vst [vmem:[#allocation22_spill] sm:$0xff] %v4913_v14  ;;  %v4933_v53 = vsub.f32 %v4798_v22, %v4822_v31  ;;  %v4936_v54 = vand.u32 4294901760, %v4904_v7  ;;  %186 = vmatpush1.msra.mxu0 %v4837_v37  ;;  %302 = vmatpush1.msra.mxu1 %v301_v8  ;;  %v318_v55 = vsub.f32 %v4899_v2, %v8344_v43  ;;  %v8349_v58 = vand.u32 4294901760, %v4921_v44 }
  0x45   :  { %8892 = vst [vmem:[#allocation23_spill] sm:$0xff] %v4924_v48  ;;  %v4947_v59 = vsub.f32 %v4813_v27, %v4828_v33  ;;  %v4950_v22 = vand.u32 4294901760, %v4915_v15  ;;  %188 = vmatprep.subr.mxu0 %v4850_v42  ;;  %308 = vmatprep.subr.mxu1 %v307_v39  ;;  %v313_v63 = vand.u32 4294901760, %v312_v20  ;;  %v324_v1 = vsub.f32 %v4910_v13, %v8347_v49  ;;  %v4971_v49 = vld [vmem:[#allocation5 + $0x68] sm:$0xff]  ;;  %v72_v33 = vld [vmem:[#allocation2] sm:$0xff] }
  0x46   :  { %8893 = vst [vmem:[#allocation24_spill] sm:$0xff] %v4936_v54  ;;  %v8352_v8 = vand.u32 4294901760, %v4933_v53  ;;  %v4959_v43 = vsub.f32 %v4815_v28, %v4837_v37  ;;  %190 = vmatpush1.msra.mxu0 %v4871_v51  ;;  %v319_v27 = vand.u32 4294901760, %v318_v55  ;;  %v330_v39 = vsub.f32 %v4921_v44, %v8349_v58 }
  0x47   :  { %8894 = vst [vmem:[#allocation25_spill] sm:$0xff] %v4950_v22  ;;  %v8354_v20 = vand.u32 4294901760, %v4947_v59  ;;  %v4969_v56 = vand.u32 4294901760, %v4938_v21  ;;  %314 = vmatpush1.msra.mxu1 %v313_v63  ;;  %192 = vmatprep.subr.mxu0 %v4890_v61  ;;  %v325_v28 = vand.u32 4294901760, %v324_v1  ;;  %v4980_v58 = vsub.f32 %v4817_v29, %v4850_v42 }
  0x48   :  { %v336_v50 = vsub.f32 %v4933_v53, %v8352_v8  ;;  %v8357_v55 = vand.u32 4294901760, %v4959_v43  ;;  %320 = vmatprep.subr.mxu1 %v319_v27  ;;  %194 = vmatpush1.msra.mxu0 %v4902_v3  ;;  %v331_v40 = vand.u32 4294901760, %v330_v39  ;;  %v4989_v1 = vand.u32 4294901760, %v4961_v9 }
  0x49   :  { %8895 = vst [vmem:[#allocation26_spill] sm:$0xff] %v4969_v56  ;;  %v342_v63 = vsub.f32 %v4947_v59, %v8354_v20  ;;  %v4993_v8 = vsub.f32 %v4839_v38, %v4871_v51  ;;  %326 = vmatpush1.msra.mxu1 %v325_v28  ;;  %196 = vmatprep.subr.mxu0 %v4913_v14  ;;  %v8362_v39 = vand.u32 4294901760, %v4980_v58  ;;  %v5003_v20 = vand.u32 4294901760, %v4971_v49 }
  0x4a   :  { %8896 = vst [vmem:[#allocation27_spill] sm:$0xff] %v4989_v1  ;;  %v337_v29 = vand.u32 4294901760, %v336_v50  ;;  %v348_v27 = vsub.f32 %v4959_v43, %v8357_v55  ;;  %332 = vmatprep.subr.mxu1 %v331_v40  ;;  %198 = vmatpush1.msra.mxu0 %v4924_v48  ;;  %v5011_v50 = vsub.f32 %v4863_v47, %v4890_v61  ;;  %v5014_v30 = vand.u32 4294901760, %v4982_v45  ;;  %v5016_v55 = vld [vmem:[#allocation5 + $0x28] sm:$0xff] }
  0x4b   :  { %8897 = vst [vmem:[#allocation28_spill] sm:$0xff] %v5003_v20  ;;  %v343_v38 = vand.u32 4294901760, %v342_v63  ;;  %v8365_v28 = vand.u32 4294901760, %v4993_v8  ;;  %200 = vmatprep.subr.mxu0 %v4936_v54  ;;  %v354_v40 = vsub.f32 %v4980_v58, %v8362_v39  ;;  %v5024_v63 = vsub.f32 %v4873_v52, %v4902_v3  ;;  %v5041_v52 = vld [vmem:[#allocation5 + $0x20] sm:$0xff] }
  0x4c   :  { %8898 = vst [vmem:[#allocation29_spill] sm:$0xff] %v5014_v30  ;;  %338 = vmatpush1.msra.mxu1 %v337_v29  ;;  %v349_v0 = vand.u32 4294901760, %v348_v27  ;;  %v5027_v47 = vand.u32 4294901760, %v4995_v35  ;;  %202 = vmatpush1.msra.mxu0 %v4950_v22  ;;  %v5036_v61 = vsub.f32 %v4880_v57, %v4913_v14  ;;  %v5039_v39 = vand.u32 4294901760, %v5005_v34  ;;  %v5052_v57 = vld [vmem:[#allocation5 + $0x8] sm:$0xff] }
  0x4d   :  { %344 = vmatprep.subr.mxu1 %v343_v38  ;;  %v360_v29 = vsub.f32 %v4993_v8, %v8365_v28  ;;  %204 = vmatprep.subr.mxu0 %v4969_v56  ;;  %v355_v38 = vand.u32 4294901760, %v354_v40  ;;  %v5047_v28 = vsub.f32 %v4892_v62, %v4924_v48  ;;  %v5050_v27 = vand.u32 4294901760, %v5016_v55  ;;  %v5075_v40 = vld [vmem:[#allocation5] sm:$0xff] }
  0x4e   :  { %8899 = vst [vmem:[#allocation30_spill] sm:$0xff] %v5027_v47  ;;  %8900 = vst [vmem:[#allocation31_spill] sm:$0xff] %v5039_v39  ;;  %350 = vmatpush1.msra.mxu1 %v349_v0  ;;  %206 = vmatpush1.msra.mxu0 %v4989_v1  ;;  %v8902_v51 = vand.u32 4294901760, %v5011_v50  ;;  %v5061_v3 = vsub.f32 %v4904_v7, %v4936_v54  ;;  %v8903_v62 = vand.u32 4294901760, %v5024_v63  ;;  %v5083_v42 = vand.u32 4294901760, %v5052_v57 }
  0x4f   :  { %8901 = vst [vmem:[#allocation32_spill] sm:$0xff] %v5050_v27  ;;  %v361_v14 = vand.u32 4294901760, %v360_v29  ;;  %356 = vmatprep.subr.mxu1 %v355_v38  ;;  %208 = vmatprep.subr.mxu0 %v5003_v20  ;;  %v5069_v29 = vand.u32 4294901760, %v5041_v52  ;;  %v8904_v38 = vand.u32 4294901760, %v5036_v61  ;;  %v5099_v31 = vand.u32 4294901760, %v5075_v40 }
  0x50   :  { %v366_v0 = vsub.f32 %v5011_v50, %v8902_v51  ;;  %v372_v48 = vsub.f32 %v5024_v63, %v8903_v62  ;;  %v5073_v51 = vsub.f32 %v4915_v15, %v4950_v22  ;;  %210 = vmatpush1.msra.mxu0 %v5014_v30  ;;  %v8384_v62 = vand.u32 4294901760, %v5061_v3 }
  0x51   :  { %362 = vmatpush1.msra.mxu1 %v361_v14  ;;  %v378_v54 = vsub.f32 %v5036_v61, %v8904_v38  ;;  %212 = vmatprep.subr.mxu0 %v5027_v47  ;;  %v8905_v15 = vand.u32 4294901760, %v5047_v28 }
  0x52   :  { %v367_v7 = vand.u32 4294901760, %v366_v0  ;;  %v373_v37 = vand.u32 4294901760, %v372_v48  ;;  %v5092_v0 = vsub.f32 %v4938_v21, %v4969_v56  ;;  %214 = vmatpush1.msra.mxu0 %v5039_v39  ;;  %v390_v48 = vsub.f32 %v5061_v3, %v8384_v62 }
  0x53   :  { %v384_v22 = vsub.f32 %v5047_v28, %v8905_v15  ;;  %v379_v38 = vand.u32 4294901760, %v378_v54  ;;  %v5103_v15 = vsub.f32 %v4961_v9, %v4989_v1  ;;  %216 = vmatprep.subr.mxu0 %v5050_v27  ;;  %v8906_v21 = vand.u32 4294901760, %v5073_v51 }
  0x54   :  { %368 = vmatprep.subr.mxu1 %v367_v7  ;;  %v8387_v7 = vand.u32 4294901760, %v5092_v0  ;;  %v5112_v62 = vsub.f32 %v4971_v49, %v5003_v20  ;;  %v391_v56 = vand.u32 4294901760, %v390_v48  ;;  %218 = vmatpush1.msra.mxu0 %v5069_v29  ;;  %v5129_v48 = vsub.f32 %v4995_v35, %v5027_v47 }
  0x55   :  { %374 = vmatpush1.msra.mxu1 %v373_v37  ;;  %v385_v14 = vand.u32 4294901760, %v384_v22  ;;  %v396_v54 = vsub.f32 %v5073_v51, %v8906_v21  ;;  %v8390_v9 = vand.u32 4294901760, %v5103_v15  ;;  %v5116_v37 = vand.u32 4294901760, %v72_v33  ;;  %220 = vmatprep.subr.mxu0 %v5083_v42 }
  0x56   :  { %380 = vmatprep.subr.mxu1 %v379_v38  ;;  %v5120_v22 = vsub.f32 %v4982_v45, %v5014_v30  ;;  %v402_v49 = vsub.f32 %v5092_v0, %v8387_v7  ;;  %222 = vmatpush1.msra.mxu0 %v5099_v31  ;;  %v5141_v7 = vsub.f32 %v5005_v34, %v5039_v39  ;;  %v8909_v35 = vand.u32 4294901760, %v5112_v62 }
  0x57   :  { %8907 = vst [vmem:[#allocation33_spill] sm:$0xff] %v5116_v37  ;;  %386 = vmatpush1.msra.mxu1 %v385_v14  ;;  %v397_v21 = vand.u32 4294901760, %v396_v54  ;;  %v408_v45 = vsub.f32 %v5103_v15, %v8390_v9  ;;  %v5136_v14 = vsub.f32 %v72_v33, %v5116_v37  ;;  %501 = vmatprep.subr.mxu0 %v4792_v19  ;;  %v8397_v47 = vand.u32 4294901760, %v5129_v48 }
  0x58   :  { %392 = vmatprep.subr.mxu1 %v391_v56  ;;  %v403_v38 = vand.u32 4294901760, %v402_v49  ;;  %v414_v56 = vsub.f32 %v5112_v62, %v8909_v35  ;;  %v5150_v33 = vsub.f32 %v5016_v55, %v5050_v27  ;;  %v8911_v34 = vand.u32 4294901760, %v5120_v22 }
  0x59   :  { %8908 = vst [vmem:[#allocation34_spill] sm:$0xff] %v5136_v14  ;;  %398 = vmatpush1.msra.mxu1 %v397_v21  ;;  %v409_v9 = vand.u32 4294901760, %v408_v45  ;;  %v5153_v54 = vand.u32 4294901760, %v5136_v14  ;;  %v8398_v49 = vand.u32 4294901760, %v5141_v7  ;;  %v426_v39 = vsub.f32 %v5129_v48, %v8397_v47 }
  0x5a   :  { %v420_v21 = vsub.f32 %v5120_v22, %v8911_v34  ;;  %404 = vmatprep.subr.mxu1 %v403_v38  ;;  %v415_v35 = vand.u32 4294901760, %v414_v56  ;;  %v8404_v30 = vand.u32 4294901760, %v5150_v33  ;;  %v5165_v55 = vsub.f32 %v5041_v52, %v5069_v29 }
  0x5b   :  { %8910 = vst [vmem:[#allocation35_spill] sm:$0xff] %v5153_v54  ;;  %410 = vmatpush1.msra.mxu1 %v409_v9  ;;  %v259_v45 = vsub.f32 %v5136_v14, %v5153_v54  ;;  %v432_v38 = vsub.f32 %v5141_v7, %v8398_v49  ;;  %v5174_v56 = vsub.f32 %v5052_v57, %v5083_v42  ;;  %v427_v34 = vand.u32 4294901760, %v426_v39 }
  0x5c   :  { %8912 = vst [vmem:[#allocation36_spill] sm:$0xff] %v5165_v55  ;;  %v421_v27 = vand.u32 4294901760, %v420_v21  ;;  %416 = vmatprep.subr.mxu1 %v415_v35  ;;  %v438_v52 = vsub.f32 %v5150_v33, %v8404_v30  ;;  %v8403_v9 = vand.u32 4294901760, %v5165_v55  ;;  %v5182_v47 = vsub.f32 %v5075_v40, %v5099_v31  ;;  %v8927_v30 = vld [vmem:[#allocation26_spill] sm:$0xff] }
  0x5d   :  { %v5184_v21 = vand.u32 4294901760, %v259_v45  ;;  %v433_v49 = vand.u32 4294901760, %v432_v38  ;;  %v8402_v54 = vand.u32 4294901760, %v5174_v56 }
  0x5e   :  { %8913 = vst [vmem:[#allocation37_spill] sm:$0xff] %v5182_v47  ;;  %422 = vmatpush1.msra.mxu1 %v421_v27  ;;  %v439_v57 = vand.u32 4294901760, %v438_v52  ;;  %v444_v39 = vsub.f32 %v5165_v55, %v8403_v9  ;;  %v8401_v35 = vand.u32 4294901760, %v5182_v47  ;;  %v8916_v52 = vld [vmem:[#allocation15_spill] sm:$0xff]  ;;  %v8926_v9 = vld [vmem:[#allocation25_spill] sm:$0xff] }
  0x5f   :  { %8914 = vst [vmem:[#allocation38_spill] sm:$0xff] %v5184_v21  ;;  %428 = vmatprep.subr.mxu1 %v427_v34  ;;  %261 = vmatmul.mubr.f32.vlgmr.msra.gmra.mxu0 %v5184_v21  ;;  %v450_v40 = vsub.f32 %v5174_v56, %v8402_v54  ;;  %v8915_v34 = vmov 0.0   ;;  %v8925_v54 = vld [vmem:[#allocation24_spill] sm:$0xff]  ;;  %v8928_v21 = vand.u32 4294901760, %v4792_v19  ;;  %v8936_v19 = vand.u32 4294901760, %v4834_v36 }
  0x60   :  { %434 = vmatpush1.msra.mxu1 %v433_v49  ;;  %504 = vmatpush1.msra.mxu0 %v4805_v24  ;;  %v445_v27 = vand.u32 4294901760, %v444_v39  ;;  %v456_v45 = vsub.f32 %v5182_v47, %v8401_v35  ;;  %v8918_v39 = vld [vmem:[#allocation17_spill] sm:$0xff]  ;;  %v8924_v35 = vld [vmem:[#allocation23_spill] sm:$0xff] }
  0x61   :  { %440 = vmatprep.subr.mxu1 %v439_v57  ;;  %507 = vmatprep.subr.mxu0 %v4811_v26  ;;  %v451_v38 = vand.u32 4294901760, %v450_v40  ;;  %v8917_v57 = vld [vmem:[#allocation16_spill] sm:$0xff]  ;;  %v8919_v40 = vld [vmem:[#allocation18_spill] sm:$0xff] }
  0x62   :  { %627 = vmatprep.mubr.f32.mxu0 %v8915_v34  ;;  %510 = vmatpush1.msra.mxu0 %v4825_v32  ;;  %v457_v49 = vand.u32 4294901760, %v456_v45  ;;  %v8921_v45 = vld [vmem:[#allocation20_spill] sm:$0xff] }
  0x63   :  { %446 = vmatpush1.msra.mxu1 %v445_v27  ;;  %513 = vmatprep.subr.mxu0 %v4834_v36  ;;  %v8920_v27 = vld [vmem:[#allocation19_spill] sm:$0xff]  ;;  %v8941_v36 = vand.u32 4294901760, %v4899_v2 }
  0x64   :  { %452 = vmatprep.subr.mxu1 %v451_v38  ;;  %516 = vmatpush1.msra.mxu0 %v4847_v41  ;;  %v8922_v38 = vld [vmem:[#allocation21_spill] sm:$0xff] }
  0x65   :  { %458 = vmatpush1.msra.mxu1 %v457_v49  ;;  %519 = vmatprep.subr.mxu0 %v4861_v46  ;;  %v8923_v49 = vld [vmem:[#allocation22_spill] sm:$0xff] }
  0x66   :  { %493 = vmatmul.mubr.f32.vlgmr.msra.gmra.mxu1 %v5116_v37  ;;  %522 = vmatpush1.msra.mxu0 %v4887_v60  ;;  %v8929_v37 = vld [vmem:[#allocation29_spill] sm:$0xff] }
  0x67   :  { %637 = vmatprep.subr.mxu1 %v4772_v4  ;;  %525 = vmatprep.subr.mxu0 %v4899_v2  ;;  %v8945_v2 = vand.u32 4294901760, %v4947_v59 }
  0x68   :  { %639 = vmatpush1.msra.mxu1 %v4774_v5  ;;  %528 = vmatpush1.msra.mxu0 %v4910_v13 }
  0x69   :  { %641 = vmatprep.subr.mxu1 %v4776_v6  ;;  %531 = vmatprep.subr.mxu0 %v4921_v44 }
  0x6a   :  { %643 = vmatpush1.msra.mxu1 %v4778_v10  ;;  %534 = vmatpush1.msra.mxu0 %v4933_v53 }
  0x6b   :  { %645 = vmatprep.subr.mxu1 %v4780_v11  ;;  %537 = vmatprep.subr.mxu0 %v4947_v59  ;;  %v8952_v59 = vand.u32 4294901760, %v5047_v28 }
  0x6c   :  { %647 = vmatpush1.msra.mxu1 %v4782_v12  ;;  %540 = vmatpush1.msra.mxu0 %v4959_v43 }
  0x6d   :  { %649 = vmatprep.subr.mxu1 %v4785_v16  ;;  %543 = vmatprep.subr.mxu0 %v4980_v58 }
  0x6e   :  { %651 = vmatpush1.msra.mxu1 %v4787_v17  ;;  %546 = vmatpush1.msra.mxu0 %v4993_v8 }
  0x6f   :  { %653 = vmatprep.subr.mxu1 %v4789_v18  ;;  %549 = vmatprep.subr.mxu0 %v5011_v50 }
  0x70   :  { %655 = vmatpush1.msra.mxu1 %v4802_v23  ;;  %552 = vmatpush1.msra.mxu0 %v5024_v63 }
  0x71   :  { %657 = vmatprep.subr.mxu1 %v4808_v25  ;;  %555 = vmatprep.subr.mxu0 %v5036_v61 }
  0x72   :  { %659 = vmatpush1.msra.mxu1 %v8916_v52  ;;  %558 = vmatpush1.msra.mxu0 %v5047_v28  ;;  %v123_v28 = vld [vmem:[#allocation5 + $0x190] sm:$0xff] }
  0x73   :  { %661 = vmatprep.subr.mxu1 %v8917_v57  ;;  %561 = vmatprep.subr.mxu0 %v5061_v3 }
  0x74   :  { %663 = vmatpush1.msra.mxu1 %v8918_v39  ;;  %564 = vmatpush1.msra.mxu0 %v5073_v51 }
  0x75   :  { %665 = vmatprep.subr.mxu1 %v8919_v40  ;;  %567 = vmatprep.subr.mxu0 %v5092_v0 }
  0x76   :  { %667 = vmatpush1.msra.mxu1 %v8920_v27  ;;  %570 = vmatpush1.msra.mxu0 %v5103_v15 }
  0x77   :  { %669 = vmatprep.subr.mxu1 %v8921_v45  ;;  %573 = vmatprep.subr.mxu0 %v5112_v62 }
  0x78   :  { %671 = vmatpush1.msra.mxu1 %v8922_v38  ;;  %576 = vmatpush1.msra.mxu0 %v5120_v22 }
  0x79   :  { %673 = vmatprep.subr.mxu1 %v8923_v49  ;;  %579 = vmatprep.subr.mxu0 %v5129_v48 }
  0x7a   :  { %675 = vmatpush1.msra.mxu1 %v8924_v35  ;;  %582 = vmatpush1.msra.mxu0 %v5141_v7 }
  0x7b   :  { %677 = vmatprep.subr.mxu1 %v8925_v54  ;;  %585 = vmatprep.subr.mxu0 %v5150_v33 }
  0x7c   :  { %679 = vmatpush1.msra.mxu1 %v8926_v9  ;;  %588 = vmatpush1.msra.mxu0 %v5165_v55  ;;  %v8930_v9 = vand.u32 4294901760, %v4805_v24  ;;  %v8931_v55 = vld [vmem:[#allocation30_spill] sm:$0xff]  ;;  %v8937_v24 = vand.u32 4294901760, %v4847_v41  ;;  %v8942_v41 = vand.u32 4294901760, %v4910_v13 }
  0x7d   :  { %681 = vmatprep.subr.mxu1 %v8927_v30  ;;  %591 = vmatprep.subr.mxu0 %v5174_v56  ;;  %v8932_v30 = vand.u32 4294901760, %v4811_v26  ;;  %v8938_v26 = vand.u32 4294901760, %v4861_v46  ;;  %v8943_v46 = vand.u32 4294901760, %v4921_v44  ;;  %v135_v13 = vld [vmem:[#allocation5 + $0x1f0] sm:$0xff]  ;;  %v8948_v44 = vand.u32 4294901760, %v4993_v8 }
  0x7e   :  { %683 = vmatpush1.msra.mxu1 %v4989_v1  ;;  %594 = vmatpush1.msra.mxu0 %v5182_v47  ;;  %v8933_v1 = vld [vmem:[#allocation31_spill] sm:$0xff]  ;;  %v8934_v47 = vand.u32 4294901760, %v4825_v32 }
  0x7f   :  { %685 = vmatprep.subr.mxu1 %v5003_v20  ;;  %630 = vmatmul.mubr.f32.vlgmr.msra.gmra.mxu0 %v5136_v14  ;;  %v8935_v20 = vld [vmem:[#allocation32_spill] sm:$0xff]  ;;  %v8940_v32 = vld [vmem:[#allocation35_spill] sm:$0xff] }
  0x80   :  { %745 = vmatprep.subr.mxu0 %v8928_v21  ;;  %687 = vmatpush1.msra.mxu1 %v8929_v37  ;;  %v127_v8 = vld [vmem:[#allocation5 + $0x1b0] sm:$0xff] }
  0x81   :  { %749 = vmatpush1.msra.mxu0 %v8930_v9  ;;  %689 = vmatprep.subr.mxu1 %v8931_v55  ;;  %v8956_v9 = vand.u32 4294901760, %v5103_v15  ;;  %v5349_v21 = vand.u32 4294901760, %v127_v8  ;;  %v120_v15 = vld [vmem:[#allocation5 + $0x178] sm:$0xff] }
  0x82   :  { %753 = vmatprep.subr.mxu0 %v8932_v30  ;;  %691 = vmatpush1.msra.mxu1 %v8933_v1  ;;  %v8939_v30 = vand.u32 4294901760, %v4887_v60  ;;  %v8944_v60 = vand.u32 4294901760, %v4933_v53  ;;  %v8951_v53 = vand.u32 4294901760, %v5036_v61  ;;  %v8954_v61 = vand.u32 4294901760, %v5073_v51 }
  0x83   :  { %757 = vmatpush1.msra.mxu0 %v8934_v47  ;;  %693 = vmatprep.subr.mxu1 %v8935_v20  ;;  %8957 = vst [vmem:[#allocation15_spill] sm:$0xff] %v5349_v21 }
  0x84   :  { %761 = vmatprep.subr.mxu0 %v8936_v19  ;;  %695 = vmatpush1.msra.mxu1 %v5069_v29 }
  0x85   :  { %765 = vmatpush1.msra.mxu0 %v8937_v24  ;;  %697 = vmatprep.subr.mxu1 %v5083_v42 }
  0x86   :  { %769 = vmatprep.subr.mxu0 %v8938_v26  ;;  %699 = vmatpush1.msra.mxu1 %v5099_v31  ;;  %v8961_v26 = vand.u32 4294901760, %v5129_v48 }
  0x87   :  { %732 = vmatprep.mubr.f32.mxu1 %v8915_v34  ;;  %773 = vmatpush1.msra.mxu0 %v8939_v30 }
  0x88   :  { %736 = vmatmul.mubr.f32.vlgmr.msra.gmra.mxu1 %v8940_v32  ;;  %777 = vmatprep.subr.mxu0 %v8941_v36  ;;  %v8963_v36 = vand.u32 4294901760, %v5141_v7  ;;  %v111_v7 = vld [vmem:[#allocation5 + $0x130] sm:$0xff] }
  0x89   :  { %911 = vmatprep.subr.mxu1 %v4772_v4  ;;  %781 = vmatpush1.msra.mxu0 %v8942_v41  ;;  %v8946_v4 = vand.u32 4294901760, %v4959_v43  ;;  %v5377_v41 = vsub.f32 %v127_v8, %v5349_v21 }
  0x8a   :  { %913 = vmatpush1.msra.mxu1 %v4774_v5  ;;  %785 = vmatprep.subr.mxu0 %v8943_v46  ;;  %v8947_v5 = vand.u32 4294901760, %v4980_v58 }
  0x8b   :  { %915 = vmatprep.subr.mxu1 %v4776_v6  ;;  %789 = vmatpush1.msra.mxu0 %v8944_v60  ;;  %v136_v6 = vld [vmem:[#allocation5 + $0x1f8] sm:$0xff]  ;;  %v5387_v60 = vand.u32 4294901760, %v120_v15  ;;  %v8412_v8 = vand.u32 4294901760, %v5377_v41 }
  0x8c   :  { %917 = vmatpush1.msra.mxu1 %v4778_v10  ;;  %793 = vmatprep.subr.mxu0 %v8945_v2  ;;  %v131_v10 = vld [vmem:[#allocation5 + $0x1d0] sm:$0xff]  ;;  %v5312_v43 = vand.u32 4294901760, %v136_v6 }
  0x8d   :  { %919 = vmatprep.subr.mxu1 %v4780_v11  ;;  %797 = vmatpush1.msra.mxu0 %v8946_v4  ;;  %v8949_v11 = vand.u32 4294901760, %v5011_v50  ;;  %v5319_v58 = vand.u32 4294901760, %v131_v10  ;;  %8966 = vst [vmem:[#allocation19_spill] sm:$0xff] %v5387_v60  ;;  %v8968_v4 = vld [vmem:[#allocation36_spill] sm:$0xff] }
  0x8e   :  { %921 = vmatpush1.msra.mxu1 %v4782_v12  ;;  %801 = vmatprep.subr.mxu0 %v8947_v5  ;;  %v8950_v12 = vand.u32 4294901760, %v5024_v63  ;;  %v5336_v63 = vsub.f32 %v136_v6, %v5312_v43  ;;  %v8970_v5 = vld [vmem:[#allocation25_spill] sm:$0xff] }
  0x8f   :  { %923 = vmatprep.subr.mxu1 %v4785_v16  ;;  %805 = vmatpush1.msra.mxu0 %v8948_v44  ;;  %v5314_v16 = vand.u32 4294901760, %v135_v13  ;;  %v5342_v47 = vsub.f32 %v131_v10, %v5319_v58  ;;  %v112_v44 = vld [vmem:[#allocation5 + $0x138] sm:$0xff]  ;;  %v8972_v10 = vand.u32 4294901760, %v5174_v56 }
  0x90   :  { %925 = vmatpush1.msra.mxu1 %v4787_v17  ;;  %809 = vmatprep.subr.mxu0 %v8949_v11  ;;  %v132_v17 = vld [vmem:[#allocation5 + $0x1d8] sm:$0xff]  ;;  %v8418_v19 = vand.u32 4294901760, %v5336_v63  ;;  %v8973_v11 = vld [vmem:[#allocation26_spill] sm:$0xff] }
  0x91   :  { %927 = vmatprep.subr.mxu1 %v4789_v18  ;;  %813 = vmatpush1.msra.mxu0 %v8950_v12  ;;  %v128_v18 = vld [vmem:[#allocation5 + $0x1b8] sm:$0xff]  ;;  %v5333_v50 = vand.u32 4294901760, %v132_v17  ;;  %v8414_v30 = vand.u32 4294901760, %v5342_v47 }
  0x92   :  { %929 = vmatpush1.msra.mxu1 %v4802_v23  ;;  %817 = vmatprep.subr.mxu0 %v8951_v53  ;;  %v8953_v23 = vand.u32 4294901760, %v5061_v3  ;;  %v8955_v3 = vand.u32 4294901760, %v5092_v0  ;;  %v5344_v51 = vand.u32 4294901760, %v128_v18  ;;  %v5354_v0 = vand.u32 4294901760, %v123_v28 }
  0x93   :  { %931 = vmatprep.subr.mxu1 %v4808_v25  ;;  %821 = vmatpush1.msra.mxu0 %v8952_v59  ;;  %v5331_v25 = vsub.f32 %v135_v13, %v5314_v16  ;;  %v5362_v24 = vsub.f32 %v132_v17, %v5333_v50  ;;  %v5413_v12 = vsub.f32 %v5342_v47, %v8414_v30  ;;  %v8974_v59 = vld [vmem:[#allocation37_spill] sm:$0xff] }
  0x94   :  { %933 = vmatpush1.msra.mxu1 %v8916_v52  ;;  %825 = vmatprep.subr.mxu0 %v8953_v23  ;;  %v124_v52 = vld [vmem:[#allocation5 + $0x198] sm:$0xff]  ;;  %8959 = vst [vmem:[#allocation16_spill] sm:$0xff] %v5354_v0  ;;  %v5385_v46 = vsub.f32 %v123_v28, %v5354_v0  ;;  %v5425_v23 = vand.u32 4294901760, %v111_v7 }
  0x95   :  { %935 = vmatprep.subr.mxu1 %v8917_v57  ;;  %829 = vmatpush1.msra.mxu0 %v8954_v61  ;;  %v8958_v57 = vand.u32 4294901760, %v5112_v62  ;;  %v115_v62 = vld [vmem:[#allocation5 + $0x150] sm:$0xff]  ;;  %v8415_v13 = vand.u32 4294901760, %v5362_v24  ;;  %v108_v61 = vld [vmem:[#allocation5 + $0x118] sm:$0xff] }
  0x96   :  { %937 = vmatpush1.msra.mxu1 %v8918_v39  ;;  %833 = vmatprep.subr.mxu0 %v8955_v3  ;;  %v119_v39 = vld [vmem:[#allocation5 + $0x170] sm:$0xff]  ;;  %v5389_v2 = vand.u32 4294901760, %v115_v62  ;;  %8976 = vst [vmem:[#allocation22_spill] sm:$0xff] %v5425_v23  ;;  %v8978_v3 = vld [vmem:[#allocation33_spill] sm:$0xff] }
  0x97   :  { %939 = vmatprep.subr.mxu1 %v8919_v40  ;;  %837 = vmatpush1.msra.mxu0 %v8956_v9  ;;  %v8960_v40 = vand.u32 4294901760, %v5120_v22  ;;  %v116_v22 = vld [vmem:[#allocation5 + $0x158] sm:$0xff]  ;;  %v5379_v48 = vand.u32 4294901760, %v119_v39 }
  0x98   :  { %941 = vmatpush1.msra.mxu1 %v8920_v27  ;;  %841 = vmatprep.subr.mxu0 %v8958_v57  ;;  %v8417_v27 = vand.u32 4294901760, %v5331_v25  ;;  %8967 = vst [vmem:[#allocation20_spill] sm:$0xff] %v5389_v2  ;;  %v5404_v6 = vand.u32 4294901760, %v116_v22  ;;  %v8977_v28 = vld [vmem:[#allocation27_spill] sm:$0xff]  ;;  %v5431_v9 = vsub.f32 %v115_v62, %v5389_v2  ;;  %v5446_v62 = vsub.f32 %v5362_v24, %v8415_v13 }
  0x99   :  { %943 = vmatprep.subr.mxu1 %v8921_v45  ;;  %845 = vmatpush1.msra.mxu0 %v8960_v40  ;;  %v5367_v45 = vand.u32 4294901760, %v124_v52  ;;  %8964 = vst [vmem:[#allocation18_spill] sm:$0xff] %v5379_v48  ;;  %v5423_v56 = vsub.f32 %v119_v39, %v5379_v48  ;;  %v107_v57 = vld [vmem:[#allocation5 + $0x110] sm:$0xff]  ;;  %v8416_v40 = vand.u32 4294901760, %v5385_v46  ;;  %v5437_v39 = vsub.f32 %v120_v15, %v5387_v60  ;;  %v96_v15 = vld [vmem:[#allocation5 + $0xb8] sm:$0xff] }
  0x9a   :  { %945 = vmatpush1.msra.mxu1 %v8922_v38  ;;  %849 = vmatprep.subr.mxu0 %v8961_v26  ;;  %v5371_v38 = vsub.f32 %v128_v18, %v5344_v51  ;;  %8971 = vst [vmem:[#allocation21_spill] sm:$0xff] %v5404_v6  ;;  %v8975_v18 = vand.u32 4294901760, %v8974_v59  ;;  %v8980_v26 = vld [vmem:[#allocation28_spill] sm:$0xff]  ;;  %v5472_v59 = vand.u32 4294901760, %v107_v57  ;;  %v5551_v14 = vand.u32 4294901760, %v96_v15 }
  0x9b   :  { %947 = vmatprep.subr.mxu1 %v8923_v49  ;;  %8962 = vst [vmem:[#allocation17_spill] sm:$0xff] %v5367_v45  ;;  %853 = vmatpush1.msra.mxu0 %v8963_v36  ;;  %v8965_v49 = vand.u32 4294901760, %v5150_v33  ;;  %v5397_v33 = vsub.f32 %v5336_v63, %v8418_v19  ;;  %v5417_v17 = vsub.f32 %v124_v52, %v5367_v45  ;;  %v5433_v52 = vand.u32 4294901760, %v112_v44 }
  0x9c   :  { %949 = vmatpush1.msra.mxu1 %v8924_v35  ;;  %v8969_v35 = vand.u32 4294901760, %v8968_v4  ;;  %v8413_v53 = vand.u32 4294901760, %v5371_v38  ;;  %902 = vmatprep.mubr.f32.mxu0 %v8915_v34  ;;  %v103_v4 = vld [vmem:[#allocation5 + $0xf0] sm:$0xff]  ;;  %8982 = vst [vmem:[#allocation29_spill] sm:$0xff] %v5472_v59  ;;  %v5512_v19 = vsub.f32 %v107_v57, %v5472_v59  ;;  %8989 = vst [vmem:[#allocation37_spill] sm:$0xff] %v5551_v14 }
  0x9d   :  { %857 = vmatprep.subr.mxu0 %v8965_v49  ;;  %951 = vmatprep.subr.mxu1 %v8925_v54  ;;  %v5402_v54 = vsub.f32 %v5331_v25, %v8417_v27  ;;  %8979 = vst [vmem:[#allocation23_spill] sm:$0xff] %v5433_v52  ;;  %v1126_v36 = vand.u32 4294901760, %v5397_v33  ;;  %v5459_v33 = vand.u32 4294901760, %v108_v61  ;;  %v91_v49 = vld [vmem:[#allocation5 + $0x90] sm:$0xff] }
  0x9e   :  { %861 = vmatpush1.msra.mxu0 %v8969_v35  ;;  %953 = vmatpush1.msra.mxu1 %v8970_v5  ;;  %v5449_v35 = vsub.f32 %v116_v22, %v5404_v6  ;;  %v5457_v5 = vsub.f32 %v5371_v38, %v8413_v53  ;;  %v5470_v22 = vsub.f32 %v5377_v41, %v8412_v8  ;;  %v100_v8 = vld [vmem:[#allocation5 + $0xd8] sm:$0xff] }
  0x9f   :  { %865 = vmatprep.subr.mxu0 %v8972_v10  ;;  %955 = vmatprep.subr.mxu1 %v8973_v11  ;;  %8981 = vst [vmem:[#allocation24_spill] sm:$0xff] %v5459_v33  ;;  %v8419_v10 = vand.u32 4294901760, %v5417_v17  ;;  %v99_v11 = vld [vmem:[#allocation5 + $0xd0] sm:$0xff]  ;;  %v5486_v53 = vsub.f32 %v112_v44, %v5433_v52  ;;  %8987 = vst [vmem:[#allocation25_spill] sm:$0xff] %v5512_v19 }
  0xa0   :  { %869 = vmatpush1.msra.mxu0 %v8975_v18  ;;  %957 = vmatpush1.msra.mxu1 %v8977_v28  ;;  %v104_v18 = vld [vmem:[#allocation5 + $0xf8] sm:$0xff]  ;;  %v8420_v28 = vand.u32 4294901760, %v5423_v56  ;;  %v8423_v30 = vand.u32 4294901760, %v5449_v35  ;;  %v5492_v13 = vand.u32 4294901760, %v99_v11  ;;  %v1150_v27 = vand.u32 4294901760, %v5457_v5 }
  0xa1   :  { %904 = vmatmul.mubr.f32.vlgmr.msra.gmra.mxu0 %v8978_v3  ;;  %959 = vmatprep.subr.mxu1 %v8980_v26  ;;  %v5483_v26 = vand.u32 4294901760, %v103_v4  ;;  %v5503_v44 = vand.u32 4294901760, %v104_v18 }
  0xa2   :  { %1015 = vmatprep.subr.mxu0 %v5312_v43  ;;  %961 = vmatpush1.msra.mxu1 %v8929_v37  ;;  %v5465_v37 = vsub.f32 %v111_v7, %v5425_v23  ;;  %v8421_v7 = vand.u32 4294901760, %v5437_v39  ;;  %8984 = vst [vmem:[#allocation31_spill] sm:$0xff] %v5492_v13  ;;  %v5517_v5 = vsub.f32 %v5423_v56, %v8420_v28  ;;  %v95_v28 = vld [vmem:[#allocation5 + $0xb0] sm:$0xff] }
  0xa3   :  { %1017 = vmatpush1.msra.mxu0 %v5314_v16  ;;  %963 = vmatprep.subr.mxu1 %v8931_v55  ;;  %v5480_v55 = vsub.f32 %v5385_v46, %v8416_v40  ;;  %8983 = vst [vmem:[#allocation30_spill] sm:$0xff] %v5483_v26  ;;  %v8426_v40 = vand.u32 4294901760, %v5431_v9  ;;  %8985 = vst [vmem:[#allocation32_spill] sm:$0xff] %v5503_v44  ;;  %v5530_v57 = vsub.f32 %v103_v4, %v5483_v26 }
  0xa4   :  { %1019 = vmatprep.subr.mxu0 %v5333_v50  ;;  %965 = vmatpush1.msra.mxu1 %v8933_v1  ;;  %v1138_v1 = vand.u32 4294901760, %v5446_v62  ;;  %v5506_v62 = vsub.f32 %v108_v61, %v5459_v33  ;;  %v5527_v61 = vsub.f32 %v5437_v39, %v8421_v7  ;;  %v1180_v7 = vand.u32 4294901760, %v5517_v5 }
  0xa5   :  { %1021 = vmatpush1.msra.mxu0 %v5319_v58  ;;  %967 = vmatprep.subr.mxu1 %v8935_v20  ;;  %v5501_v20 = vsub.f32 %v5417_v17, %v8419_v10  ;;  %v5519_v10 = vand.u32 4294901760, %v100_v8  ;;  %v5546_v4 = vsub.f32 %v5431_v9, %v8426_v40  ;;  %v8990_v40 = vand.u32 4294901760, %v5402_v54 }
  0xa6   :  { %1023 = vmatprep.subr.mxu0 %v5344_v51  ;;  %969 = vmatpush1.msra.mxu1 %v5069_v29  ;;  %8986 = vst [vmem:[#allocation36_spill] sm:$0xff] %v5506_v62  ;;  %v1156_v29 = vand.u32 4294901760, %v5470_v22  ;;  %v92_v22 = vld [vmem:[#allocation5 + $0x98] sm:$0xff]  ;;  %v8994_v5 = vand.u32 4294901760, %v5413_v12 }
  0xa7   :  { %1025 = vmatpush1.msra.mxu0 %v5349_v21  ;;  %971 = vmatprep.subr.mxu1 %v5083_v42  ;;  %8988 = vst [vmem:[#allocation26_spill] sm:$0xff] %v5519_v10  ;;  %v1168_v42 = vand.u32 4294901760, %v5480_v55  ;;  %v5541_v55 = vsub.f32 %v99_v11, %v5492_v13  ;;  %v1162_v32 = vand.u32 4294901760, %v5501_v20  ;;  %v5555_v11 = vsub.f32 %v104_v18, %v5503_v44  ;;  %v83_v21 = vld [vmem:[#allocation5 + $0x50] sm:$0xff] }
  0xa8   :  { %1027 = vmatprep.subr.mxu0 %v5367_v45  ;;  %973 = vmatpush1.msra.mxu1 %v5099_v31  ;;  %v5538_v31 = vsub.f32 %v5449_v35, %v8423_v30  ;;  %v5561_v45 = vand.u32 4294901760, %v95_v28  ;;  %v1174_v18 = vand.u32 4294901760, %v5527_v61  ;;  %v8993_v30 = vand.u32 4294901760, %v5486_v53 }
  0xa9   :  { %1006 = vmatprep.mubr.f32.mxu1 %v8915_v34  ;;  %1029 = vmatpush1.msra.mxu0 %v5354_v0  ;;  %v87_v0 = vld [vmem:[#allocation5 + $0x70] sm:$0xff]  ;;  %v5573_v54 = vand.u32 4294901760, %v92_v22  ;;  %v8995_v61 = vand.u32 4294901760, %v5465_v37 }
  0xaa   :  { %1008 = vmatmul.mubr.f32.vlgmr.msra.gmra.mxu1 %v8978_v3  ;;  %1031 = vmatprep.subr.mxu0 %v5387_v60  ;;  %8991 = vst [vmem:[#allocation27_spill] sm:$0xff] %v5561_v45  ;;  %v88_v60 = vld [vmem:[#allocation5 + $0x78] sm:$0xff]  ;;  %v1186_v20 = vand.u32 4294901760, %v5538_v31 }
  0xab   :  { %1127 = vmatprep.subr.mxu1 %v1126_v36  ;;  %1033 = vmatpush1.msra.mxu0 %v5379_v48  ;;  %v5563_v36 = vand.u32 4294901760, %v91_v49  ;;  %v5571_v48 = vsub.f32 %v5486_v53, %v8993_v30  ;;  %v5588_v30 = vand.u32 4294901760, %v87_v0 }
  0xac   :  { %1133 = vmatpush1.msra.mxu1 %v8990_v40  ;;  %1035 = vmatprep.subr.mxu0 %v5404_v6  ;;  %v5576_v40 = vsub.f32 %v100_v8, %v5519_v10  ;;  %v5586_v6 = vsub.f32 %v5465_v37, %v8995_v61  ;;  %v8996_v8 = vand.u32 4294901760, %v5506_v62  ;;  %v5604_v61 = vsub.f32 %v95_v28, %v5561_v45  ;;  %v80_v28 = vld [vmem:[#allocation5 + $0x38] sm:$0xff] }
  0xad   :  { %8992 = vst [vmem:[#allocation28_spill] sm:$0xff] %v5563_v36  ;;  %1139 = vmatprep.subr.mxu1 %v1138_v1  ;;  %1037 = vmatpush1.msra.mxu0 %v5389_v2  ;;  %v1192_v1 = vand.u32 4294901760, %v5546_v4  ;;  %v84_v4 = vld [vmem:[#allocation5 + $0x58] sm:$0xff]  ;;  %v5600_v2 = vsub.f32 %v96_v15, %v5551_v14  ;;  %v1198_v15 = vand.u32 4294901760, %v5571_v48  ;;  %v79_v48 = vld [vmem:[#allocation5 + $0x30] sm:$0xff] }
  0xae   :  { %1145 = vmatpush1.msra.mxu1 %v8994_v5  ;;  %1039 = vmatprep.subr.mxu0 %v5433_v52  ;;  %v5594_v12 = vsub.f32 %v5506_v62, %v8996_v8  ;;  %v5596_v5 = vand.u32 4294901760, %v88_v60  ;;  %v8998_v8 = vand.u32 4294901760, %v5512_v19  ;;  %v5626_v62 = vand.u32 4294901760, %v84_v4 }
  0xaf   :  { %1151 = vmatprep.subr.mxu1 %v1150_v27  ;;  %1041 = vmatpush1.msra.mxu0 %v5425_v23  ;;  %v5607_v27 = vsub.f32 %v91_v49, %v5563_v36  ;;  %v5619_v23 = vsub.f32 %v92_v22, %v5573_v54  ;;  %v1204_v49 = vand.u32 4294901760, %v5586_v6  ;;  %v8999_v22 = vand.u32 4294901760, %v5555_v11  ;;  %v76_v6 = vld [vmem:[#allocation5 + $0x18] sm:$0xff] }
  0xb0   :  { %1157 = vmatpush1.msra.mxu1 %v1156_v29  ;;  %v1215_v52 = vsub.f32 %v5512_v19, %v8998_v8  ;;  %1043 = vmatprep.subr.mxu0 %v5459_v33  ;;  %v5616_v29 = vand.u32 4294901760, %v83_v21  ;;  %v5624_v8 = vsub.f32 %v87_v0, %v5588_v30  ;;  %v1210_v31 = vand.u32 4294901760, %v5594_v12  ;;  %v75_v19 = vld [vmem:[#allocation5 + $0x10] sm:$0xff] }
  0xb1   :  { %8997 = vst [vmem:[#allocation39_spill] sm:$0xff] %v5607_v27  ;;  %1163 = vmatprep.subr.mxu1 %v1162_v32  ;;  %1045 = vmatpush1.msra.mxu0 %v5472_v59  ;;  %v1221_v59 = vsub.f32 %v5555_v11, %v8999_v22  ;;  %v5636_v0 = vsub.f32 %v88_v60, %v5596_v5  ;;  %v9000_v33 = vand.u32 4294901760, %v5530_v57  ;;  %v9001_v22 = vand.u32 4294901760, %v5576_v40 }
  0xb2   :  { %1169 = vmatpush1.msra.mxu1 %v1168_v42  ;;  %1047 = vmatprep.subr.mxu0 %v5503_v44  ;;  %v1216_v32 = vand.u32 4294901760, %v1215_v52  ;;  %v5642_v44 = vand.u32 4294901760, %v80_v28  ;;  %v5650_v42 = vsub.f32 %v83_v21, %v5616_v29  ;;  %v5652_v52 = vand.u32 4294901760, %v79_v48 }
  0xb3   :  { %1175 = vmatprep.subr.mxu1 %v1174_v18  ;;  %1049 = vmatpush1.msra.mxu0 %v5483_v26  ;;  %v1227_v18 = vsub.f32 %v5530_v57, %v9000_v33  ;;  %v1233_v60 = vsub.f32 %v5576_v40, %v9001_v22  ;;  %v9002_v33 = vand.u32 4294901760, %v5541_v55  ;;  %v5663_v22 = vsub.f32 %v84_v4, %v5626_v62 }
  0xb4   :  { %1181 = vmatpush1.msra.mxu1 %v1180_v7  ;;  %1051 = vmatprep.subr.mxu0 %v5519_v10  ;;  %v5659_v10 = vand.u32 4294901760, %v76_v6  ;;  %v1222_v21 = vand.u32 4294901760, %v1221_v59  ;;  %v9003_v7 = vand.u32 4294901760, %v5600_v2 }
  0xb5   :  { %1187 = vmatprep.subr.mxu1 %v1186_v20  ;;  %1053 = vmatpush1.msra.mxu0 %v5492_v13  ;;  %v1239_v12 = vsub.f32 %v5541_v55, %v9002_v33  ;;  %v1228_v33 = vand.u32 4294901760, %v1227_v18  ;;  %v9004_v20 = vand.u32 4294901760, %v5604_v61  ;;  %v1234_v59 = vand.u32 4294901760, %v1233_v60 }
  0xb6   :  { %1193 = vmatpush1.msra.mxu1 %v1192_v1  ;;  %1055 = vmatprep.subr.mxu0 %v5551_v14  ;;  %v1245_v13 = vsub.f32 %v5600_v2, %v9003_v7  ;;  %v5669_v1 = vand.u32 4294901760, %v75_v19  ;;  %v5677_v14 = vsub.f32 %v80_v28, %v5642_v44  ;;  %v9006_v7 = vand.u32 4294901760, %v5619_v23 }
  0xb7   :  { %1199 = vmatprep.subr.mxu1 %v1198_v15  ;;  %1057 = vmatpush1.msra.mxu0 %v5561_v45  ;;  %v1251_v4 = vsub.f32 %v5604_v61, %v9004_v20  ;;  %v5681_v15 = vsub.f32 %v79_v48, %v5652_v52  ;;  %v1240_v18 = vand.u32 4294901760, %v1239_v12  ;;  %v9007_v28 = vand.u32 4294901760, %v5607_v27 }
  0xb8   :  { %1205 = vmatpush1.msra.mxu1 %v1204_v49  ;;  %9005 = vst [vmem:[#allocation40_spill] sm:$0xff] %v5677_v14  ;;  %1059 = vmatprep.subr.mxu0 %v5573_v54  ;;  %v1257_v26 = vsub.f32 %v5619_v23, %v9006_v7  ;;  %v5693_v60 = vsub.f32 %v76_v6, %v5659_v10  ;;  %v1246_v48 = vand.u32 4294901760, %v1245_v13  ;;  %v9009_v49 = vand.u32 4294901760, %v5636_v0 }
  0xb9   :  { %1211 = vmatprep.subr.mxu1 %v1210_v31  ;;  %1061 = vmatpush1.msra.mxu0 %v5563_v36  ;;  %v1263_v20 = vsub.f32 %v5607_v27, %v9007_v28  ;;  %v5697_v7 = vsub.f32 %v75_v19, %v5669_v1  ;;  %v1252_v28 = vand.u32 4294901760, %v1251_v4  ;;  %v8463_v6 = vand.u32 4294901760, %v5677_v14 }
  0xba   :  { %1217 = vmatpush1.msra.mxu1 %v1216_v32  ;;  %1063 = vmatprep.subr.mxu0 %v5596_v5  ;;  %v1269_v32 = vsub.f32 %v5636_v0, %v9009_v49  ;;  %v9010_v13 = vand.u32 4294901760, %v5624_v8  ;;  %v9011_v12 = vand.u32 4294901760, %v5663_v22  ;;  %v8462_v4 = vand.u32 4294901760, %v5693_v60 }
  0xbb   :  { %1223 = vmatprep.subr.mxu1 %v1222_v21  ;;  %9008 = vst [vmem:[#allocation41_spill] sm:$0xff] %v5697_v7  ;;  %1065 = vmatpush1.msra.mxu0 %v5588_v30  ;;  %v1258_v21 = vand.u32 4294901760, %v1257_v26  ;;  %v1264_v49 = vand.u32 4294901760, %v1263_v20  ;;  %v8461_v31 = vand.u32 4294901760, %v5697_v7 }
  0xbc   :  { %1229 = vmatpush1.msra.mxu1 %v1228_v33  ;;  %1067 = vmatprep.subr.mxu0 %v5626_v62  ;;  %v1275_v19 = vsub.f32 %v5624_v8, %v9010_v13  ;;  %v1281_v33 = vsub.f32 %v5663_v22, %v9011_v12  ;;  %v1270_v26 = vand.u32 4294901760, %v1269_v32 }
  0xbd   :  { %1235 = vmatprep.subr.mxu1 %v1234_v59  ;;  %1069 = vmatpush1.msra.mxu0 %v5616_v29  ;;  %v9012_v59 = vand.u32 4294901760, %v5650_v42 }
  0xbe   :  { %1241 = vmatpush1.msra.mxu1 %v1240_v18  ;;  %1071 = vmatprep.subr.mxu0 %v5642_v44  ;;  %v1293_v18 = vsub.f32 %v5677_v14, %v8463_v6  ;;  %v1276_v20 = vand.u32 4294901760, %v1275_v19  ;;  %v1282_v12 = vand.u32 4294901760, %v1281_v33  ;;  %v9014_v19 = vld [vmem:[#allocation38_spill] sm:$0xff] }
  0xbf   :  { %1247 = vmatprep.subr.mxu1 %v1246_v48  ;;  %v1287_v13 = vsub.f32 %v5650_v42, %v9012_v59  ;;  %1073 = vmatpush1.msra.mxu0 %v5652_v52  ;;  %v9013_v48 = vand.u32 4294901760, %v5681_v15  ;;  %v9030_v6 = vld [vmem:[#allocation26_spill] sm:$0xff] }
  0xc0   :  { %1253 = vmatpush1.msra.mxu1 %v1252_v28  ;;  %1075 = vmatprep.subr.mxu0 %v5659_v10  ;;  %v1305_v28 = vsub.f32 %v5693_v60, %v8462_v4  ;;  %v9029_v4 = vld [vmem:[#allocation30_spill] sm:$0xff] }
  0xc1   :  { %1259 = vmatprep.subr.mxu1 %v1258_v21  ;;  %v1299_v32 = vsub.f32 %v5681_v15, %v9013_v48  ;;  %1077 = vmatpush1.msra.mxu0 %v5669_v1  ;;  %v1288_v59 = vand.u32 4294901760, %v1287_v13  ;;  %v1311_v21 = vsub.f32 %v5697_v7, %v8461_v31  ;;  %v1294_v48 = vand.u32 4294901760, %v1293_v18  ;;  %v9015_v13 = vld [vmem:[#allocation15_spill] sm:$0xff]  ;;  %v9016_v18 = vld [vmem:[#allocation36_spill] sm:$0xff] }
  0xc2   :  { %1265 = vmatpush1.msra.mxu1 %v1264_v49  ;;  %1110 = vmatprep.mubr.f32.mxu0 %v8915_v34  ;;  %v1306_v33 = vand.u32 4294901760, %v1305_v28  ;;  %v9020_v28 = vld [vmem:[#allocation19_spill] sm:$0xff]  ;;  %v9028_v31 = vld [vmem:[#allocation32_spill] sm:$0xff] }
  0xc3   :  { %1271 = vmatprep.subr.mxu1 %v1270_v26  ;;  %1356 = vmatprep.subr.mxu0 %v5336_v63  ;;  %v1300_v49 = vand.u32 4294901760, %v1299_v32  ;;  %v1312_v26 = vand.u32 4294901760, %v1311_v21  ;;  %v9018_v32 = vld [vmem:[#allocation25_spill] sm:$0xff] }
  0xc4   :  { %1116 = vmatmul.mubr.f32.vlgmr.msra.gmra.mxu0 %v9014_v19  ;;  %1277 = vmatpush1.msra.mxu1 %v1276_v20  ;;  %v9017_v20 = vld [vmem:[#allocation17_spill] sm:$0xff]  ;;  %v9023_v19 = vld [vmem:[#allocation20_spill] sm:$0xff] }
  0xc5   :  { %1359 = vmatpush1.msra.mxu0 %v5331_v25  ;;  %1283 = vmatprep.subr.mxu1 %v1282_v12  ;;  %v9019_v12 = vld [vmem:[#allocation16_spill] sm:$0xff]  ;;  %v9022_v21 = vld [vmem:[#allocation21_spill] sm:$0xff] }
  0xc6   :  { %1362 = vmatprep.subr.mxu0 %v5362_v24  ;;  %1289 = vmatpush1.msra.mxu1 %v1288_v59  ;;  %v9021_v59 = vld [vmem:[#allocation18_spill] sm:$0xff] }
  0xc7   :  { %1365 = vmatpush1.msra.mxu0 %v5342_v47  ;;  %1295 = vmatprep.subr.mxu1 %v1294_v48  ;;  %v9024_v48 = vld [vmem:[#allocation23_spill] sm:$0xff] }
  0xc8   :  { %1368 = vmatprep.subr.mxu0 %v5371_v38  ;;  %1301 = vmatpush1.msra.mxu1 %v1300_v49  ;;  %v9025_v49 = vld [vmem:[#allocation22_spill] sm:$0xff] }
  0xc9   :  { %1371 = vmatpush1.msra.mxu0 %v5377_v41  ;;  %1307 = vmatprep.subr.mxu1 %v1306_v33  ;;  %v9026_v33 = vld [vmem:[#allocation24_spill] sm:$0xff] }
  0xca   :  { %1374 = vmatprep.subr.mxu0 %v5417_v17  ;;  %1313 = vmatpush1.msra.mxu1 %v1312_v26  ;;  %v9027_v26 = vld [vmem:[#allocation29_spill] sm:$0xff] }
  0xcb   :  { %1377 = vmatpush1.msra.mxu0 %v5385_v46  ;;  %1346 = vmatprep.mubr.f32.mxu1 %v8915_v34 }
  0xcc   :  { %1380 = vmatprep.subr.mxu0 %v5437_v39  ;;  %1492 = vmatprep.subr.mxu1 %v5312_v43 }
  0xcd   :  { %1348 = vmatmul.mubr.f32.vlgmr.msra.gmra.mxu1 %v8978_v3  ;;  %1383 = vmatpush1.msra.mxu0 %v5423_v56  ;;  %v9031_v3 = vld [vmem:[#allocation31_spill] sm:$0xff] }
  0xce   :  { %1494 = vmatpush1.msra.mxu1 %v5314_v16  ;;  %1386 = vmatprep.subr.mxu0 %v5449_v35 }
  0xcf   :  { %1496 = vmatprep.subr.mxu1 %v5333_v50  ;;  %1389 = vmatpush1.msra.mxu0 %v5431_v9 }
  0xd0   :  { %1498 = vmatpush1.msra.mxu1 %v5319_v58  ;;  %1392 = vmatprep.subr.mxu0 %v5486_v53 }
  0xd1   :  { %1500 = vmatprep.subr.mxu1 %v5344_v51  ;;  %1395 = vmatpush1.msra.mxu0 %v5465_v37 }
  0xd2   :  { %1502 = vmatpush1.msra.mxu1 %v9015_v13  ;;  %1398 = vmatprep.subr.mxu0 %v9016_v18 }
  0xd3   :  { %1504 = vmatprep.subr.mxu1 %v9017_v20  ;;  %1401 = vmatpush1.msra.mxu0 %v9018_v32 }
  0xd4   :  { %1506 = vmatpush1.msra.mxu1 %v9019_v12  ;;  %1404 = vmatprep.subr.mxu0 %v5555_v11 }
  0xd5   :  { %1508 = vmatprep.subr.mxu1 %v9020_v28  ;;  %1407 = vmatpush1.msra.mxu0 %v5530_v57 }
  0xd6   :  { %1510 = vmatpush1.msra.mxu1 %v9021_v59  ;;  %1410 = vmatprep.subr.mxu0 %v5576_v40 }
  0xd7   :  { %1512 = vmatprep.subr.mxu1 %v9022_v21  ;;  %1413 = vmatpush1.msra.mxu0 %v5541_v55 }
  0xd8   :  { %1514 = vmatpush1.msra.mxu1 %v9023_v19  ;;  %1416 = vmatprep.subr.mxu0 %v5600_v2 }
  0xd9   :  { %1516 = vmatprep.subr.mxu1 %v9024_v48  ;;  %1419 = vmatpush1.msra.mxu0 %v5604_v61 }
  0xda   :  { %1518 = vmatpush1.msra.mxu1 %v9025_v49  ;;  %1422 = vmatprep.subr.mxu0 %v5619_v23 }
  0xdb   :  { %1520 = vmatprep.subr.mxu1 %v9026_v33  ;;  %1425 = vmatpush1.msra.mxu0 %v5607_v27  ;;  %v9032_v27 = vld [vmem:[#allocation37_spill] sm:$0xff] }
  0xdc   :  { %1522 = vmatpush1.msra.mxu1 %v9027_v26  ;;  %1428 = vmatprep.subr.mxu0 %v5636_v0 }
  0xdd   :  { %1524 = vmatprep.subr.mxu1 %v9028_v31  ;;  %1431 = vmatpush1.msra.mxu0 %v5624_v8 }
  0xde   :  { %1526 = vmatpush1.msra.mxu1 %v9029_v4  ;;  %1434 = vmatprep.subr.mxu0 %v5663_v22 }
  0xdf   :  { %1528 = vmatprep.subr.mxu1 %v9030_v6  ;;  %1437 = vmatpush1.msra.mxu0 %v5650_v42 }
  0xe0   :  { %1530 = vmatpush1.msra.mxu1 %v9031_v3  ;;  %1440 = vmatprep.subr.mxu0 %v5677_v14  ;;  %v9033_v14 = vand.u32 4294901760, %v5336_v63  ;;  %v9040_v63 = vand.u32 4294901760, %v5417_v17  ;;  %v9044_v17 = vand.u32 4294901760, %v5423_v56 }
  0xe1   :  { %1532 = vmatprep.subr.mxu1 %v9032_v27  ;;  %1443 = vmatpush1.msra.mxu0 %v5681_v15  ;;  %v9034_v27 = vld [vmem:[#allocation34_spill] sm:$0xff] }
  0xe2   :  { %1534 = vmatpush1.msra.mxu1 %v5561_v45  ;;  %1446 = vmatprep.subr.mxu0 %v5693_v60  ;;  %v9035_v45 = vand.u32 4294901760, %v5331_v25  ;;  %v9039_v25 = vand.u32 4294901760, %v5377_v41  ;;  %v9043_v41 = vld [vmem:[#allocation35_spill] sm:$0xff] }
  0xe3   :  { %1536 = vmatprep.subr.mxu1 %v5573_v54  ;;  %1449 = vmatpush1.msra.mxu0 %v5697_v7  ;;  %v9036_v7 = vand.u32 4294901760, %v5362_v24  ;;  %v1904_v24 = vld [vmem:[#allocation8 + $0xf8] sm:$0xff] }
  0xe4   :  { %1538 = vmatpush1.msra.mxu1 %v5563_v36  ;;  %1482 = vmatprep.mubr.f32.mxu0 %v8915_v34  ;;  %v9037_v36 = vand.u32 4294901760, %v5342_v47  ;;  %v9041_v47 = vand.u32 4294901760, %v5385_v46  ;;  %v1901_v46 = vld [vmem:[#allocation8 + $0xe0] sm:$0xff] }
  0xe5   :  { %1540 = vmatprep.subr.mxu1 %v5596_v5  ;;  %1600 = vmatprep.subr.mxu0 %v9033_v14  ;;  %v9038_v14 = vand.u32 4294901760, %v5371_v38  ;;  %v1903_v38 = vld [vmem:[#allocation8 + $0xf0] sm:$0xff] }
  0xe6   :  { %1485 = vmatmul.mubr.f32.vlgmr.msra.gmra.mxu0 %v9034_v27  ;;  %1542 = vmatpush1.msra.mxu1 %v5588_v30  ;;  %v5829_v27 = vand.u32 4294901760, %v1904_v24 }
  0xe7   :  { %1604 = vmatpush1.msra.mxu0 %v9035_v45  ;;  %1544 = vmatprep.subr.mxu1 %v5626_v62  ;;  %v9042_v45 = vand.u32 4294901760, %v5437_v39  ;;  %v5834_v39 = vand.u32 4294901760, %v1903_v38 }
  0xe8   :  { %1608 = vmatprep.subr.mxu0 %v9036_v7  ;;  %1546 = vmatpush1.msra.mxu1 %v5616_v29  ;;  %9045 = vst [vmem:[#allocation38_spill] sm:$0xff] %v5829_v27  ;;  %v1900_v7 = vld [vmem:[#allocation8 + $0xd8] sm:$0xff] }
  0xe9   :  { %1612 = vmatpush1.msra.mxu0 %v9037_v36  ;;  %1548 = vmatprep.subr.mxu1 %v5642_v44  ;;  %v1902_v36 = vld [vmem:[#allocation8 + $0xe8] sm:$0xff] }
  0xea   :  { %1616 = vmatprep.subr.mxu0 %v9038_v14  ;;  %1550 = vmatpush1.msra.mxu1 %v5652_v52  ;;  %v9046_v14 = vand.u32 4294901760, %v5449_v35  ;;  %v5839_v56 = vand.u32 4294901760, %v1902_v36  ;;  %v5846_v35 = vand.u32 4294901760, %v1900_v7 }
  0xeb   :  { %1620 = vmatpush1.msra.mxu0 %v9039_v25  ;;  %1552 = vmatprep.subr.mxu1 %v5659_v10  ;;  %v9047_v25 = vand.u32 4294901760, %v5431_v9  ;;  %v5852_v9 = vsub.f32 %v1904_v24, %v5829_v27  ;;  %v1896_v24 = vld [vmem:[#allocation8 + $0xb8] sm:$0xff] }
  0xec   :  { %1624 = vmatprep.subr.mxu0 %v9040_v63  ;;  %1554 = vmatpush1.msra.mxu1 %v5669_v1  ;;  %v5844_v63 = vand.u32 4294901760, %v1901_v46  ;;  %9050 = vst [vmem:[#allocation36_spill] sm:$0xff] %v5846_v35 }
  0xed   :  { %1628 = vmatpush1.msra.mxu0 %v9041_v47  ;;  %1587 = vmatprep.mubr.f32.mxu1 %v8915_v34  ;;  %v9051_v47 = vand.u32 4294901760, %v5465_v37  ;;  %9052 = vst [vmem:[#allocation17_spill] sm:$0xff] %v5852_v9  ;;  %v5866_v37 = vsub.f32 %v1902_v36, %v5839_v56  ;;  %v9062_v36 = vand.u32 4294901760, %v5530_v57  ;;  %v1892_v57 = vld [vmem:[#allocation8 + $0x98] sm:$0xff] }
  0xee   :  { %1632 = vmatprep.subr.mxu0 %v9042_v45  ;;  %1766 = vmatprep.subr.mxu1 %v5312_v43  ;;  %v1899_v43 = vld [vmem:[#allocation8 + $0xd0] sm:$0xff]  ;;  %9049 = vst [vmem:[#allocation15_spill] sm:$0xff] %v5844_v63  ;;  %v1897_v45 = vld [vmem:[#allocation8 + $0xc0] sm:$0xff] }
  0xef   :  { %1591 = vmatmul.mubr.f32.vlgmr.msra.gmra.mxu1 %v9043_v41  ;;  %1636 = vmatpush1.msra.mxu0 %v9044_v17  ;;  %v9056_v41 = vand.u32 4294901760, %v9018_v32  ;;  %9057 = vst [vmem:[#allocation19_spill] sm:$0xff] %v5866_v37  ;;  %v1895_v17 = vld [vmem:[#allocation8 + $0xb0] sm:$0xff]  ;;  %v5877_v32 = vsub.f32 %v1900_v7, %v5846_v35 }
  0xf0   :  { %1768 = vmatpush1.msra.mxu1 %v5314_v16  ;;  %1640 = vmatprep.subr.mxu0 %v9046_v14  ;;  %v9048_v16 = vand.u32 4294901760, %v5486_v53  ;;  %v9054_v53 = vand.u32 4294901760, %v9016_v18  ;;  %v9059_v18 = vand.u32 4294901760, %v5555_v11  ;;  %v8470_v14 = vand.u32 4294901760, %v5852_v9 }
  0xf1   :  { %1770 = vmatprep.subr.mxu1 %v5333_v50  ;;  %1644 = vmatpush1.msra.mxu0 %v9047_v25  ;;  %v1898_v50 = vld [vmem:[#allocation8 + $0xc8] sm:$0xff]  ;;  %9061 = vst [vmem:[#allocation20_spill] sm:$0xff] %v5877_v32  ;;  %v5892_v25 = vand.u32 4294901760, %v1896_v24 }
  0xf2   :  { %1772 = vmatpush1.msra.mxu1 %v5319_v58  ;;  %1648 = vmatprep.subr.mxu0 %v9048_v16  ;;  %v5854_v58 = vand.u32 4294901760, %v1899_v43  ;;  %v5894_v16 = vand.u32 4294901760, %v1895_v17 }
  0xf3   :  { %1774 = vmatprep.subr.mxu1 %v5344_v51  ;;  %1652 = vmatpush1.msra.mxu0 %v9051_v47  ;;  %v5860_v51 = vsub.f32 %v1903_v38, %v5834_v39  ;;  %v5879_v38 = vand.u32 4294901760, %v1897_v45  ;;  %9065 = vst [vmem:[#allocation22_spill] sm:$0xff] %v5892_v25  ;;  %v1891_v47 = vld [vmem:[#allocation8 + $0x90] sm:$0xff] }
  0xf4   :  { %1776 = vmatpush1.msra.mxu1 %v9015_v13  ;;  %9053 = vst [vmem:[#allocation25_spill] sm:$0xff] %v5854_v58  ;;  %1656 = vmatprep.subr.mxu0 %v9054_v53  ;;  %v5868_v13 = vand.u32 4294901760, %v1898_v50  ;;  %v5886_v11 = vsub.f32 %v1899_v43, %v5854_v58  ;;  %v8473_v43 = vand.u32 4294901760, %v5866_v37 }
  0xf5   :  { %1778 = vmatprep.subr.mxu1 %v9017_v20  ;;  %9055 = vst [vmem:[#allocation16_spill] sm:$0xff] %v5860_v51  ;;  %1660 = vmatpush1.msra.mxu0 %v9056_v41  ;;  %v5874_v20 = vsub.f32 %v1901_v46, %v5844_v63  ;;  %v9064_v46 = vand.u32 4294901760, %v5576_v40  ;;  %v8474_v7 = vand.u32 4294901760, %v5860_v51 }
  0xf6   :  { %1780 = vmatpush1.msra.mxu1 %v9019_v12  ;;  %9058 = vst [vmem:[#allocation18_spill] sm:$0xff] %v5868_v13  ;;  %1664 = vmatprep.subr.mxu0 %v9059_v18  ;;  %v1894_v12 = vld [vmem:[#allocation8 + $0xa8] sm:$0xff]  ;;  %9063 = vst [vmem:[#allocation23_spill] sm:$0xff] %v5886_v11  ;;  %v5901_v40 = vsub.f32 %v1898_v50, %v5868_v13  ;;  %v8472_v18 = vand.u32 4294901760, %v5877_v32  ;;  %v9070_v50 = vand.u32 4294901760, %v5604_v61 }
  0xf7   :  { %1782 = vmatprep.subr.mxu1 %v9020_v28  ;;  %9060 = vst [vmem:[#allocation21_spill] sm:$0xff] %v5874_v20  ;;  %1668 = vmatpush1.msra.mxu0 %v9062_v36  ;;  %v1893_v28 = vld [vmem:[#allocation8 + $0xa0] sm:$0xff]  ;;  %v5903_v53 = vand.u32 4294901760, %v1894_v12  ;;  %v8471_v41 = vand.u32 4294901760, %v5874_v20  ;;  %v1890_v36 = vld [vmem:[#allocation8 + $0x88] sm:$0xff]  ;;  %v5934_v61 = vsub.f32 %v5860_v51, %v8474_v7  ;;  %v9084_v7 = vand.u32 4294901760, %v5663_v22 }
  0xf8   :  { %1784 = vmatpush1.msra.mxu1 %v9021_v59  ;;  %1672 = vmatprep.subr.mxu0 %v9064_v46  ;;  %v9066_v59 = vand.u32 4294901760, %v5541_v55  ;;  %9067 = vst [vmem:[#allocation24_spill] sm:$0xff] %v5901_v40  ;;  %v5911_v55 = vsub.f32 %v1897_v45, %v5879_v38  ;;  %v5924_v46 = vand.u32 4294901760, %v1892_v57  ;;  %v9071_v45 = vand.u32 4294901760, %v5619_v23  ;;  %v1875_v51 = vld [vmem:[#allocation8 + $0x10] sm:$0xff] }
  0xf9   :  { %1786 = vmatprep.subr.mxu1 %v9022_v21  ;;  %v9068_v21 = vand.u32 4294901760, %v5600_v2  ;;  %v5921_v2 = vsub.f32 %v5852_v9, %v8470_v14  ;;  %v9074_v14 = vld [vmem:[#allocation39_spill] sm:$0xff]  ;;  %v5948_v23 = vsub.f32 %v5866_v37, %v8473_v43  ;;  %1757 = vmatprep.mubr.f32.mxu0 %v8915_v34 }
  0xfa   :  { %1676 = vmatpush1.msra.mxu0 %v9066_v59  ;;  %1788 = vmatpush1.msra.mxu1 %v9023_v19  ;;  %9069 = vst [vmem:[#allocation29_spill] sm:$0xff] %v5911_v55  ;;  %v5913_v19 = vand.u32 4294901760, %v1893_v28  ;;  %v5926_v59 = vand.u32 4294901760, %v1891_v47 }
  0xfb   :  { %1680 = vmatprep.subr.mxu0 %v9068_v21  ;;  %1790 = vmatprep.subr.mxu1 %v9024_v48  ;;  %v5940_v21 = vsub.f32 %v1895_v17, %v5894_v16  ;;  %v9075_v48 = vand.u32 4294901760, %v9074_v14  ;;  %v9077_v17 = vand.u32 4294901760, %v5636_v0  ;;  %v5967_v14 = vsub.f32 %v5877_v32, %v8472_v18  ;;  %v1881_v32 = vld [vmem:[#allocation8 + $0x40] sm:$0xff] }
  0xfc   :  { %1684 = vmatpush1.msra.mxu0 %v9070_v50  ;;  %1792 = vmatpush1.msra.mxu1 %v9025_v49  ;;  %v5937_v49 = vsub.f32 %v1896_v24, %v5892_v25  ;;  %v1889_v50 = vld [vmem:[#allocation8 + $0x80] sm:$0xff]  ;;  %v5954_v24 = vand.u32 4294901760, %v1890_v36  ;;  %v9079_v0 = vand.u32 4294901760, %v5624_v8  ;;  %v5985_v18 = vsub.f32 %v1891_v47, %v5926_v59  ;;  %v9087_v8 = vld [vmem:[#allocation40_spill] sm:$0xff] }
  0xfd   :  { %1688 = vmatprep.subr.mxu0 %v9071_v45  ;;  %1794 = vmatprep.subr.mxu1 %v9026_v33  ;;  %9073 = vst [vmem:[#allocation30_spill] sm:$0xff] %v5940_v21  ;;  %v8475_v33 = vand.u32 4294901760, %v5901_v40  ;;  %v5952_v45 = vsub.f32 %v1894_v12, %v5903_v53  ;;  %v8476_v12 = vand.u32 4294901760, %v5911_v55  ;;  %v5987_v43 = vand.u32 4294901760, %v1889_v50 }
  0xfe   :  { %9072 = vst [vmem:[#allocation32_spill] sm:$0xff] %v5937_v49  ;;  %1692 = vmatpush1.msra.mxu0 %v9075_v48  ;;  %1796 = vmatpush1.msra.mxu1 %v9027_v26  ;;  %v5962_v26 = vsub.f32 %v5874_v20, %v8471_v41  ;;  %v5971_v48 = vsub.f32 %v1893_v28, %v5913_v19  ;;  %9082 = vst [vmem:[#allocation35_spill] sm:$0xff] %v5985_v18  ;;  %v1888_v28 = vld [vmem:[#allocation8 + $0x78] sm:$0xff]  ;;  %v6115_v37 = vand.u32 4294901760, %v1881_v32 }
  0xff   :  { %9076 = vst [vmem:[#allocation26_spill] sm:$0xff] %v5952_v45  ;;  %1696 = vmatprep.subr.mxu0 %v9077_v17  ;;  %1798 = vmatprep.subr.mxu1 %v9028_v31  ;;  %v9080_v31 = vand.u32 4294901760, %v5886_v11  ;;  %v5982_v41 = vsub.f32 %v1892_v57, %v5924_v46  ;;  %9083 = vst [vmem:[#allocation39_spill] sm:$0xff] %v5987_v43  ;;  %v6003_v22 = vsub.f32 %v5901_v40, %v8475_v33  ;;  %v9103_v40 = vld [vmem:[#allocation33_spill] sm:$0xff] }
 0x100   :  { %9078 = vst [vmem:[#allocation31_spill] sm:$0xff] %v5971_v48  ;;  %1700 = vmatpush1.msra.mxu0 %v9079_v0  ;;  %1800 = vmatpush1.msra.mxu1 %v9029_v4  ;;  %v1887_v4 = vld [vmem:[#allocation8 + $0x70] sm:$0xff]  ;;  %v9088_v57 = vand.u32 4294901760, %v9087_v8  ;;  %v6019_v47 = vand.u32 4294901760, %v1888_v28  ;;  %v9094_v33 = vand.u32 4294901760, %v5693_v60  ;;  %v9096_v8 = vand.u32 4294901760, %v5940_v21 }
 0x101   :  { %v5979_v17 = vsub.f32 %v5886_v11, %v9080_v31  ;;  %9081 = vst [vmem:[#allocation34_spill] sm:$0xff] %v5982_v41  ;;  %1704 = vmatprep.subr.mxu0 %v9084_v7  ;;  %1802 = vmatprep.subr.mxu1 %v9030_v6  ;;  %v9085_v31 = vand.u32 4294901760, %v5650_v42  ;;  %v6007_v7 = vsub.f32 %v1890_v36, %v5954_v24  ;;  %v9089_v42 = vld [vmem:[#allocation37_spill] sm:$0xff]  ;;  %v1886_v6 = vld [vmem:[#allocation8 + $0x68] sm:$0xff]  ;;  %v9091_v36 = vand.u32 4294901760, %v5681_v15  ;;  %v9092_v0 = vld [vmem:[#allocation27_spill] sm:$0xff] }
 0x102   :  { %1804 = vmatpush1.msra.mxu1 %v9031_v3  ;;  %9090 = vst [vmem:[#allocation40_spill] sm:$0xff] %v6019_v47  ;;  %v6028_v3 = vsub.f32 %v1889_v50, %v5987_v43  ;;  %v6044_v50 = vand.u32 4294901760, %v1887_v4  ;;  %v6067_v11 = vsub.f32 %v1888_v28, %v6019_v47  ;;  %v1882_v15 = vld [vmem:[#allocation8 + $0x48] sm:$0xff]  ;;  %1861 = vmatprep.mubr.f32.mxu1 %v8915_v34  ;;  %9116 = vst [vmem:[#allocation49_spill] sm:$0xff] %v6115_v37 }
 0x103   :  { %1708 = vmatpush1.msra.mxu0 %v9085_v31  ;;  %9086 = vst [vmem:[#allocation42_spill] sm:$0xff] %v6007_v7  ;;  %1806 = vmatprep.subr.mxu1 %v9089_v42  ;;  %v6016_v31 = vsub.f32 %v5911_v55, %v8476_v12  ;;  %v1885_v12 = vld [vmem:[#allocation8 + $0x60] sm:$0xff]  ;;  %v6042_v42 = vsub.f32 %v5940_v21, %v9096_v8  ;;  %v1883_v8 = vld [vmem:[#allocation8 + $0x50] sm:$0xff]  ;;  %v9102_v21 = vld [vmem:[#allocation28_spill] sm:$0xff] }
 0x104   :  { %1712 = vmatprep.subr.mxu0 %v9088_v57  ;;  %1808 = vmatpush1.msra.mxu1 %v9092_v0  ;;  %9093 = vst [vmem:[#allocation37_spill] sm:$0xff] %v6028_v3  ;;  %9097 = vst [vmem:[#allocation27_spill] sm:$0xff] %v6044_v50  ;;  %v1884_v57 = vld [vmem:[#allocation8 + $0x58] sm:$0xff]  ;;  %v9098_v55 = vld [vmem:[#allocation41_spill] sm:$0xff] }
 0x105   :  { %1716 = vmatpush1.msra.mxu0 %v9091_v36  ;;  %1810 = vmatprep.subr.mxu1 %v5573_v54  ;;  %v9095_v36 = vand.u32 4294901760, %v5937_v49  ;;  %v9099_v60 = vand.u32 4294901760, %v9098_v55  ;;  %9105 = vst [vmem:[#allocation28_spill] sm:$0xff] %v6067_v11  ;;  %v9108_v55 = vand.u32 4294901760, %v5985_v18 }
 0x106   :  { %1720 = vmatprep.subr.mxu0 %v9094_v33  ;;  %v9100_v33 = vand.u32 4294901760, %v5952_v45  ;;  %1812 = vmatpush1.msra.mxu1 %v9102_v21  ;;  %v9107_v21 = vand.u32 4294901760, %v5982_v41 }
 0x107   :  { %v6037_v0 = vsub.f32 %v5937_v49, %v9095_v36  ;;  %1724 = vmatpush1.msra.mxu0 %v9099_v60  ;;  %v6056_v49 = vand.u32 4294901760, %v1886_v6  ;;  %v9104_v60 = vand.u32 4294901760, %v5971_v48  ;;  %1814 = vmatprep.subr.mxu1 %v5596_v5  ;;  %v6106_v5 = vand.u32 4294901760, %v1882_v15 }
 0x108   :  { %v6053_v36 = vsub.f32 %v5952_v45, %v9100_v33  ;;  %1759 = vmatmul.mubr.f32.vlgmr.msra.gmra.mxu0 %v9103_v40  ;;  %v6069_v33 = vand.u32 4294901760, %v1885_v12  ;;  %v6076_v45 = vsub.f32 %v5982_v41, %v9107_v21  ;;  %1816 = vmatpush1.msra.mxu1 %v5588_v30  ;;  %v6091_v21 = vsub.f32 %v1887_v4, %v6044_v50  ;;  %v1879_v4 = vld [vmem:[#allocation8 + $0x30] sm:$0xff] }
 0x109   :  { %9101 = vst [vmem:[#allocation41_spill] sm:$0xff] %v6056_v49  ;;  %v6064_v54 = vsub.f32 %v5971_v48, %v9104_v60  ;;  %v6081_v60 = vsub.f32 %v5985_v18, %v9108_v55  ;;  %v6084_v48 = vand.u32 4294901760, %v1884_v57  ;;  %2014 = vmatprep.subr.mxu0 %v5829_v27  ;;  %v6093_v41 = vand.u32 4294901760, %v1883_v8  ;;  %v1880_v55 = vld [vmem:[#allocation8 + $0x38] sm:$0xff]  ;;  %1818 = vmatprep.subr.mxu1 %v5626_v62 }
 0x10a   :  { %9106 = vst [vmem:[#allocation33_spill] sm:$0xff] %v6069_v33  ;;  %9110 = vst [vmem:[#allocation44_spill] sm:$0xff] %v6091_v21  ;;  %2016 = vmatpush1.msra.mxu0 %v5834_v39  ;;  %v9112_v30 = vand.u32 4294901760, %v6007_v7  ;;  %v6104_v34 = vsub.f32 %v1886_v6, %v6056_v49  ;;  %1820 = vmatpush1.msra.mxu1 %v5616_v29  ;;  %v6113_v28 = vsub.f32 %v1885_v12, %v6069_v33  ;;  %v1877_v12 = vld [vmem:[#allocation8 + $0x20] sm:$0xff] }
 0x10b   :  { %9109 = vst [vmem:[#allocation43_spill] sm:$0xff] %v6084_v48  ;;  %9111 = vst [vmem:[#allocation45_spill] sm:$0xff] %v6093_v41  ;;  %2018 = vmatprep.subr.mxu0 %v5839_v56  ;;  %1822 = vmatprep.subr.mxu1 %v5642_v44  ;;  %v9117_v29 = vand.u32 4294901760, %v6028_v3  ;;  %v6126_v62 = vsub.f32 %v1884_v57, %v6084_v48  ;;  %v6128_v20 = vand.u32 4294901760, %v1880_v55 }
 0x10c   :  { %v6101_v18 = vsub.f32 %v6007_v7, %v9112_v30  ;;  %9113 = vst [vmem:[#allocation46_spill] sm:$0xff] %v6104_v34  ;;  %9114 = vst [vmem:[#allocation47_spill] sm:$0xff] %v6106_v5  ;;  %v1878_v30 = vld [vmem:[#allocation8 + $0x28] sm:$0xff]  ;;  %2020 = vmatpush1.msra.mxu0 %v5844_v63  ;;  %1824 = vmatpush1.msra.mxu1 %v5652_v52  ;;  %v6135_v6 = vsub.f32 %v1883_v8, %v6093_v41  ;;  %v6137_v63 = vand.u32 4294901760, %v1879_v4 }
 0x10d   :  { %9115 = vst [vmem:[#allocation48_spill] sm:$0xff] %v6113_v28  ;;  %v6123_v7 = vsub.f32 %v6028_v3, %v9117_v29  ;;  %9118 = vst [vmem:[#allocation50_spill] sm:$0xff] %v6126_v62  ;;  %2022 = vmatprep.subr.mxu0 %v5846_v35  ;;  %v1876_v29 = vld [vmem:[#allocation8 + $0x18] sm:$0xff]  ;;  %1826 = vmatprep.subr.mxu1 %v5659_v10  ;;  %v6144_v3 = vsub.f32 %v1882_v15, %v6106_v5  ;;  %v6146_v44 = vand.u32 4294901760, %v1878_v30  ;;  %v1874_v15 = vld [vmem:[#allocation8 + $0x8] sm:$0xff] }
 0x10e   :  { %9119 = vst [vmem:[#allocation51_spill] sm:$0xff] %v6128_v20  ;;  %9120 = vst [vmem:[#allocation52_spill] sm:$0xff] %v6135_v6  ;;  %2024 = vmatpush1.msra.mxu0 %v5854_v58  ;;  %1828 = vmatpush1.msra.mxu1 %v5669_v1  ;;  %v9123_v8 = vand.u32 4294901760, %v6067_v11  ;;  %v6157_v57 = vsub.f32 %v1881_v32, %v6115_v37  ;;  %v6159_v52 = vand.u32 4294901760, %v1877_v12  ;;  %v9126_v35 = vand.u32 4294901760, %v5921_v2 }
 0x10f   :  { %9121 = vst [vmem:[#allocation53_spill] sm:$0xff] %v6137_v63  ;;  %9122 = vst [vmem:[#allocation54_spill] sm:$0xff] %v6144_v3  ;;  %2026 = vmatprep.subr.mxu0 %v5868_v13  ;;  %1863 = vmatmul.mubr.f32.vlgmr.msra.gmra.mxu1 %v9103_v40  ;;  %v9129_v32 = vand.u32 4294901760, %v5934_v61  ;;  %v9130_v58 = vand.u32 4294901760, %v6091_v21  ;;  %v6181_v2 = vsub.f32 %v1879_v4, %v6137_v63  ;;  %v6183_v1 = vand.u32 4294901760, %v1875_v51 }
 0x110   :  { %v6153_v10 = vsub.f32 %v6067_v11, %v9123_v8  ;;  %9124 = vst [vmem:[#allocation55_spill] sm:$0xff] %v6157_v57  ;;  %9125 = vst [vmem:[#allocation56_spill] sm:$0xff] %v6159_v52  ;;  %2163 = vmatprep.subr.mxu1 %v9126_v35  ;;  %v6167_v8 = vsub.f32 %v1880_v55, %v6128_v20  ;;  %v6169_v11 = vand.u32 4294901760, %v1876_v29  ;;  %2028 = vmatpush1.msra.mxu0 %v5879_v38  ;;  %v1873_v55 = vld [vmem:[#allocation8] sm:$0xff] }
 0x111   :  { %2169 = vmatpush1.msra.mxu1 %v9129_v32  ;;  %v6177_v40 = vsub.f32 %v6091_v21, %v9130_v58  ;;  %9131 = vst [vmem:[#allocation59_spill] sm:$0xff] %v6181_v2  ;;  %9132 = vst [vmem:[#allocation60_spill] sm:$0xff] %v6183_v1  ;;  %v9133_v13 = vand.u32 4294901760, %v5948_v23  ;;  %2030 = vmatprep.subr.mxu0 %v5892_v25  ;;  %v9134_v61 = vand.u32 4294901760, %v6104_v34  ;;  %v6197_v4 = vand.u32 4294901760, %v1874_v15  ;;  %v1935_v23 = vld [vmem:[#allocation8 + $0x1f0] sm:$0xff] }
 0x112   :  { %9127 = vst [vmem:[#allocation57_spill] sm:$0xff] %v6167_v8  ;;  %9128 = vst [vmem:[#allocation58_spill] sm:$0xff] %v6169_v11  ;;  %v6195_v35 = vsub.f32 %v1878_v30, %v6146_v44  ;;  %v9137_v21 = vand.u32 4294901760, %v5962_v26  ;;  %2032 = vmatpush1.msra.mxu0 %v5894_v16  ;;  %v6210_v58 = vsub.f32 %v1877_v12, %v6159_v52  ;;  %v9140_v30 = vand.u32 4294901760, %v5967_v14 }
 0x113   :  { %2175 = vmatprep.subr.mxu1 %v9133_v13  ;;  %v6191_v32 = vsub.f32 %v6104_v34, %v9134_v61  ;;  %9136 = vst [vmem:[#allocation62_spill] sm:$0xff] %v6197_v4  ;;  %v9138_v13 = vand.u32 4294901760, %v6113_v28  ;;  %2034 = vmatprep.subr.mxu0 %v5903_v53  ;;  %v9141_v26 = vand.u32 4294901760, %v6126_v62  ;;  %v1936_v61 = vld [vmem:[#allocation8 + $0x1f8] sm:$0xff]  ;;  %v9144_v12 = vand.u32 4294901760, %v5979_v17 }
 0x114   :  { %9135 = vst [vmem:[#allocation61_spill] sm:$0xff] %v6195_v35  ;;  %2181 = vmatpush1.msra.mxu1 %v9137_v21  ;;  %9139 = vst [vmem:[#allocation63_spill] sm:$0xff] %v6210_v58  ;;  %2036 = vmatpush1.msra.mxu0 %v5913_v19  ;;  %v9156_v34 = vand.u32 4294901760, %v6042_v42 }
 0x115   :  { %v6206_v25 = vsub.f32 %v6113_v28, %v9138_v13  ;;  %2187 = vmatprep.subr.mxu1 %v9140_v30  ;;  %v6218_v21 = vsub.f32 %v6126_v62, %v9141_v26  ;;  %v6222_v13 = vsub.f32 %v1876_v29, %v6169_v11  ;;  %v6224_v28 = vand.u32 4294901760, %v1873_v55  ;;  %2038 = vmatprep.subr.mxu0 %v5924_v46 }
 0x116   :  { %2193 = vmatpush1.msra.mxu1 %v9144_v12  ;;  %v9145_v30 = vand.u32 4294901760, %v6135_v6  ;;  %v6237_v29 = vsub.f32 %v1875_v51, %v6183_v1  ;;  %v9147_v62 = vand.u32 4294901760, %v6003_v22  ;;  %v9148_v12 = vand.u32 4294901760, %v6144_v3  ;;  %2040 = vmatpush1.msra.mxu0 %v5926_v59 }
 0x117   :  { %9142 = vst [vmem:[#allocation64_spill] sm:$0xff] %v6222_v13  ;;  %9143 = vst [vmem:[#allocation65_spill] sm:$0xff] %v6224_v28  ;;  %v9150_v51 = vand.u32 4294901760, %v6016_v31  ;;  %2042 = vmatprep.subr.mxu0 %v5954_v24 }
 0x118   :  { %v6233_v26 = vsub.f32 %v6135_v6, %v9145_v30  ;;  %9146 = vst [vmem:[#allocation66_spill] sm:$0xff] %v6237_v29  ;;  %2199 = vmatprep.subr.mxu1 %v9147_v62  ;;  %v6246_v14 = vsub.f32 %v6144_v3, %v9148_v12  ;;  %v6250_v6 = vsub.f32 %v1874_v15, %v6197_v4  ;;  %v9151_v62 = vand.u32 4294901760, %v6157_v57  ;;  %v1934_v30 = vld [vmem:[#allocation8 + $0x1e8] sm:$0xff]  ;;  %v1933_v12 = vld [vmem:[#allocation8 + $0x1e0] sm:$0xff] }
 0x119   :  { %2205 = vmatpush1.msra.mxu1 %v9150_v51  ;;  %v6262_v3 = vand.u32 4294901760, %v1936_v61  ;;  %v9153_v15 = vand.u32 4294901760, %v6037_v0  ;;  %v9154_v51 = vand.u32 4294901760, %v6167_v8  ;;  %2044 = vmatpush1.msra.mxu0 %v5987_v43  ;;  %v9162_v43 = vand.u32 4294901760, %v6064_v54 }
 0x11a   :  { %9149 = vst [vmem:[#allocation67_spill] sm:$0xff] %v6250_v6  ;;  %v6259_v17 = vsub.f32 %v6157_v57, %v9151_v62  ;;  %v6275_v57 = vsub.f32 %v1873_v55, %v6224_v28  ;;  %v1932_v62 = vld [vmem:[#allocation8 + $0x1d8] sm:$0xff]  ;;  %v9159_v55 = vand.u32 4294901760, %v6053_v36  ;;  %2046 = vmatprep.subr.mxu0 %v6019_v47  ;;  %v9166_v47 = vand.u32 4294901760, %v6076_v45 }
 0x11b   :  { %9152 = vst [vmem:[#allocation68_spill] sm:$0xff] %v6262_v3  ;;  %2211 = vmatprep.subr.mxu1 %v9153_v15  ;;  %v6271_v22 = vsub.f32 %v6167_v8, %v9154_v51  ;;  %v9157_v15 = vand.u32 4294901760, %v6181_v2  ;;  %v6287_v8 = vand.u32 4294901760, %v1935_v23  ;;  %v1931_v51 = vld [vmem:[#allocation8 + $0x1d0] sm:$0xff]  ;;  %2048 = vmatpush1.msra.mxu0 %v6044_v50  ;;  %v9167_v54 = vand.u32 4294901760, %v6222_v13 }
 0x11c   :  { %9155 = vst [vmem:[#allocation69_spill] sm:$0xff] %v6275_v57  ;;  %2217 = vmatpush1.msra.mxu1 %v9156_v34  ;;  %v9160_v34 = vand.u32 4294901760, %v6195_v35  ;;  %2050 = vmatprep.subr.mxu0 %v6056_v49  ;;  %v9169_v50 = vand.u32 4294901760, %v6081_v60  ;;  %v9173_v49 = vand.u32 4294901760, %v6101_v18  ;;  %v9174_v60 = vand.u32 4294901760, %v6250_v6 }
 0x11d   :  { %v6284_v31 = vsub.f32 %v6181_v2, %v9157_v15  ;;  %9158 = vst [vmem:[#allocation70_spill] sm:$0xff] %v6287_v8  ;;  %2223 = vmatprep.subr.mxu1 %v9159_v55  ;;  %v6299_v2 = vand.u32 4294901760, %v1934_v30  ;;  %v9163_v55 = vand.u32 4294901760, %v6210_v58  ;;  %v1930_v15 = vld [vmem:[#allocation8 + $0x1c8] sm:$0xff]  ;;  %v6322_v36 = vsub.f32 %v6222_v13, %v9167_v54  ;;  %2052 = vmatpush1.msra.mxu0 %v6069_v33 }
 0x11e   :  { %v6296_v0 = vsub.f32 %v6195_v35, %v9160_v34  ;;  %2229 = vmatpush1.msra.mxu1 %v9162_v43  ;;  %v6311_v34 = vsub.f32 %v1936_v61, %v6262_v3  ;;  %v6313_v35 = vand.u32 4294901760, %v1933_v12  ;;  %v1929_v61 = vld [vmem:[#allocation8 + $0x1c0] sm:$0xff]  ;;  %v6337_v54 = vsub.f32 %v1935_v23, %v6287_v8  ;;  %2054 = vmatprep.subr.mxu0 %v6084_v48 }
 0x11f   :  { %9161 = vst [vmem:[#allocation71_spill] sm:$0xff] %v6299_v2  ;;  %v6308_v42 = vsub.f32 %v6210_v58, %v9163_v55  ;;  %2235 = vmatprep.subr.mxu1 %v9166_v47  ;;  %v6325_v58 = vand.u32 4294901760, %v1932_v62  ;;  %v9170_v47 = vand.u32 4294901760, %v6237_v29  ;;  %v6339_v13 = vand.u32 4294901760, %v1931_v51  ;;  %v1928_v55 = vld [vmem:[#allocation8 + $0x1b8] sm:$0xff]  ;;  %2056 = vmatpush1.msra.mxu0 %v6093_v41 }
 0x120   :  { %9164 = vst [vmem:[#allocation72_spill] sm:$0xff] %v6311_v34  ;;  %9165 = vst [vmem:[#allocation73_spill] sm:$0xff] %v6313_v35  ;;  %2241 = vmatpush1.msra.mxu1 %v9169_v50  ;;  %v6348_v45 = vsub.f32 %v6250_v6, %v9174_v60  ;;  %v6353_v23 = vand.u32 4294901760, %v1930_v15  ;;  %v9177_v33 = vand.u32 4294901760, %v6123_v7  ;;  %v6361_v50 = vsub.f32 %v1933_v12, %v6313_v35  ;;  %v1926_v6 = vld [vmem:[#allocation8 + $0x1a8] sm:$0xff] }
 0x121   :  { %9168 = vst [vmem:[#allocation74_spill] sm:$0xff] %v6325_v58  ;;  %v6334_v43 = vsub.f32 %v6237_v29, %v9170_v47  ;;  %9171 = vst [vmem:[#allocation75_spill] sm:$0xff] %v6337_v54  ;;  %2247 = vmatprep.subr.mxu1 %v9173_v49  ;;  %v6351_v47 = vsub.f32 %v1934_v30, %v6299_v2  ;;  %v1927_v29 = vld [vmem:[#allocation8 + $0x1b0] sm:$0xff]  ;;  %v6363_v60 = vand.u32 4294901760, %v1929_v61  ;;  %v9180_v30 = vand.u32 4294901760, %v6153_v10  ;;  %v1925_v49 = vld [vmem:[#allocation8 + $0x1a0] sm:$0xff] }
 0x122   :  { %9172 = vst [vmem:[#allocation76_spill] sm:$0xff] %v6339_v13  ;;  %9176 = vst [vmem:[#allocation78_spill] sm:$0xff] %v6353_v23  ;;  %2253 = vmatpush1.msra.mxu1 %v9177_v33  ;;  %2058 = vmatprep.subr.mxu0 %v6106_v5  ;;  %v9181_v7 = vand.u32 4294901760, %v6275_v57  ;;  %v6375_v18 = vsub.f32 %v1932_v62, %v6325_v58  ;;  %v6377_v12 = vand.u32 4294901760, %v1928_v55  ;;  %v9184_v41 = vand.u32 4294901760, %v6177_v40 }
 0x123   :  { %9175 = vst [vmem:[#allocation77_spill] sm:$0xff] %v6351_v47  ;;  %9178 = vst [vmem:[#allocation79_spill] sm:$0xff] %v6361_v50  ;;  %2259 = vmatprep.subr.mxu1 %v9180_v30  ;;  %2060 = vmatpush1.msra.mxu0 %v6115_v37  ;;  %v6385_v48 = vsub.f32 %v1931_v51, %v6339_v13  ;;  %v9187_v62 = vand.u32 4294901760, %v6191_v32  ;;  %v6395_v40 = vsub.f32 %v1930_v15, %v6353_v23  ;;  %v1923_v30 = vld [vmem:[#allocation8 + $0x190] sm:$0xff] }
 0x124   :  { %9179 = vst [vmem:[#allocation80_spill] sm:$0xff] %v6363_v60  ;;  %v6372_v33 = vsub.f32 %v6275_v57, %v9181_v7  ;;  %9182 = vst [vmem:[#allocation81_spill] sm:$0xff] %v6375_v18  ;;  %2265 = vmatpush1.msra.mxu1 %v9184_v41  ;;  %v6387_v7 = vand.u32 4294901760, %v1927_v29  ;;  %v1924_v57 = vld [vmem:[#allocation8 + $0x198] sm:$0xff]  ;;  %2062 = vmatprep.subr.mxu0 %v6128_v20  ;;  %v6397_v10 = vand.u32 4294901760, %v1926_v6  ;;  %v9190_v51 = vand.u32 4294901760, %v6206_v25 }
 0x125   :  { %9183 = vst [vmem:[#allocation82_spill] sm:$0xff] %v6377_v12  ;;  %9185 = vst [vmem:[#allocation83_spill] sm:$0xff] %v6385_v48  ;;  %2271 = vmatprep.subr.mxu1 %v9187_v62  ;;  %v9191_v37 = vand.u32 4294901760, %v6311_v34  ;;  %2064 = vmatpush1.msra.mxu0 %v6137_v63  ;;  %v6409_v5 = vsub.f32 %v1929_v61, %v6363_v60  ;;  %v6411_v15 = vand.u32 4294901760, %v1925_v49  ;;  %v1922_v41 = vld [vmem:[#allocation8 + $0x188] sm:$0xff]  ;;  %v9194_v20 = vand.u32 4294901760, %v6218_v21 }
 0x126   :  { %9186 = vst [vmem:[#allocation84_spill] sm:$0xff] %v6387_v7  ;;  %9188 = vst [vmem:[#allocation85_spill] sm:$0xff] %v6395_v40  ;;  %2277 = vmatpush1.msra.mxu1 %v9190_v51  ;;  %2066 = vmatprep.subr.mxu0 %v6146_v44  ;;  %v6419_v51 = vsub.f32 %v1928_v55, %v6377_v12  ;;  %v9197_v61 = vand.u32 4294901760, %v6233_v26  ;;  %v9198_v62 = vand.u32 4294901760, %v6337_v54  ;;  %v6435_v25 = vand.u32 4294901760, %v1923_v30  ;;  %v1921_v55 = vld [vmem:[#allocation8 + $0x180] sm:$0xff] }
 0x127   :  { %9189 = vst [vmem:[#allocation86_spill] sm:$0xff] %v6397_v10  ;;  %v6404_v32 = vsub.f32 %v6311_v34, %v9191_v37  ;;  %9192 = vst [vmem:[#allocation87_spill] sm:$0xff] %v6409_v5  ;;  %2283 = vmatprep.subr.mxu1 %v9194_v20  ;;  %v6421_v34 = vand.u32 4294901760, %v1924_v57  ;;  %2068 = vmatpush1.msra.mxu0 %v6159_v52  ;;  %v6433_v21 = vsub.f32 %v1927_v29, %v6387_v7 }
 0x128   :  { %9193 = vst [vmem:[#allocation88_spill] sm:$0xff] %v6411_v15  ;;  %9195 = vst [vmem:[#allocation89_spill] sm:$0xff] %v6419_v51  ;;  %2289 = vmatpush1.msra.mxu1 %v9197_v61  ;;  %v6428_v63 = vsub.f32 %v6337_v54, %v9198_v62  ;;  %v9201_v37 = vand.u32 4294901760, %v6246_v14  ;;  %v9202_v26 = vand.u32 4294901760, %v6351_v47  ;;  %2070 = vmatprep.subr.mxu0 %v6169_v11  ;;  %v6449_v29 = vand.u32 4294901760, %v1922_v41 }
 0x129   :  { %9196 = vst [vmem:[#allocation90_spill] sm:$0xff] %v6421_v34  ;;  %9199 = vst [vmem:[#allocation91_spill] sm:$0xff] %v6433_v21  ;;  %v6447_v20 = vsub.f32 %v1926_v6, %v6397_v10  ;;  %v9205_v54 = vand.u32 4294901760, %v6259_v17  ;;  %v2354_v14 = vand.u32 4294901760, %v6404_v32  ;;  %2072 = vmatpush1.msra.mxu0 %v6183_v1  ;;  %v6462_v62 = vsub.f32 %v1925_v49, %v6411_v15  ;;  %v1919_v32 = vld [vmem:[#allocation8 + $0x170] sm:$0xff] }
 0x12a   :  { %9200 = vst [vmem:[#allocation92_spill] sm:$0xff] %v6435_v25  ;;  %2295 = vmatprep.subr.mxu1 %v9201_v37  ;;  %v6442_v61 = vsub.f32 %v6351_v47, %v9202_v26  ;;  %9204 = vst [vmem:[#allocation94_spill] sm:$0xff] %v6449_v29  ;;  %v9206_v37 = vand.u32 4294901760, %v6361_v50  ;;  %v9208_v6 = vand.u32 4294901760, %v6271_v22  ;;  %v9209_v17 = vand.u32 4294901760, %v6375_v18  ;;  %2074 = vmatprep.subr.mxu0 %v6197_v4  ;;  %v1920_v26 = vld [vmem:[#allocation8 + $0x178] sm:$0xff] }
 0x12b   :  { %9203 = vst [vmem:[#allocation93_spill] sm:$0xff] %v6447_v20  ;;  %2301 = vmatpush1.msra.mxu1 %v9205_v54  ;;  %9207 = vst [vmem:[#allocation95_spill] sm:$0xff] %v6462_v62  ;;  %v9211_v49 = vand.u32 4294901760, %v6284_v31  ;;  %v2360_v22 = vand.u32 4294901760, %v6428_v63  ;;  %2076 = vmatpush1.msra.mxu0 %v6224_v28  ;;  %v9223_v47 = vand.u32 4294901760, %v6334_v43 }
 0x12c   :  { %v6457_v52 = vsub.f32 %v6361_v50, %v9206_v37  ;;  %2307 = vmatprep.subr.mxu1 %v9208_v6  ;;  %v6469_v54 = vsub.f32 %v6375_v18, %v9209_v17  ;;  %v6474_v37 = vsub.f32 %v1924_v57, %v6421_v34  ;;  %v6476_v50 = vand.u32 4294901760, %v1921_v55  ;;  %2078 = vmatprep.subr.mxu0 %v6262_v3 }
 0x12d   :  { %2313 = vmatpush1.msra.mxu1 %v9211_v49  ;;  %v9212_v6 = vand.u32 4294901760, %v6385_v48  ;;  %v6489_v57 = vsub.f32 %v1923_v30, %v6435_v25  ;;  %v9214_v18 = vand.u32 4294901760, %v6296_v0  ;;  %v2366_v31 = vand.u32 4294901760, %v6442_v61  ;;  %2080 = vmatpush2.msra.mxu0 %v6287_v8 }
 0x12e   :  { %9210 = vst [vmem:[#allocation96_spill] sm:$0xff] %v6474_v37  ;;  %v9215_v49 = vand.u32 4294901760, %v6395_v40  ;;  %v9217_v30 = vand.u32 4294901760, %v6308_v42  ;;  %v2372_v0 = vand.u32 4294901760, %v6457_v52  ;;  %v2378_v42 = vand.u32 4294901760, %v6469_v54  ;;  %2082 = vmatprep.subr.mxu0 %v6299_v2 }
 0x12f   :  { %v6484_v17 = vsub.f32 %v6385_v48, %v9212_v6  ;;  %9213 = vst [vmem:[#allocation97_spill] sm:$0xff] %v6489_v57  ;;  %2319 = vmatprep.subr.mxu1 %v9214_v18  ;;  %v6502_v48 = vsub.f32 %v1922_v41, %v6449_v29  ;;  %v9218_v18 = vand.u32 4294901760, %v6409_v5  ;;  %v1918_v6 = vld [vmem:[#allocation8 + $0x168] sm:$0xff]  ;;  %v9220_v41 = vand.u32 4294901760, %v6322_v36  ;;  %2084 = vmatpush2.msra.mxu0 %v6313_v35 }
 0x130   :  { %v6497_v63 = vsub.f32 %v6395_v40, %v9215_v49  ;;  %2325 = vmatpush1.msra.mxu1 %v9217_v30  ;;  %v6514_v40 = vand.u32 4294901760, %v1920_v26  ;;  %v9221_v30 = vand.u32 4294901760, %v6419_v51  ;;  %v1917_v49 = vld [vmem:[#allocation8 + $0x160] sm:$0xff]  ;;  %v9224_v54 = vand.u32 4294901760, %v6433_v21  ;;  %2086 = vmatprep.subr.mxu0 %v6325_v58 }
 0x131   :  { %9216 = vst [vmem:[#allocation98_spill] sm:$0xff] %v6502_v48  ;;  %v6510_v61 = vsub.f32 %v6409_v5, %v9218_v18  ;;  %2331 = vmatprep.subr.mxu1 %v9220_v41  ;;  %v6527_v5 = vsub.f32 %v1921_v55, %v6476_v50  ;;  %v2384_v36 = vand.u32 4294901760, %v6484_v17  ;;  %v1916_v18 = vld [vmem:[#allocation8 + $0x158] sm:$0xff]  ;;  %v9225_v55 = vand.u32 4294901760, %v6348_v45  ;;  %2088 = vmatpush2.msra.mxu0 %v6339_v13 }
 0x132   :  { %9219 = vst [vmem:[#allocation99_spill] sm:$0xff] %v6514_v40  ;;  %v6522_v52 = vsub.f32 %v6419_v51, %v9221_v30  ;;  %2337 = vmatpush1.msra.mxu1 %v9223_v47  ;;  %v6535_v41 = vsub.f32 %v6433_v21, %v9224_v54  ;;  %v6539_v51 = vand.u32 4294901760, %v1919_v32  ;;  %v2390_v43 = vand.u32 4294901760, %v6497_v63  ;;  %v1915_v30 = vld [vmem:[#allocation8 + $0x150] sm:$0xff]  ;;  %v1914_v54 = vld [vmem:[#allocation8 + $0x148] sm:$0xff]  ;;  %2090 = vmatprep.subr.mxu0 %v6353_v23 }
 0x133   :  { %9222 = vst [vmem:[#allocation100_spill] sm:$0xff] %v6527_v5  ;;  %2343 = vmatprep.subr.mxu1 %v9225_v55  ;;  %v9226_v47 = vand.u32 4294901760, %v6447_v20  ;;  %v6551_v21 = vand.u32 4294901760, %v1918_v6  ;;  %v9228_v35 = vand.u32 4294901760, %v6372_v33  ;;  %v2396_v45 = vand.u32 4294901760, %v6510_v61  ;;  %2092 = vmatpush2.msra.mxu0 %v6363_v60 }
 0x134   :  { %v9229_v55 = vand.u32 4294901760, %v6462_v62  ;;  %v2402_v58 = vand.u32 4294901760, %v6522_v52  ;;  %v9232_v13 = vand.u32 4294901760, %v6489_v57  ;;  %v6585_v52 = vsub.f32 %v1919_v32, %v6539_v51  ;;  %2094 = vmatprep.subr.mxu0 %v6377_v12  ;;  %v1911_v32 = vld [vmem:[#allocation8 + $0x130] sm:$0xff] }
 0x135   :  { %v6547_v17 = vsub.f32 %v6447_v20, %v9226_v47  ;;  %9227 = vst [vmem:[#allocation101_spill] sm:$0xff] %v6551_v21  ;;  %2349 = vmatpush1.msra.mxu1 %v9228_v35  ;;  %v6563_v47 = vsub.f32 %v1920_v26, %v6514_v40  ;;  %v6565_v20 = vand.u32 4294901760, %v1917_v49  ;;  %v9231_v35 = vand.u32 4294901760, %v6474_v37  ;;  %2096 = vmatpush2.msra.mxu0 %v6387_v7  ;;  %v1905_v7 = vld [vmem:[#allocation8 + $0x100] sm:$0xff] }
 0x136   :  { %v6559_v63 = vsub.f32 %v6462_v62, %v9229_v55  ;;  %2355 = vmatprep.subr.mxu1 %v2354_v14  ;;  %v6575_v55 = vand.u32 4294901760, %v1916_v18  ;;  %v1913_v62 = vld [vmem:[#allocation8 + $0x140] sm:$0xff]  ;;  %v2408_v26 = vand.u32 4294901760, %v6535_v41  ;;  %v6581_v14 = vsub.f32 %v6489_v57, %v9232_v13  ;;  %9233 = vst [vmem:[#allocation103_spill] sm:$0xff] %v6585_v52  ;;  %2098 = vmatprep.subr.mxu0 %v6397_v10  ;;  %v1906_v10 = vld [vmem:[#allocation8 + $0x108] sm:$0xff] }
 0x137   :  { %9230 = vst [vmem:[#allocation102_spill] sm:$0xff] %v6563_v47  ;;  %v6571_v33 = vsub.f32 %v6474_v37, %v9231_v35  ;;  %2361 = vmatpush2.msra.mxu1 %v2360_v22  ;;  %v6587_v35 = vand.u32 4294901760, %v1915_v30  ;;  %v1912_v37 = vld [vmem:[#allocation8 + $0x138] sm:$0xff]  ;;  %v2414_v61 = vand.u32 4294901760, %v6547_v17  ;;  %v9234_v22 = vand.u32 4294901760, %v6502_v48  ;;  %2100 = vmatpush2.msra.mxu0 %v6411_v15 }
 0x138   :  { %2367 = vmatprep.subr.mxu1 %v2366_v31  ;;  %v6597_v13 = vsub.f32 %v1918_v6, %v6551_v21  ;;  %v6599_v57 = vand.u32 4294901760, %v1914_v54  ;;  %v2420_v60 = vand.u32 4294901760, %v6559_v63  ;;  %v6605_v17 = vsub.f32 %v1917_v49, %v6565_v20  ;;  %v1909_v49 = vld [vmem:[#allocation8 + $0x120] sm:$0xff]  ;;  %2102 = vmatprep.subr.mxu0 %v6421_v34 }
 0x139   :  { %v6593_v41 = vsub.f32 %v6502_v48, %v9234_v22  ;;  %2373 = vmatpush2.msra.mxu1 %v2372_v0  ;;  %v6607_v22 = vand.u32 4294901760, %v1913_v62  ;;  %v1910_v48 = vld [vmem:[#allocation8 + $0x128] sm:$0xff]  ;;  %v2426_v6 = vand.u32 4294901760, %v6571_v33  ;;  %v9239_v12 = vand.u32 4294901760, %v6527_v5  ;;  %2104 = vmatpush2.msra.mxu0 %v6435_v25 }
 0x13a   :  { %9235 = vst [vmem:[#allocation104_spill] sm:$0xff] %v6597_v13  ;;  %9236 = vst [vmem:[#allocation105_spill] sm:$0xff] %v6599_v57  ;;  %2379 = vmatprep.subr.mxu1 %v2378_v42  ;;  %v6617_v0 = vsub.f32 %v1916_v18, %v6575_v55  ;;  %v6619_v63 = vand.u32 4294901760, %v1912_v37  ;;  %v2432_v31 = vand.u32 4294901760, %v6581_v14  ;;  %v6625_v33 = vsub.f32 %v1915_v30, %v6587_v35  ;;  %v1907_v42 = vld [vmem:[#allocation8 + $0x110] sm:$0xff] }
 0x13b   :  { %9237 = vst [vmem:[#allocation106_spill] sm:$0xff] %v6605_v17  ;;  %9238 = vst [vmem:[#allocation107_spill] sm:$0xff] %v6607_v22  ;;  %v6613_v23 = vsub.f32 %v6527_v5, %v9239_v12  ;;  %2385 = vmatpush2.msra.mxu1 %v2384_v36  ;;  %v6627_v12 = vand.u32 4294901760, %v1911_v32  ;;  %v1908_v5 = vld [vmem:[#allocation8 + $0x118] sm:$0xff]  ;;  %v2438_v18 = vand.u32 4294901760, %v6593_v41  ;;  %v6633_v36 = vsub.f32 %v1914_v54, %v6599_v57 }
 0x13c   :  { %2391 = vmatprep.subr.mxu1 %v2390_v43  ;;  %v6635_v14 = vand.u32 4294901760, %v1910_v48  ;;  %v9242_v30 = vand.u32 4294901760, %v6563_v47  ;;  %v6643_v43 = vsub.f32 %v1913_v62, %v6607_v22  ;;  %v6645_v41 = vand.u32 4294901760, %v1909_v49  ;;  %2106 = vmatprep.subr.mxu0 %v6449_v29 }
 0x13d   :  { %9240 = vst [vmem:[#allocation108_spill] sm:$0xff] %v6633_v36  ;;  %2397 = vmatpush2.msra.mxu1 %v2396_v45  ;;  %v2444_v54 = vand.u32 4294901760, %v6613_v23  ;;  %v6651_v45 = vsub.f32 %v1912_v37, %v6619_v63  ;;  %v9246_v62 = vand.u32 4294901760, %v6585_v52  ;;  %2108 = vmatpush2.msra.mxu0 %v6476_v50  ;;  %v6663_v23 = vand.u32 4294901760, %v1907_v42 }
 0x13e   :  { %9241 = vst [vmem:[#allocation109_spill] sm:$0xff] %v6635_v14  ;;  %v2449_v15 = vsub.f32 %v6563_v47, %v9242_v30  ;;  %9243 = vst [vmem:[#allocation110_spill] sm:$0xff] %v6643_v43  ;;  %2403 = vmatprep.subr.mxu1 %v2402_v58  ;;  %v6653_v30 = vand.u32 4294901760, %v1908_v5  ;;  %v6661_v58 = vsub.f32 %v1911_v32, %v6627_v12  ;;  %v9248_v37 = vand.u32 4294901760, %v6597_v13 }
 0x13f   :  { %9244 = vst [vmem:[#allocation111_spill] sm:$0xff] %v6645_v41  ;;  %9245 = vst [vmem:[#allocation112_spill] sm:$0xff] %v6651_v45  ;;  %2409 = vmatpush2.msra.mxu1 %v2408_v26  ;;  %v2455_v47 = vsub.f32 %v6585_v52, %v9246_v62  ;;  %2110 = vmatprep.subr.mxu0 %v6514_v40  ;;  %v6671_v62 = vsub.f32 %v1910_v48, %v6635_v14  ;;  %v6673_v25 = vand.u32 4294901760, %v1906_v10 }
 0x140   :  { %9247 = vst [vmem:[#allocation113_spill] sm:$0xff] %v6661_v58  ;;  %2415 = vmatprep.subr.mxu1 %v2414_v61  ;;  %v2461_v34 = vsub.f32 %v6597_v13, %v9248_v37  ;;  %v9250_v32 = vand.u32 4294901760, %v6605_v17  ;;  %2112 = vmatpush2.msra.mxu0 %v6539_v51  ;;  %v6681_v37 = vsub.f32 %v1909_v49, %v6645_v41  ;;  %v6683_v26 = vand.u32 4294901760, %v1905_v7 }
 0x141   :  { %9249 = vst [vmem:[#allocation114_spill] sm:$0xff] %v6671_v62  ;;  %2421 = vmatpush2.msra.mxu1 %v2420_v60  ;;  %v2450_v13 = vand.u32 4294901760, %v2449_v15  ;;  %v9253_v48 = vand.u32 4294901760, %v6617_v0  ;;  %2114 = vmatprep.subr.mxu0 %v6551_v21  ;;  %v2456_v61 = vand.u32 4294901760, %v2455_v47  ;;  %v9255_v49 = vand.u32 4294901760, %v6625_v33 }
 0x142   :  { %v2467_v52 = vsub.f32 %v6605_v17, %v9250_v32  ;;  %9251 = vst [vmem:[#allocation115_spill] sm:$0xff] %v6681_v37  ;;  %9252 = vst [vmem:[#allocation116_spill] sm:$0xff] %v6683_v26  ;;  %2427 = vmatprep.subr.mxu1 %v2426_v6  ;;  %v6691_v32 = vsub.f32 %v1908_v5, %v6653_v30  ;;  %2116 = vmatpush2.msra.mxu0 %v6565_v20  ;;  %v9257_v60 = vand.u32 4294901760, %v6633_v36 }
 0x143   :  { %v2473_v40 = vsub.f32 %v6617_v0, %v9253_v48  ;;  %2433 = vmatpush2.msra.mxu1 %v2432_v31  ;;  %v2479_v17 = vsub.f32 %v6625_v33, %v9255_v49  ;;  %v6699_v15 = vsub.f32 %v1907_v42, %v6663_v23  ;;  %v2462_v48 = vand.u32 4294901760, %v2461_v34  ;;  %2118 = vmatprep.subr.mxu0 %v6575_v55 }
 0x144   :  { %9254 = vst [vmem:[#allocation117_spill] sm:$0xff] %v6691_v32  ;;  %2439 = vmatprep.subr.mxu1 %v2438_v18  ;;  %v2485_v5 = vsub.f32 %v6633_v36, %v9257_v60  ;;  %v6707_v47 = vsub.f32 %v1906_v10, %v6673_v25  ;;  %v2468_v49 = vand.u32 4294901760, %v2467_v52  ;;  %v9259_v6 = vand.u32 4294901760, %v6643_v43  ;;  %2120 = vmatpush2.msra.mxu0 %v6587_v35 }
 0x145   :  { %9256 = vst [vmem:[#allocation118_spill] sm:$0xff] %v6699_v15  ;;  %2445 = vmatpush2.msra.mxu1 %v2444_v54  ;;  %v6715_v34 = vsub.f32 %v1905_v7, %v6683_v26  ;;  %v2474_v60 = vand.u32 4294901760, %v2473_v40  ;;  %v9261_v31 = vand.u32 4294901760, %v6651_v45  ;;  %v8641_v54 = vand.u32 4294901760, %v6691_v32  ;;  %2122 = vmatprep.subr.mxu0 %v6599_v57 }
 0x146   :  { %9258 = vst [vmem:[#allocation119_spill] sm:$0xff] %v6707_v47  ;;  %v2491_v42 = vsub.f32 %v6643_v43, %v9259_v6  ;;  %2451 = vmatprep.subr.mxu1 %v2450_v13  ;;  %v2480_v52 = vand.u32 4294901760, %v2479_v17  ;;  %v9262_v6 = vand.u32 4294901760, %v6661_v58  ;;  %2124 = vmatpush2.msra.mxu0 %v6607_v22  ;;  %v2486_v7 = vand.u32 4294901760, %v2485_v5 }
 0x147   :  { %9260 = vst [vmem:[#allocation120_spill] sm:$0xff] %v6715_v34  ;;  %v2497_v10 = vsub.f32 %v6651_v45, %v9261_v31  ;;  %2457 = vmatpush2.msra.mxu1 %v2456_v61  ;;  %v9263_v40 = vand.u32 4294901760, %v6671_v62  ;;  %v8640_v31 = vand.u32 4294901760, %v6707_v47  ;;  %2126 = vmatprep.subr.mxu0 %v6619_v63  ;;  %v9264_v61 = vand.u32 4294901760, %v6681_v37 }
 0x148   :  { %v2503_v18 = vsub.f32 %v6661_v58, %v9262_v6  ;;  %2463 = vmatprep.subr.mxu1 %v2462_v48  ;;  %v2492_v17 = vand.u32 4294901760, %v2491_v42  ;;  %v8639_v43 = vand.u32 4294901760, %v6715_v34  ;;  %2128 = vmatpush2.msra.mxu0 %v6627_v12  ;;  %v2521_v5 = vsub.f32 %v6691_v32, %v8641_v54 }
 0x149   :  { %v2509_v13 = vsub.f32 %v6671_v62, %v9263_v40  ;;  %2469 = vmatpush2.msra.mxu1 %v2468_v49  ;;  %v2515_v6 = vsub.f32 %v6681_v37, %v9264_v61  ;;  %v2498_v48 = vand.u32 4294901760, %v2497_v10  ;;  %2130 = vmatprep.subr.mxu0 %v6635_v14  ;;  %v9265_v49 = vand.u32 4294901760, %v6699_v15 }
 0x14a   :  { %2475 = vmatprep.subr.mxu1 %v2474_v60  ;;  %v2504_v40 = vand.u32 4294901760, %v2503_v18  ;;  %2132 = vmatpush2.msra.mxu0 %v6645_v41  ;;  %v2533_v60 = vsub.f32 %v6707_v47, %v8640_v31  ;;  %v2539_v18 = vsub.f32 %v6715_v34, %v8639_v43 }
 0x14b   :  { %2481 = vmatpush2.msra.mxu1 %v2480_v52  ;;  %v2527_v42 = vsub.f32 %v6699_v15, %v9265_v49  ;;  %v2510_v61 = vand.u32 4294901760, %v2509_v13  ;;  %2134 = vmatprep.subr.mxu0 %v6653_v30  ;;  %v2516_v10 = vand.u32 4294901760, %v2515_v6  ;;  %v2522_v52 = vand.u32 4294901760, %v2521_v5  ;;  %v262_v49 = vpop.f32.mrf.mxu0 }
 0x14c   :  { %2487 = vmatprep.subr.mxu1 %v2486_v7  ;;  %2136 = vmatpush2.msra.mxu0 %v6663_v23  ;;  %v2534_v13 = vand.u32 4294901760, %v2533_v60  ;;  %v139_v6 = vlaneseq }
 0x14d   :  { %2493 = vmatpush2.msra.mxu1 %v2492_v17  ;;  %2138 = vmatprep.subr.mxu0 %v6673_v25  ;;  %v2528_v7 = vand.u32 4294901760, %v2527_v42  ;;  %v2540_v17 = vand.u32 4294901760, %v2539_v18  ;;  %v264_v60 = vpop.f32.mrf.mxu0 }
 0x14e   :  { %2499 = vmatprep.subr.mxu1 %v2498_v48  ;;  %2140 = vmatpush2.msra.mxu0 %v6683_v26  ;;  %v6757_v48 = vshrl.u32 %v139_v6, 7 }
 0x14f   :  { %2505 = vmatpush2.msra.mxu1 %v2504_v40  ;;  %2553 = vmatprep.subr.mxu0 %v5852_v9  ;;  %v6760_v40 = vld [vmem:[#allocation7] sm:$0xf] }
 0x150   :  { %2511 = vmatprep.subr.mxu1 %v2510_v61  ;;  %9266 = vst [vmem:[#allocation121_spill] sm:$0xff] %v6757_v48  ;;  %v8651_v5 = vsub.s32 0, %v6757_v48  ;;  %9267 = vst [vmem:[#allocation122_spill] sm:$0xff] %v6760_v40  ;;  %v8661_v42 = vsub.s32 1, %v6757_v48 }
 0x151   :  { %2517 = vmatpush2.msra.mxu1 %v2516_v10  ;;  %v494_v10 = vpop.f32.mrf.mxu1 }
 0x152   :  { %2523 = vmatprep.subr.mxu1 %v2522_v52  ;;  %v142_v61 = vrot.slane %v6760_v40, %v8651_v5  ;;  %v146_v18 = vrot.slane %v6760_v40, %v8661_v42  ;;  %v631_v52 = vpop.f32.mrf.mxu0 }
 0x153   :  { %2529 = vmatpush2.msra.mxu1 %v2528_v7 }
 0x154   :  { %2535 = vmatprep.subr.mxu1 %v2534_v13  ;;  %v263_v7 = vadd.f32 %v262_v49, %v142_v61  ;;  %v496_v13 = vpop.f32.mrf.mxu1  ;;  %v633_v6 = vpop.f32.mrf.mxu0 }
 0x155   :  { %2541 = vmatpush2.msra.mxu1 %v2540_v17  ;;  %v265_v17 = vadd.f32 %v264_v60, %v146_v18 }
 0x156   :  { %2755 = vmatprep.subr.mxu1 %v5829_v27  ;;  %v737_v43 = vpop.f32.mrf.mxu1  ;;  %v495_v31 = vadd.f32 %v494_v10, %v263_v7  ;;  %v9279_v7 = vld [vmem:[#allocation24_spill] sm:$0xff] }
 0x157   :  { %v497_v9 = vadd.f32 %v496_v13, %v265_v17  ;;  %v149_v13 = vsub.s32 2, %v6757_v48  ;;  %v9280_v17 = vld [vmem:[#allocation29_spill] sm:$0xff]  ;;  %v9291_v48 = vld [vmem:[#allocation43_spill] sm:$0xff] }
 0x158   :  { %v632_v34 = vadd.f32 %v631_v52, %v495_v31  ;;  %v739_v47 = vpop.f32.mrf.mxu1  ;;  %v9275_v31 = vld [vmem:[#allocation19_spill] sm:$0xff] }
 0x159   :  { %v634_v15 = vadd.f32 %v633_v6, %v497_v9  ;;  %v9278_v52 = vld [vmem:[#allocation23_spill] sm:$0xff] }
 0x15a   :  { %v738_v32 = vadd.f32 %v737_v43, %v632_v34  ;;  %v9273_v34 = vld [vmem:[#allocation22_spill] sm:$0xff]  ;;  %v9281_v6 = vld [vmem:[#allocation39_spill] sm:$0xff] }
 0x15b   :  { %v740_v37 = vadd.f32 %v739_v47, %v634_v15  ;;  %v9272_v15 = vld [vmem:[#allocation18_spill] sm:$0xff] }
 0x161   :  { %v905_v54 = vpop.f32.mrf.mxu0 }
 0x162   :  { %v906_v62 = vadd.f32 %v905_v54, %v738_v32  ;;  %v9274_v54 = vld [vmem:[#allocation16_spill] sm:$0xff] }
 0x163   :  { %v907_v5 = vpop.f32.mrf.mxu0 }
 0x164   :  { %v908_v27 = vadd.f32 %v907_v5, %v740_v37  ;;  %v9271_v37 = vld [vmem:[#allocation25_spill] sm:$0xff] }
 0x165   :  { %v9276_v5 = vld [vmem:[#allocation21_spill] sm:$0xff] }
 0x16a   :  { %v1009_v58 = vpop.f32.mrf.mxu1 }
 0x16b   :  { %v1010_v45 = vadd.f32 %v1009_v58, %v906_v62  ;;  %v9269_v58 = vld [vmem:[#allocation15_spill] sm:$0xff]  ;;  %v9270_v62 = vld [vmem:[#allocation36_spill] sm:$0xff] }
 0x16c   :  { %v1011_v42 = vpop.f32.mrf.mxu1 }
 0x16d   :  { %v1869_v26 = vmax.f32 %v1010_v45, 0.0  ;;  %v1012_v49 = vadd.f32 %v1011_v42, %v908_v27  ;;  %v9277_v42 = vld [vmem:[#allocation20_spill] sm:$0xff] }
 0x16f   :  { %v6769_v61 = vand.u32 4294901760, %v1869_v26  ;;  %v1870_v60 = vmax.f32 %v1012_v49, 0.0  ;;  %v9282_v49 = vld [vmem:[#allocation32_spill] sm:$0xff] }
 0x171   :  { %9268 = vst [vmem:[#allocation123_spill] sm:$0xff] %v6769_v61  ;;  %v6772_v10 = vsub.f32 %v1869_v26, %v6769_v61  ;;  %v6774_v18 = vand.u32 4294901760, %v1870_v60 }
 0x173   :  { %v8664_v9 = vand.u32 4294901760, %v6772_v10  ;;  %v2142_v43 = vsub.f32 %v1870_v60, %v6774_v18  ;;  %2543 = vmatprep.mubr.f32.mxu1 %v6774_v18  ;;  %v9283_v60 = vld [vmem:[#allocation40_spill] sm:$0xff] }
 0x174   :  { %2545 = vmatmul.mubr.f32.vlgmr.msra.gmra.mxu1 %v6769_v61  ;;  %v9290_v61 = vld [vmem:[#allocation34_spill] sm:$0xff] }
 0x175   :  { %2757 = vmatpush1.msra.mxu1 %v5834_v39  ;;  %v2143_v45 = vand.u32 4294901760, %v2142_v43  ;;  %v2150_v27 = vsub.f32 %v6772_v10, %v8664_v9  ;;  %v9289_v9 = vld [vmem:[#allocation33_spill] sm:$0xff] }
 0x176   :  { %2759 = vmatprep.subr.mxu1 %v5839_v56 }
 0x177   :  { %2761 = vmatpush1.msra.mxu1 %v9269_v58  ;;  %2885 = vmatprep.mubr.f32.mxu1 %v2143_v45  ;;  %v2144_v26 = vsub.f32 %v2142_v43, %v2143_v45  ;;  %v2151_v47 = vand.u32 4294901760, %v2150_v27  ;;  %v9285_v45 = vld [vmem:[#allocation27_spill] sm:$0xff]  ;;  %v9286_v27 = vld [vmem:[#allocation26_spill] sm:$0xff] }
 0x178   :  { %2763 = vmatprep.subr.mxu1 %v9270_v62 }
 0x179   :  { %2765 = vmatpush1.msra.mxu1 %v9271_v37  ;;  %v2145_v32 = vand.u32 4294901760, %v2144_v26  ;;  %v150_v26 = vrot.slane %v6760_v40, %v149_v13  ;;  %v9296_v13 = vld [vmem:[#allocation37_spill] sm:$0xff] }
 0x17a   :  { %2767 = vmatprep.subr.mxu1 %v9272_v15  ;;  %v9297_v40 = vld [vmem:[#allocation49_spill] sm:$0xff] }
 0x17b   :  { %2769 = vmatpush1.msra.mxu1 %v5879_v38  ;;  %2146 = vmatprep.mubr.f32.mxu0 %v2145_v32  ;;  %v9287_v32 = vld [vmem:[#allocation41_spill] sm:$0xff] }
 0x17c   :  { %2771 = vmatprep.subr.mxu1 %v9273_v34  ;;  %2152 = vmatmul.mubr.f32.vlgmr.msra.gmra.mxu0 %v2151_v47  ;;  %v9288_v47 = vld [vmem:[#allocation31_spill] sm:$0xff] }
 0x17d   :  { %2556 = vmatpush1.msra.mxu0 %v9274_v54  ;;  %2773 = vmatpush1.msra.mxu1 %v5894_v16 }
 0x17e   :  { %2559 = vmatprep.subr.mxu0 %v9275_v31  ;;  %2745 = vmatprep.mubr.f32.mxu0 %v2142_v43  ;;  %v9284_v43 = vld [vmem:[#allocation30_spill] sm:$0xff] }
 0x17f   :  { %2775 = vmatprep.subr.mxu1 %v5903_v53  ;;  %2562 = vmatpush1.msra.mxu0 %v9276_v5 }
 0x180   :  { %2777 = vmatpush1.msra.mxu1 %v5913_v19  ;;  %2565 = vmatprep.subr.mxu0 %v9277_v42 }
 0x181   :  { %2779 = vmatprep.subr.mxu1 %v5924_v46  ;;  %2568 = vmatpush1.msra.mxu0 %v9278_v52 }
 0x182   :  { %2781 = vmatpush1.msra.mxu1 %v5926_v59  ;;  %2571 = vmatprep.subr.mxu0 %v9279_v7 }
 0x183   :  { %2783 = vmatprep.subr.mxu1 %v5954_v24  ;;  %2574 = vmatpush1.msra.mxu0 %v9280_v17 }
 0x184   :  { %2785 = vmatpush1.msra.mxu1 %v9281_v6  ;;  %2577 = vmatprep.subr.mxu0 %v9282_v49  ;;  %v9292_v49 = vld [vmem:[#allocation35_spill] sm:$0xff] }
 0x185   :  { %2787 = vmatprep.subr.mxu1 %v9283_v60  ;;  %2580 = vmatpush1.msra.mxu0 %v9284_v43  ;;  %v1117_v60 = vpop.f32.mrf.mxu0  ;;  %v9293_v43 = vld [vmem:[#allocation45_spill] sm:$0xff]  ;;  %v9295_v6 = vld [vmem:[#allocation47_spill] sm:$0xff] }
 0x186   :  { %2789 = vmatpush1.msra.mxu1 %v9285_v45  ;;  %2583 = vmatprep.subr.mxu0 %v9286_v27  ;;  %v9294_v45 = vld [vmem:[#allocation42_spill] sm:$0xff]  ;;  %v1118_v27 = vadd.f32 %v1117_v60, %v150_v26  ;;  %v9303_v60 = vld [vmem:[#allocation48_spill] sm:$0xff] }
 0x187   :  { %2791 = vmatprep.subr.mxu1 %v9287_v32  ;;  %2586 = vmatpush1.msra.mxu0 %v9288_v47  ;;  %v9298_v47 = vld [vmem:[#allocation28_spill] sm:$0xff]  ;;  %v9302_v32 = vld [vmem:[#allocation46_spill] sm:$0xff] }
 0x188   :  { %2793 = vmatpush1.msra.mxu1 %v9289_v9  ;;  %2589 = vmatprep.subr.mxu0 %v9290_v61  ;;  %v9299_v9 = vld [vmem:[#allocation51_spill] sm:$0xff]  ;;  %v9300_v61 = vld [vmem:[#allocation44_spill] sm:$0xff] }
 0x189   :  { %2795 = vmatprep.subr.mxu1 %v9291_v48  ;;  %2592 = vmatpush1.msra.mxu0 %v9292_v49  ;;  %v9301_v49 = vld [vmem:[#allocation53_spill] sm:$0xff]  ;;  %v9304_v26 = vld [vmem:[#allocation56_spill] sm:$0xff] }
 0x18a   :  { %2797 = vmatpush1.msra.mxu1 %v9293_v43  ;;  %2595 = vmatprep.subr.mxu0 %v9294_v45 }
 0x18b   :  { %2799 = vmatprep.subr.mxu1 %v9295_v6  ;;  %2598 = vmatpush1.msra.mxu0 %v9296_v13  ;;  %v9305_v13 = vld [vmem:[#allocation50_spill] sm:$0xff] }
 0x18c   :  { %2801 = vmatpush1.msra.mxu1 %v9297_v40  ;;  %2601 = vmatprep.subr.mxu0 %v9298_v47  ;;  %v9306_v47 = vld [vmem:[#allocation52_spill] sm:$0xff] }
 0x18d   :  { %2803 = vmatprep.subr.mxu1 %v9299_v9  ;;  %2604 = vmatpush1.msra.mxu0 %v9300_v61  ;;  %v1349_v48 = vpop.f32.mrf.mxu1  ;;  %v9307_v61 = vld [vmem:[#allocation54_spill] sm:$0xff] }
 0x18e   :  { %2805 = vmatpush1.msra.mxu1 %v9301_v49  ;;  %2607 = vmatprep.subr.mxu0 %v9302_v32  ;;  %v1350_v43 = vadd.f32 %v1349_v48, %v1118_v27  ;;  %v9308_v32 = vld [vmem:[#allocation55_spill] sm:$0xff]  ;;  %v9309_v48 = vld [vmem:[#allocation57_spill] sm:$0xff] }
 0x18f   :  { %2807 = vmatprep.subr.mxu1 %v6146_v44  ;;  %2610 = vmatpush1.msra.mxu0 %v9303_v60  ;;  %v9310_v27 = vld [vmem:[#allocation59_spill] sm:$0xff] }
 0x190   :  { %2809 = vmatpush1.msra.mxu1 %v9304_v26  ;;  %2613 = vmatprep.subr.mxu0 %v9305_v13 }
 0x191   :  { %2811 = vmatprep.subr.mxu1 %v6169_v11  ;;  %2616 = vmatpush1.msra.mxu0 %v9306_v47  ;;  %v9311_v11 = vld [vmem:[#allocation61_spill] sm:$0xff] }
 0x192   :  { %2813 = vmatpush1.msra.mxu1 %v6183_v1  ;;  %2619 = vmatprep.subr.mxu0 %v9307_v61  ;;  %v9312_v1 = vld [vmem:[#allocation63_spill] sm:$0xff]  ;;  %v9313_v61 = vld [vmem:[#allocation73_spill] sm:$0xff] }
 0x193   :  { %2815 = vmatprep.subr.mxu1 %v6197_v4  ;;  %2622 = vmatpush1.msra.mxu0 %v9308_v32  ;;  %v9314_v4 = vld [vmem:[#allocation64_spill] sm:$0xff]  ;;  %v9315_v32 = vld [vmem:[#allocation74_spill] sm:$0xff] }
 0x194   :  { %2817 = vmatpush1.msra.mxu1 %v6224_v28  ;;  %2625 = vmatprep.subr.mxu0 %v9309_v48  ;;  %v9316_v28 = vld [vmem:[#allocation66_spill] sm:$0xff]  ;;  %v9317_v48 = vld [vmem:[#allocation76_spill] sm:$0xff] }
 0x195   :  { %2819 = vmatprep.subr.mxu1 %v6262_v3  ;;  %2628 = vmatpush1.msra.mxu0 %v9310_v27  ;;  %v9318_v3 = vld [vmem:[#allocation67_spill] sm:$0xff]  ;;  %v9319_v27 = vld [vmem:[#allocation78_spill] sm:$0xff] }
 0x196   :  { %2821 = vmatpush2.msra.mxu1 %v6287_v8  ;;  %2631 = vmatprep.subr.mxu0 %v9311_v11  ;;  %v9320_v8 = vld [vmem:[#allocation69_spill] sm:$0xff]  ;;  %v9321_v11 = vld [vmem:[#allocation80_spill] sm:$0xff] }
 0x197   :  { %2823 = vmatprep.subr.mxu1 %v6299_v2  ;;  %2634 = vmatpush1.msra.mxu0 %v9312_v1  ;;  %v9322_v2 = vld [vmem:[#allocation72_spill] sm:$0xff]  ;;  %v9323_v1 = vld [vmem:[#allocation82_spill] sm:$0xff] }
 0x198   :  { %2825 = vmatpush2.msra.mxu1 %v9313_v61  ;;  %2637 = vmatprep.subr.mxu0 %v9314_v4  ;;  %v9324_v61 = vld [vmem:[#allocation75_spill] sm:$0xff]  ;;  %v9325_v4 = vld [vmem:[#allocation84_spill] sm:$0xff] }
 0x199   :  { %2827 = vmatprep.subr.mxu1 %v9315_v32  ;;  %2640 = vmatpush1.msra.mxu0 %v9316_v28  ;;  %v9326_v32 = vld [vmem:[#allocation77_spill] sm:$0xff]  ;;  %v9327_v28 = vld [vmem:[#allocation86_spill] sm:$0xff] }
 0x19a   :  { %2829 = vmatpush2.msra.mxu1 %v9317_v48  ;;  %2643 = vmatprep.subr.mxu0 %v9318_v3  ;;  %v9328_v48 = vld [vmem:[#allocation79_spill] sm:$0xff]  ;;  %v9329_v3 = vld [vmem:[#allocation88_spill] sm:$0xff] }
 0x19b   :  { %2831 = vmatprep.subr.mxu1 %v9319_v27  ;;  %2646 = vmatpush1.msra.mxu0 %v9320_v8  ;;  %v9330_v27 = vld [vmem:[#allocation81_spill] sm:$0xff]  ;;  %v9331_v8 = vld [vmem:[#allocation90_spill] sm:$0xff] }
 0x19c   :  { %2833 = vmatpush2.msra.mxu1 %v9321_v11  ;;  %2649 = vmatprep.subr.mxu0 %v9322_v2  ;;  %v9332_v11 = vld [vmem:[#allocation83_spill] sm:$0xff]  ;;  %v9333_v2 = vld [vmem:[#allocation92_spill] sm:$0xff] }
 0x19d   :  { %2835 = vmatprep.subr.mxu1 %v9323_v1  ;;  %2652 = vmatpush2.msra.mxu0 %v9324_v61  ;;  %v9334_v1 = vld [vmem:[#allocation85_spill] sm:$0xff]  ;;  %v6868_v61 = vpop.f32.mrf.mxu0 }
 0x19e   :  { %2837 = vmatpush2.msra.mxu1 %v9325_v4  ;;  %2655 = vmatprep.subr.mxu0 %v9326_v32  ;;  %v9335_v32 = vld [vmem:[#allocation87_spill] sm:$0xff] }
 0x19f   :  { %2839 = vmatprep.subr.mxu1 %v9327_v28  ;;  %2658 = vmatpush2.msra.mxu0 %v9328_v48  ;;  %v9336_v48 = vld [vmem:[#allocation89_spill] sm:$0xff] }
 0x1a0   :  { %2841 = vmatpush2.msra.mxu1 %v9329_v3  ;;  %2661 = vmatprep.subr.mxu0 %v9330_v27  ;;  %v9337_v3 = vld [vmem:[#allocation99_spill] sm:$0xff] }
 0x1a1   :  { %2843 = vmatprep.subr.mxu1 %v9331_v8  ;;  %2664 = vmatpush2.msra.mxu0 %v9332_v11  ;;  %v9338_v27 = vld [vmem:[#allocation91_spill] sm:$0xff]  ;;  %v9339_v11 = vld [vmem:[#allocation93_spill] sm:$0xff] }
 0x1a2   :  { %2845 = vmatpush2.msra.mxu1 %v9333_v2  ;;  %2667 = vmatprep.subr.mxu0 %v9334_v1  ;;  %v9340_v1 = vld [vmem:[#allocation95_spill] sm:$0xff] }
 0x1a3   :  { %2847 = vmatprep.subr.mxu1 %v6449_v29  ;;  %2670 = vmatpush2.msra.mxu0 %v9335_v32  ;;  %v9341_v32 = vld [vmem:[#allocation96_spill] sm:$0xff] }
 0x1a4   :  { %2849 = vmatpush2.msra.mxu1 %v6476_v50  ;;  %2673 = vmatprep.subr.mxu0 %v9336_v48  ;;  %v9342_v48 = vld [vmem:[#allocation97_spill] sm:$0xff] }
 0x1a5   :  { %2851 = vmatprep.subr.mxu1 %v9337_v3  ;;  %2676 = vmatpush2.msra.mxu0 %v9338_v27  ;;  %v9343_v27 = vld [vmem:[#allocation98_spill] sm:$0xff] }
 0x1a6   :  { %2853 = vmatpush2.msra.mxu1 %v6539_v51  ;;  %2679 = vmatprep.subr.mxu0 %v9339_v11  ;;  %v1486_v2 = vpop.f32.mrf.mxu0  ;;  %v9344_v11 = vld [vmem:[#allocation100_spill] sm:$0xff] }
 0x1a7   :  { %2855 = vmatprep.subr.mxu1 %v6551_v21  ;;  %2682 = vmatpush2.msra.mxu0 %v9340_v1  ;;  %v1487_v29 = vadd.f32 %v1486_v2, %v1350_v43  ;;  %v6888_v21 = vpop.f32.mrf.mxu1  ;;  %v9345_v2 = vld [vmem:[#allocation102_spill] sm:$0xff]  ;;  %v9346_v43 = vld [vmem:[#allocation103_spill] sm:$0xff] }
 0x1a8   :  { %2857 = vmatpush2.msra.mxu1 %v6565_v20  ;;  %2685 = vmatprep.subr.mxu0 %v9341_v32 }
 0x1a9   :  { %2859 = vmatprep.subr.mxu1 %v6575_v55  ;;  %2688 = vmatpush2.msra.mxu0 %v9342_v48  ;;  %v9347_v48 = vld [vmem:[#allocation104_spill] sm:$0xff] }
 0x1aa   :  { %2861 = vmatpush2.msra.mxu1 %v6587_v35  ;;  %2691 = vmatprep.subr.mxu0 %v9343_v27  ;;  %v9348_v27 = vld [vmem:[#allocation106_spill] sm:$0xff] }
 0x1ab   :  { %2863 = vmatprep.subr.mxu1 %v6599_v57  ;;  %2694 = vmatpush2.msra.mxu0 %v9344_v11 }
 0x1ac   :  { %2865 = vmatpush2.msra.mxu1 %v6607_v22  ;;  %2697 = vmatprep.subr.mxu0 %v9345_v2 }
 0x1ad   :  { %2867 = vmatprep.subr.mxu1 %v6619_v63  ;;  %2700 = vmatpush2.msra.mxu0 %v9346_v43 }
 0x1ae   :  { %2869 = vmatpush2.msra.mxu1 %v6627_v12  ;;  %2703 = vmatprep.subr.mxu0 %v9347_v48  ;;  %v9349_v48 = vld [vmem:[#allocation110_spill] sm:$0xff] }
 0x1af   :  { %2871 = vmatprep.subr.mxu1 %v6635_v14  ;;  %2706 = vmatpush2.msra.mxu0 %v9348_v27  ;;  %v1592_v57 = vpop.f32.mrf.mxu1  ;;  %v9350_v14 = vld [vmem:[#allocation116_spill] sm:$0xff] }
 0x1b0   :  { %2873 = vmatpush2.msra.mxu1 %v6645_v41  ;;  %2709 = vmatprep.subr.mxu0 %v6617_v0  ;;  %v1593_v22 = vadd.f32 %v1592_v57, %v1487_v29  ;;  %v9351_v27 = vld [vmem:[#allocation112_spill] sm:$0xff]  ;;  %v9352_v41 = vand.u32 4294901760, %v6772_v10  ;;  %v9353_v29 = vld [vmem:[#allocation38_spill] sm:$0xff]  ;;  %v9354_v57 = vld [vmem:[#allocation113_spill] sm:$0xff] }
 0x1b1   :  { %2875 = vmatprep.subr.mxu1 %v6653_v30  ;;  %2712 = vmatpush2.msra.mxu0 %v6625_v33 }
 0x1b2   :  { %2877 = vmatpush2.msra.mxu1 %v6663_v23  ;;  %2715 = vmatprep.subr.mxu0 %v6633_v36  ;;  %v9355_v36 = vld [vmem:[#allocation114_spill] sm:$0xff] }
 0x1b3   :  { %2879 = vmatprep.subr.mxu1 %v6673_v25  ;;  %2718 = vmatpush2.msra.mxu0 %v9349_v48  ;;  %v9356_v48 = vld [vmem:[#allocation115_spill] sm:$0xff] }
 0x1b4   :  { %2881 = vmatpush2.msra.mxu1 %v9350_v14  ;;  %2721 = vmatprep.subr.mxu0 %v9351_v27  ;;  %v9357_v27 = vld [vmem:[#allocation117_spill] sm:$0xff] }
 0x1b5   :  { %2889 = vmatmul.mubr.f32.vlgmr.msra.gmra.mxu1 %v9352_v41  ;;  %3161 = vmatprep.subr.mxu1 %v9353_v29  ;;  %v9358_v41 = vld [vmem:[#allocation118_spill] sm:$0xff]  ;;  %v9359_v29 = vld [vmem:[#allocation119_spill] sm:$0xff] }
 0x1b6   :  { %2724 = vmatpush2.msra.mxu0 %v9354_v57  ;;  %3163 = vmatpush1.msra.mxu1 %v5834_v39  ;;  %v9360_v39 = vld [vmem:[#allocation120_spill] sm:$0xff] }
 0x1b7   :  { %3289 = vmatprep.mubr.f32.mxu1 %v6774_v18  ;;  %2727 = vmatprep.subr.mxu0 %v9355_v36 }
 0x1b8   :  { %3165 = vmatprep.subr.mxu1 %v5839_v56  ;;  %2730 = vmatpush2.msra.mxu0 %v9356_v48  ;;  %v9361_v56 = vld [vmem:[#allocation17_spill] sm:$0xff] }
 0x1b9   :  { %3167 = vmatpush1.msra.mxu1 %v9269_v58  ;;  %2733 = vmatprep.subr.mxu0 %v9357_v27  ;;  %v9362_v58 = vand.u32 4294901760, %v9361_v56 }
 0x1ba   :  { %3169 = vmatprep.subr.mxu1 %v9270_v62  ;;  %2736 = vmatpush2.msra.mxu0 %v9358_v41  ;;  %v9363_v62 = vand.u32 4294901760, %v9274_v54 }
 0x1bb   :  { %3171 = vmatpush1.msra.mxu1 %v9271_v37  ;;  %2739 = vmatprep.subr.mxu0 %v9359_v29  ;;  %v9364_v37 = vand.u32 4294901760, %v9275_v31  ;;  %v9373_v31 = vld [vmem:[#allocation40_spill] sm:$0xff] }
 0x1bc   :  { %3173 = vmatprep.subr.mxu1 %v9272_v15  ;;  %2742 = vmatpush2.msra.mxu0 %v9360_v39  ;;  %v6943_v15 = vpop.f32.mrf.mxu0 }
 0x1bd   :  { %3175 = vmatpush1.msra.mxu1 %v5879_v38  ;;  %2748 = vmatmul.mubr.f32.vlgmr.msra.gmra.mxu0 %v6772_v10  ;;  %v9365_v38 = vand.u32 4294901760, %v9276_v5  ;;  %v9366_v10 = vand.u32 4294901760, %v9277_v42  ;;  %v9374_v5 = vld [vmem:[#allocation30_spill] sm:$0xff] }
 0x1be   :  { %2898 = vmatprep.subr.mxu0 %v9362_v58  ;;  %3177 = vmatprep.subr.mxu1 %v9273_v34  ;;  %v9371_v34 = vld [vmem:[#allocation32_spill] sm:$0xff]  ;;  %v9375_v42 = vand.u32 4294901760, %v9374_v5 }
 0x1bf   :  { %2902 = vmatpush1.msra.mxu0 %v9363_v62  ;;  %3152 = vmatprep.mubr.f32.mxu0 %v6774_v18  ;;  %v9367_v18 = vand.u32 4294901760, %v9278_v52  ;;  %v9372_v54 = vand.u32 4294901760, %v9371_v34  ;;  %v9376_v52 = vld [vmem:[#allocation27_spill] sm:$0xff]  ;;  %v9382_v62 = vld [vmem:[#allocation33_spill] sm:$0xff]  ;;  %v9393_v5 = vld [vmem:[#allocation28_spill] sm:$0xff] }
 0x1c0   :  { %3179 = vmatpush1.msra.mxu1 %v5894_v16  ;;  %2906 = vmatprep.subr.mxu0 %v9364_v37  ;;  %v9368_v16 = vand.u32 4294901760, %v9279_v7  ;;  %v9377_v7 = vld [vmem:[#allocation26_spill] sm:$0xff] }
 0x1c1   :  { %3181 = vmatprep.subr.mxu1 %v5903_v53  ;;  %2910 = vmatpush1.msra.mxu0 %v9365_v38  ;;  %v9369_v53 = vand.u32 4294901760, %v9280_v17  ;;  %v9378_v56 = vand.u32 4294901760, %v9377_v7  ;;  %v9380_v17 = vld [vmem:[#allocation31_spill] sm:$0xff]  ;;  %v9383_v37 = vld [vmem:[#allocation34_spill] sm:$0xff] }
 0x1c2   :  { %3183 = vmatpush1.msra.mxu1 %v5913_v19  ;;  %2914 = vmatprep.subr.mxu0 %v9366_v10  ;;  %v9370_v19 = vld [vmem:[#allocation39_spill] sm:$0xff]  ;;  %v9381_v58 = vand.u32 4294901760, %v9380_v17  ;;  %v9384_v38 = vand.u32 4294901760, %v9383_v37  ;;  %v9399_v17 = vld [vmem:[#allocation122_spill] sm:$0xff]  ;;  %v9402_v37 = vand.u32 4294901760, %v9305_v13 }
 0x1c3   :  { %3185 = vmatprep.subr.mxu1 %v5924_v46  ;;  %2918 = vmatpush1.msra.mxu0 %v9367_v18  ;;  %v9385_v10 = vld [vmem:[#allocation43_spill] sm:$0xff] }
 0x1c4   :  { %3187 = vmatpush1.msra.mxu1 %v5926_v59  ;;  %2922 = vmatprep.subr.mxu0 %v9368_v16  ;;  %v9386_v18 = vld [vmem:[#allocation35_spill] sm:$0xff] }
 0x1c5   :  { %3189 = vmatprep.subr.mxu1 %v5954_v24  ;;  %2926 = vmatpush1.msra.mxu0 %v9369_v53  ;;  %v9379_v24 = vld [vmem:[#allocation41_spill] sm:$0xff]  ;;  %v9387_v16 = vand.u32 4294901760, %v9386_v18  ;;  %v9389_v53 = vand.u32 4294901760, %v9294_v45  ;;  %v9406_v18 = vld [vmem:[#allocation54_spill] sm:$0xff]  ;;  %v9409_v13 = vld [vmem:[#allocation55_spill] sm:$0xff] }
 0x1c6   :  { %3191 = vmatpush1.msra.mxu1 %v9370_v19  ;;  %2930 = vmatprep.subr.mxu0 %v9372_v54  ;;  %v9390_v19 = vld [vmem:[#allocation121_spill] sm:$0xff] }
 0x1c7   :  { %3193 = vmatprep.subr.mxu1 %v9373_v31  ;;  %2934 = vmatpush1.msra.mxu0 %v9375_v42  ;;  %v153_v34 = vsub.s32 3, %v9390_v19  ;;  %v9391_v54 = vld [vmem:[#allocation37_spill] sm:$0xff]  ;;  %v6978_v31 = vpop.f32.mrf.mxu1  ;;  %v9394_v42 = vand.u32 4294901760, %v9393_v5  ;;  %v9415_v5 = vld [vmem:[#allocation59_spill] sm:$0xff] }
 0x1c8   :  { %v1760_v46 = vpop.f32.mrf.mxu0  ;;  %3195 = vmatpush1.msra.mxu1 %v9376_v52  ;;  %2938 = vmatprep.subr.mxu0 %v9378_v56  ;;  %v9395_v52 = vld [vmem:[#allocation44_spill] sm:$0xff]  ;;  %v9397_v56 = vld [vmem:[#allocation46_spill] sm:$0xff] }
 0x1c9   :  { %v1761_v59 = vadd.f32 %v1760_v46, %v1593_v22  ;;  %3197 = vmatprep.subr.mxu1 %v9379_v24  ;;  %2942 = vmatpush1.msra.mxu0 %v9381_v58  ;;  %v9388_v22 = vld [vmem:[#allocation45_spill] sm:$0xff]  ;;  %v9392_v46 = vand.u32 4294901760, %v9391_v54  ;;  %v9396_v7 = vand.u32 4294901760, %v9395_v52  ;;  %v1968_v24 = vld [vmem:[#allocation8 + $0x2f8] sm:$0xff]  ;;  %v154_v58 = vrot.slane %v9399_v17, %v153_v34 }
 0x1ca   :  { %3199 = vmatpush1.msra.mxu1 %v9382_v62  ;;  %2946 = vmatprep.subr.mxu0 %v9384_v38  ;;  %v9404_v38 = vand.u32 4294901760, %v9306_v47  ;;  %v9411_v34 = vld [vmem:[#allocation65_spill] sm:$0xff] }
 0x1cb   :  { %3201 = vmatprep.subr.mxu1 %v9385_v10  ;;  %2950 = vmatpush1.msra.mxu0 %v9387_v16  ;;  %v7001_v10 = vand.u32 4294901760, %v1968_v24  ;;  %v1966_v16 = vld [vmem:[#allocation8 + $0x2e8] sm:$0xff]  ;;  %v9412_v47 = vld [vmem:[#allocation57_spill] sm:$0xff] }
 0x1cc   :  { %3203 = vmatpush1.msra.mxu1 %v9388_v22  ;;  %2954 = vmatprep.subr.mxu0 %v9389_v53  ;;  %v9408_v22 = vld [vmem:[#allocation62_spill] sm:$0xff]  ;;  %v9410_v53 = vand.u32 4294901760, %v9409_v13  ;;  %v9413_v54 = vand.u32 4294901760, %v9412_v47  ;;  %v9433_v47 = vld [vmem:[#allocation76_spill] sm:$0xff] }
 0x1cd   :  { %3205 = vmatprep.subr.mxu1 %v9295_v6  ;;  %2958 = vmatpush1.msra.mxu0 %v9392_v46  ;;  %v9398_v6 = vand.u32 4294901760, %v9397_v56  ;;  %v9414_v46 = vld [vmem:[#allocation68_spill] sm:$0xff]  ;;  %v7019_v52 = vsub.f32 %v1968_v24, %v7001_v10  ;;  %v9419_v56 = vld [vmem:[#allocation61_spill] sm:$0xff]  ;;  %v9429_v13 = vld [vmem:[#allocation74_spill] sm:$0xff] }
 0x1ce   :  { %3207 = vmatpush1.msra.mxu1 %v9297_v40  ;;  %2962 = vmatprep.subr.mxu0 %v9394_v42  ;;  %v9401_v40 = vand.u32 4294901760, %v9303_v60  ;;  %v9416_v42 = vand.u32 4294901760, %v9415_v5  ;;  %v1964_v24 = vld [vmem:[#allocation8 + $0x2d8] sm:$0xff] }
 0x1cf   :  { %3209 = vmatprep.subr.mxu1 %v9299_v9  ;;  %2966 = vmatpush1.msra.mxu0 %v9396_v7  ;;  %v1864_v45 = vpop.f32.mrf.mxu1  ;;  %v1967_v9 = vld [vmem:[#allocation8 + $0x2f0] sm:$0xff]  ;;  %9417 = vst [vmem:[#allocation36_spill] sm:$0xff] %v7019_v52  ;;  %v7021_v7 = vand.u32 4294901760, %v1966_v16 }
 0x1d0   :  { %3211 = vmatpush1.msra.mxu1 %v9301_v49  ;;  %2970 = vmatprep.subr.mxu0 %v9398_v6  ;;  %v6990_v62 = vadd.f32 %v1864_v45, %v1761_v59  ;;  %v9403_v49 = vld [vmem:[#allocation58_spill] sm:$0xff]  ;;  %v9405_v59 = vld [vmem:[#allocation60_spill] sm:$0xff]  ;;  %v7006_v60 = vand.u32 4294901760, %v1967_v9  ;;  %v9420_v6 = vand.u32 4294901760, %v9419_v56 }
 0x1d1   :  { %3213 = vmatprep.subr.mxu1 %v6146_v44  ;;  %2974 = vmatpush1.msra.mxu0 %v9401_v40  ;;  %v9407_v44 = vand.u32 4294901760, %v9406_v18  ;;  %v9418_v45 = vld [vmem:[#allocation70_spill] sm:$0xff]  ;;  %v9422_v40 = vld [vmem:[#allocation71_spill] sm:$0xff] }
 0x1d2   :  { %9400 = vst [vmem:[#allocation15_spill] sm:$0xff] %v6990_v62  ;;  %3215 = vmatpush1.msra.mxu1 %v9304_v26  ;;  %2978 = vmatprep.subr.mxu0 %v9402_v37  ;;  %v1120_v26 = vadd.f32 %v6868_v61, %v154_v58  ;;  %v1965_v61 = vld [vmem:[#allocation8 + $0x2e0] sm:$0xff]  ;;  %v7027_v17 = vsub.f32 %v1967_v9, %v7006_v60  ;;  %v9423_v37 = vld [vmem:[#allocation63_spill] sm:$0xff]  ;;  %v9430_v9 = vld [vmem:[#allocation66_spill] sm:$0xff] }
 0x1d3   :  { %3217 = vmatprep.subr.mxu1 %v9403_v49  ;;  %2982 = vmatpush1.msra.mxu0 %v9404_v38  ;;  %v9424_v49 = vand.u32 4294901760, %v9423_v37  ;;  %v9425_v38 = vld [vmem:[#allocation73_spill] sm:$0xff]  ;;  %v9468_v62 = vld [vmem:[#allocation92_spill] sm:$0xff] }
 0x1d4   :  { %3219 = vmatpush1.msra.mxu1 %v9405_v59  ;;  %2986 = vmatprep.subr.mxu0 %v9407_v44  ;;  %9421 = vst [vmem:[#allocation25_spill] sm:$0xff] %v7027_v17  ;;  %v1352_v58 = vadd.f32 %v6888_v21, %v1120_v26  ;;  %v9426_v59 = vld [vmem:[#allocation64_spill] sm:$0xff]  ;;  %v7036_v44 = vand.u32 4294901760, %v1965_v61  ;;  %v8685_v21 = vand.u32 4294901760, %v7019_v52  ;;  %v7043_v26 = vsub.f32 %v1966_v16, %v7021_v7 }
 0x1d5   :  { %3221 = vmatprep.subr.mxu1 %v9408_v22  ;;  %2990 = vmatpush1.msra.mxu0 %v9410_v53  ;;  %v9427_v18 = vand.u32 4294901760, %v9426_v59  ;;  %v1963_v22 = vld [vmem:[#allocation8 + $0x2d0] sm:$0xff]  ;;  %v9431_v53 = vand.u32 4294901760, %v9430_v9  ;;  %v8684_v5 = vand.u32 4294901760, %v7027_v17  ;;  %v9442_v59 = vld [vmem:[#allocation72_spill] sm:$0xff] }
 0x1d6   :  { %3223 = vmatpush1.msra.mxu1 %v9411_v34  ;;  %2994 = vmatprep.subr.mxu0 %v9413_v54  ;;  %9428 = vst [vmem:[#allocation18_spill] sm:$0xff] %v7036_v44  ;;  %9432 = vst [vmem:[#allocation22_spill] sm:$0xff] %v7043_v26  ;;  %v1962_v34 = vld [vmem:[#allocation8 + $0x2c8] sm:$0xff]  ;;  %v9434_v54 = vld [vmem:[#allocation67_spill] sm:$0xff]  ;;  %v1489_v56 = vadd.f32 %v6943_v15, %v1352_v58  ;;  %v7055_v16 = vand.u32 4294901760, %v1963_v22 }
 0x1d7   :  { %3225 = vmatprep.subr.mxu1 %v9414_v46  ;;  %2998 = vmatpush1.msra.mxu0 %v9416_v42  ;;  %v9435_v46 = vand.u32 4294901760, %v9434_v54  ;;  %v7049_v42 = vand.u32 4294901760, %v1964_v24  ;;  %v7063_v9 = vand.u32 4294901760, %v1962_v34  ;;  %v9446_v15 = vld [vmem:[#allocation82_spill] sm:$0xff]  ;;  %v9447_v58 = vld [vmem:[#allocation75_spill] sm:$0xff]  ;;  %v7071_v54 = vsub.f32 %v7019_v52, %v8685_v21  ;;  %v1762_v21 = vpop.f32.mrf.mxu0  ;;  %v1866_v52 = vpop.f32.mrf.mxu1 }
 0x1d8   :  { %3227 = vmatpush2.msra.mxu1 %v9418_v45  ;;  %3002 = vmatprep.subr.mxu0 %v9420_v6  ;;  %v1961_v45 = vld [vmem:[#allocation8 + $0x2c0] sm:$0xff]  ;;  %v9437_v6 = vld [vmem:[#allocation78_spill] sm:$0xff]  ;;  %9440 = vst [vmem:[#allocation19_spill] sm:$0xff] %v7055_v16 }
 0x1d9   :  { %3229 = vmatprep.subr.mxu1 %v9422_v40  ;;  %3006 = vmatpush1.msra.mxu0 %v9424_v49  ;;  %9436 = vst [vmem:[#allocation16_spill] sm:$0xff] %v7049_v42  ;;  %v9438_v40 = vld [vmem:[#allocation69_spill] sm:$0xff]  ;;  %v1960_v49 = vld [vmem:[#allocation8 + $0x2b8] sm:$0xff]  ;;  %9445 = vst [vmem:[#allocation20_spill] sm:$0xff] %v7063_v9 }
 0x1da   :  { %3231 = vmatpush2.msra.mxu1 %v9425_v38  ;;  %3010 = vmatprep.subr.mxu0 %v9427_v18  ;;  %v9439_v37 = vand.u32 4294901760, %v9438_v40  ;;  %v9441_v38 = vld [vmem:[#allocation80_spill] sm:$0xff]  ;;  %v9443_v18 = vand.u32 4294901760, %v9442_v59  ;;  %v1958_v40 = vld [vmem:[#allocation8 + $0x2a8] sm:$0xff]  ;;  %v7085_v59 = vsub.f32 %v1964_v24, %v7049_v42  ;;  %v9459_v24 = vld [vmem:[#allocation81_spill] sm:$0xff] }
 0x1db   :  { %3233 = vmatprep.subr.mxu1 %v9429_v13  ;;  %3014 = vmatpush1.msra.mxu0 %v9431_v53  ;;  %v7061_v13 = vsub.f32 %v1965_v61, %v7036_v44  ;;  %v1959_v53 = vld [vmem:[#allocation8 + $0x2b0] sm:$0xff]  ;;  %v9450_v61 = vld [vmem:[#allocation77_spill] sm:$0xff]  ;;  %v9460_v19 = vand.u32 4294901760, %v9459_v24 }
 0x1dc   :  { %3235 = vmatpush2.msra.mxu1 %v9433_v47  ;;  %3018 = vmatprep.subr.mxu0 %v9435_v46  ;;  %v9448_v47 = vand.u32 4294901760, %v9447_v58  ;;  %9452 = vst [vmem:[#allocation24_spill] sm:$0xff] %v7085_v59  ;;  %v1595_v58 = vadd.f32 %v6978_v31, %v1489_v56  ;;  %v9458_v46 = vld [vmem:[#allocation88_spill] sm:$0xff]  ;;  %v7103_v31 = vsub.f32 %v1962_v34, %v7063_v9  ;;  %v1955_v56 = vld [vmem:[#allocation8 + $0x290] sm:$0xff] }
 0x1dd   :  { %3237 = vmatprep.subr.mxu1 %v9437_v6  ;;  %3022 = vmatpush1.msra.mxu0 %v9439_v37  ;;  %9444 = vst [vmem:[#allocation21_spill] sm:$0xff] %v7061_v13  ;;  %v7074_v6 = vand.u32 4294901760, %v1961_v45  ;;  %v9451_v37 = vand.u32 4294901760, %v9450_v61  ;;  %v7094_v61 = vsub.f32 %v1963_v22, %v7055_v16  ;;  %v9463_v22 = vld [vmem:[#allocation83_spill] sm:$0xff] }
 0x1de   :  { %3239 = vmatpush2.msra.mxu1 %v9441_v38  ;;  %3026 = vmatprep.subr.mxu0 %v9443_v18  ;;  %v7082_v38 = vsub.f32 %v7027_v17, %v8684_v5  ;;  %v7087_v18 = vand.u32 4294901760, %v1960_v49  ;;  %v1956_v5 = vld [vmem:[#allocation8 + $0x298] sm:$0xff]  ;;  %9461 = vst [vmem:[#allocation49_spill] sm:$0xff] %v7103_v31  ;;  %v1954_v17 = vld [vmem:[#allocation8 + $0x288] sm:$0xff]  ;;  %v9474_v16 = vld [vmem:[#allocation87_spill] sm:$0xff] }
 0x1df   :  { %3241 = vmatprep.subr.mxu1 %v9446_v15  ;;  %3030 = vmatpush2.msra.mxu0 %v9448_v47  ;;  %9449 = vst [vmem:[#allocation23_spill] sm:$0xff] %v7074_v6  ;;  %v1957_v15 = vld [vmem:[#allocation8 + $0x2a0] sm:$0xff]  ;;  %v9454_v47 = vld [vmem:[#allocation79_spill] sm:$0xff]  ;;  %9456 = vst [vmem:[#allocation42_spill] sm:$0xff] %v7094_v61  ;;  %v9475_v42 = vand.u32 4294901760, %v9474_v16 }
 0x1e0   :  { %3243 = vmatpush2.msra.mxu1 %v9325_v4  ;;  %3034 = vmatprep.subr.mxu0 %v9451_v37  ;;  %9453 = vst [vmem:[#allocation29_spill] sm:$0xff] %v7087_v18  ;;  %v9455_v4 = vand.u32 4294901760, %v9454_v47  ;;  %v7096_v37 = vand.u32 4294901760, %v1959_v53  ;;  %v9464_v47 = vand.u32 4294901760, %v9463_v22  ;;  %v7119_v34 = vand.u32 4294901760, %v1957_v15 }
 0x1e1   :  { %3245 = vmatprep.subr.mxu1 %v9327_v28  ;;  %v7105_v28 = vand.u32 4294901760, %v1958_v40 }
 0x1e2   :  { %3038 = vmatpush2.msra.mxu0 %v9455_v4  ;;  %9457 = vst [vmem:[#allocation47_spill] sm:$0xff] %v7096_v37  ;;  %3247 = vmatpush2.msra.mxu1 %v9458_v46  ;;  %v9465_v46 = vand.u32 4294901760, %v7043_v26  ;;  %9467 = vst [vmem:[#allocation48_spill] sm:$0xff] %v7119_v34  ;;  %v7127_v4 = vsub.f32 %v1960_v49, %v7087_v18  ;;  %v9478_v49 = vld [vmem:[#allocation89_spill] sm:$0xff] }
 0x1e3   :  { %3042 = vmatprep.subr.mxu0 %v9460_v19  ;;  %9462 = vst [vmem:[#allocation51_spill] sm:$0xff] %v7105_v28  ;;  %3249 = vmatprep.subr.mxu1 %v9331_v8  ;;  %v7117_v19 = vsub.f32 %v1961_v45, %v7074_v6  ;;  %v9469_v8 = vld [vmem:[#allocation85_spill] sm:$0xff]  ;;  %v9473_v6 = vld [vmem:[#allocation94_spill] sm:$0xff]  ;;  %v9479_v22 = vand.u32 4294901760, %v9478_v49 }
 0x1e4   :  { %3046 = vmatpush2.msra.mxu0 %v9464_v47  ;;  %v7114_v24 = vsub.f32 %v7043_v26, %v9465_v46  ;;  %3251 = vmatpush2.msra.mxu1 %v9468_v62  ;;  %v9470_v9 = vand.u32 4294901760, %v9469_v8  ;;  %9471 = vst [vmem:[#allocation56_spill] sm:$0xff] %v7127_v4  ;;  %v7129_v46 = vand.u32 4294901760, %v1956_v5  ;;  %v1953_v45 = vld [vmem:[#allocation8 + $0x280] sm:$0xff]  ;;  %v1763_v26 = vadd.f32 %v1762_v21, %v1595_v58 }
 0x1e5   :  { %9466 = vst [vmem:[#allocation53_spill] sm:$0xff] %v7117_v19  ;;  %3253 = vmatprep.subr.mxu1 %v9473_v6  ;;  %v7138_v8 = vand.u32 4294901760, %v1955_v56  ;;  %v9480_v47 = vand.u32 4294901760, %v7061_v13  ;;  %v7152_v6 = vand.u32 4294901760, %v1954_v17  ;;  %v7163_v62 = vand.u32 4294901760, %v1953_v45 }
 0x1e6   :  { %3050 = vmatprep.subr.mxu0 %v9470_v9  ;;  %9472 = vst [vmem:[#allocation50_spill] sm:$0xff] %v7129_v46  ;;  %v7136_v9 = vsub.f32 %v1959_v53, %v7096_v37  ;;  %3255 = vmatpush2.msra.mxu1 %v6476_v50  ;;  %v1952_v53 = vld [vmem:[#allocation8 + $0x278] sm:$0xff]  ;;  %v7154_v58 = vadd.f32 %v1866_v52, %v1763_v26  ;;  %v9483_v50 = vld [vmem:[#allocation91_spill] sm:$0xff]  ;;  %v9489_v26 = vand.u32 4294901760, %v7085_v59 }
 0x1e7   :  { %3054 = vmatpush2.msra.mxu0 %v9475_v42  ;;  %9477 = vst [vmem:[#allocation84_spill] sm:$0xff] %v7138_v8  ;;  %v7146_v21 = vsub.f32 %v7061_v13, %v9480_v47  ;;  %v7150_v42 = vsub.f32 %v1958_v40, %v7105_v28  ;;  %9482 = vst [vmem:[#allocation90_spill] sm:$0xff] %v7152_v6  ;;  %3257 = vmatprep.subr.mxu1 %v9337_v3  ;;  %v9484_v49 = vand.u32 4294901760, %v9483_v50  ;;  %v9487_v40 = vld [vmem:[#allocation93_spill] sm:$0xff]  ;;  %v1951_v50 = vld [vmem:[#allocation8 + $0x270] sm:$0xff] }
 0x1e8   :  { %9476 = vst [vmem:[#allocation52_spill] sm:$0xff] %v7136_v9  ;;  %3058 = vmatprep.subr.mxu0 %v9479_v22  ;;  %v7161_v47 = vsub.f32 %v1957_v15, %v7119_v34  ;;  %9486 = vst [vmem:[#allocation95_spill] sm:$0xff] %v7163_v62  ;;  %3259 = vmatpush2.msra.mxu1 %v6539_v51  ;;  %v9488_v16 = vand.u32 4294901760, %v9487_v40  ;;  %v7172_v3 = vsub.f32 %v7085_v59, %v9489_v26  ;;  %v9491_v15 = vld [vmem:[#allocation101_spill] sm:$0xff]  ;;  %v9524_v59 = vld [vmem:[#allocation106_spill] sm:$0xff] }
 0x1e9   :  { %9481 = vst [vmem:[#allocation86_spill] sm:$0xff] %v7150_v42  ;;  %3062 = vmatpush2.msra.mxu0 %v9484_v49  ;;  %v7176_v49 = vsub.f32 %v1956_v5, %v7129_v46  ;;  %3261 = vmatprep.subr.mxu1 %v9491_v15  ;;  %v9492_v22 = vand.u32 4294901760, %v9340_v1  ;;  %v9493_v51 = vand.u32 4294901760, %v7094_v61  ;;  %v7188_v26 = vsub.f32 %v1955_v56, %v7138_v8  ;;  %v9528_v13 = vld [vmem:[#allocation111_spill] sm:$0xff] }
 0x1ea   :  { %9485 = vst [vmem:[#allocation99_spill] sm:$0xff] %v7161_v47  ;;  %3066 = vmatprep.subr.mxu0 %v9488_v16  ;;  %v7190_v52 = vand.u32 4294901760, %v1952_v53  ;;  %3263 = vmatpush2.msra.mxu1 %v6565_v20  ;;  %v9496_v5 = vand.u32 4294901760, %v9341_v32  ;;  %v7203_v56 = vsub.f32 %v1954_v17, %v7152_v6  ;;  %v1872_v40 = vmax.f32 %v7154_v58, 0.0  ;;  %v9499_v20 = vld [vmem:[#allocation97_spill] sm:$0xff]  ;;  %v9503_v17 = vld [vmem:[#allocation98_spill] sm:$0xff] }
 0x1eb   :  { %9490 = vst [vmem:[#allocation96_spill] sm:$0xff] %v7176_v49  ;;  %3070 = vmatpush2.msra.mxu0 %v9492_v22  ;;  %v7184_v16 = vsub.f32 %v7094_v61, %v9493_v51  ;;  %9494 = vst [vmem:[#allocation100_spill] sm:$0xff] %v7188_v26  ;;  %v9497_v22 = vand.u32 4294901760, %v7103_v31  ;;  %3265 = vmatprep.subr.mxu1 %v6575_v55  ;;  %v9500_v61 = vand.u32 4294901760, %v9499_v20  ;;  %v9501_v32 = vand.u32 4294901760, %v7117_v19  ;;  %v1950_v51 = vld [vmem:[#allocation8 + $0x268] sm:$0xff] }
 0x1ec   :  { %9495 = vst [vmem:[#allocation102_spill] sm:$0xff] %v7190_v52  ;;  %3074 = vmatprep.subr.mxu0 %v9496_v5  ;;  %9498 = vst [vmem:[#allocation103_spill] sm:$0xff] %v7203_v56  ;;  %v7216_v1 = vsub.f32 %v1953_v45, %v7163_v62  ;;  %3267 = vmatpush2.msra.mxu1 %v6587_v35  ;;  %v9504_v58 = vand.u32 4294901760, %v9503_v17  ;;  %v9508_v45 = vand.u32 4294901760, %v9344_v11  ;;  %v9509_v17 = vand.u32 4294901760, %v7136_v9  ;;  %v1948_v55 = vld [vmem:[#allocation8 + $0x258] sm:$0xff] }
 0x1ed   :  { %v7199_v15 = vsub.f32 %v7103_v31, %v9497_v22  ;;  %3078 = vmatpush2.msra.mxu0 %v9500_v61  ;;  %v7212_v5 = vsub.f32 %v7117_v19, %v9501_v32  ;;  %v9505_v61 = vand.u32 4294901760, %v7127_v4  ;;  %v7228_v19 = vand.u32 4294901760, %v1951_v50  ;;  %v9507_v22 = vld [vmem:[#allocation105_spill] sm:$0xff] }
 0x1ee   :  { %9502 = vst [vmem:[#allocation116_spill] sm:$0xff] %v7216_v1  ;;  %3082 = vmatprep.subr.mxu0 %v9504_v58  ;;  %3269 = vmatprep.subr.mxu1 %v9507_v22  ;;  %v7237_v58 = vsub.f32 %v7136_v9, %v9509_v17  ;;  %v1949_v32 = vld [vmem:[#allocation8 + $0x260] sm:$0xff]  ;;  %v9512_v22 = vand.u32 4294901760, %v9345_v2  ;;  %v7253_v9 = vand.u32 4294901760, %v1950_v51  ;;  %v1947_v17 = vld [vmem:[#allocation8 + $0x250] sm:$0xff] }
 0x1ef   :  { %v7225_v20 = vsub.f32 %v7127_v4, %v9505_v61  ;;  %9506 = vst [vmem:[#allocation38_spill] sm:$0xff] %v7228_v19  ;;  %3086 = vmatpush2.msra.mxu0 %v9508_v45  ;;  %v7241_v61 = vsub.f32 %v1952_v53, %v7190_v52  ;;  %v9511_v4 = vld [vmem:[#allocation107_spill] sm:$0xff]  ;;  %v9513_v45 = vand.u32 4294901760, %v7150_v42  ;;  %v7255_v53 = vand.u32 4294901760, %v1872_v40 }
 0x1f0   :  { %3271 = vmatpush2.msra.mxu1 %v9511_v4  ;;  %3090 = vmatprep.subr.mxu0 %v9512_v22  ;;  %9514 = vst [vmem:[#allocation114_spill] sm:$0xff] %v7253_v9  ;;  %v9516_v4 = vand.u32 4294901760, %v9346_v43  ;;  %v9517_v22 = vand.u32 4294901760, %v7161_v47  ;;  %v9520_v43 = vand.u32 4294901760, %v7176_v49  ;;  %v7277_v2 = vsub.f32 %v1951_v50, %v7228_v19  ;;  %v1945_v50 = vld [vmem:[#allocation8 + $0x240] sm:$0xff] }
 0x1f1   :  { %9510 = vst [vmem:[#allocation113_spill] sm:$0xff] %v7241_v61  ;;  %v7250_v35 = vsub.f32 %v7150_v42, %v9513_v45  ;;  %9515 = vst [vmem:[#allocation115_spill] sm:$0xff] %v7255_v53  ;;  %3273 = vmatprep.subr.mxu1 %v6619_v63  ;;  %v9518_v42 = vld [vmem:[#allocation104_spill] sm:$0xff]  ;;  %v9523_v45 = vld [vmem:[#allocation109_spill] sm:$0xff]  ;;  %v9529_v19 = vand.u32 4294901760, %v6617_v0  ;;  %v9533_v0 = vand.u32 4294901760, %v6625_v33 }
 0x1f2   :  { %3094 = vmatpush2.msra.mxu0 %v9516_v4  ;;  %v7264_v11 = vsub.f32 %v7161_v47, %v9517_v22  ;;  %3275 = vmatpush2.msra.mxu1 %v6627_v12  ;;  %v9519_v31 = vand.u32 4294901760, %v9518_v42  ;;  %v7274_v4 = vsub.f32 %v7176_v49, %v9520_v43  ;;  %9521 = vst [vmem:[#allocation117_spill] sm:$0xff] %v7277_v2  ;;  %v7279_v22 = vand.u32 4294901760, %v1949_v32  ;;  %v1946_v47 = vld [vmem:[#allocation8 + $0x248] sm:$0xff]  ;;  %v1944_v43 = vld [vmem:[#allocation8 + $0x238] sm:$0xff]  ;;  %v1941_v33 = vld [vmem:[#allocation8 + $0x220] sm:$0xff] }
 0x1f3   :  { %3277 = vmatprep.subr.mxu1 %v9523_v45  ;;  %v9525_v12 = vand.u32 4294901760, %v9524_v59  ;;  %v9526_v42 = vand.u32 4294901760, %v7188_v26  ;;  %v7291_v49 = vand.u32 4294901760, %v1948_v55  ;;  %v9530_v45 = vand.u32 4294901760, %v7203_v56  ;;  %v1943_v59 = vld [vmem:[#allocation8 + $0x230] sm:$0xff] }
 0x1f4   :  { %3098 = vmatprep.subr.mxu0 %v9519_v31  ;;  %9522 = vst [vmem:[#allocation118_spill] sm:$0xff] %v7279_v22  ;;  %3279 = vmatpush2.msra.mxu1 %v9528_v13  ;;  %v7305_v31 = vand.u32 4294901760, %v1947_v17  ;;  %v7329_v13 = vand.u32 4294901760, %v1945_v50  ;;  %v9555_v52 = vand.u32 4294901760, %v7277_v2 }
 0x1f5   :  { %3102 = vmatpush2.msra.mxu0 %v9525_v12  ;;  %v7288_v63 = vsub.f32 %v7188_v26, %v9526_v42  ;;  %9527 = vst [vmem:[#allocation119_spill] sm:$0xff] %v7291_v49  ;;  %v7300_v12 = vsub.f32 %v7203_v56, %v9530_v45  ;;  %v7303_v42 = vsub.f32 %v1950_v51, %v7253_v9  ;;  %v7319_v51 = vand.u32 4294901760, %v1946_v47  ;;  %v9536_v56 = vld [vmem:[#allocation108_spill] sm:$0xff]  ;;  %v1942_v9 = vld [vmem:[#allocation8 + $0x228] sm:$0xff] }
 0x1f6   :  { %3106 = vmatprep.subr.mxu0 %v9529_v19  ;;  %9532 = vst [vmem:[#allocation17_spill] sm:$0xff] %v7305_v31  ;;  %v7308_v26 = vsub.f32 %v1872_v40, %v7255_v53  ;;  %3281 = vmatprep.subr.mxu1 %v6653_v30  ;;  %v9534_v19 = vand.u32 4294901760, %v7216_v1  ;;  %v9537_v40 = vand.u32 4294901760, %v9536_v56  ;;  %9539 = vst [vmem:[#allocation40_spill] sm:$0xff] %v7329_v13  ;;  %v9542_v56 = vand.u32 4294901760, %v7241_v61 }
 0x1f7   :  { %9531 = vst [vmem:[#allocation120_spill] sm:$0xff] %v7303_v42  ;;  %3110 = vmatpush2.msra.mxu0 %v9533_v0  ;;  %9535 = vst [vmem:[#allocation39_spill] sm:$0xff] %v7319_v51  ;;  %3283 = vmatpush2.msra.mxu1 %v6663_v23  ;;  %v7327_v0 = vsub.f32 %v1949_v32, %v7279_v22  ;;  %v7341_v30 = vsub.f32 %v1948_v55, %v7291_v49  ;;  %v7343_v32 = vand.u32 4294901760, %v1944_v43  ;;  %v9545_v22 = vld [vmem:[#allocation112_spill] sm:$0xff]  ;;  %v9549_v55 = vld [vmem:[#allocation123_spill] sm:$0xff] }
 0x1f8   :  { %v7317_v45 = vsub.f32 %v7216_v1, %v9534_v19  ;;  %3114 = vmatprep.subr.mxu0 %v9537_v40  ;;  %3285 = vmatprep.subr.mxu1 %v6673_v25  ;;  %v9540_v19 = vld [vmem:[#allocation110_spill] sm:$0xff]  ;;  %v7338_v40 = vsub.f32 %v7241_v61, %v9542_v56  ;;  %v9546_v25 = vand.u32 4294901760, %v9545_v22  ;;  %v7351_v23 = vsub.f32 %v1947_v17, %v7305_v31  ;;  %v1940_v61 = vld [vmem:[#allocation8 + $0x218] sm:$0xff] }
 0x1f9   :  { %9538 = vst [vmem:[#allocation32_spill] sm:$0xff] %v7327_v0  ;;  %v9541_v1 = vand.u32 4294901760, %v9540_v19  ;;  %9543 = vst [vmem:[#allocation30_spill] sm:$0xff] %v7341_v30  ;;  %3287 = vmatpush2.msra.mxu1 %v9350_v14  ;;  %v7353_v56 = vand.u32 4294901760, %v1943_v59  ;;  %v9550_v49 = vand.u32 4294901760, %v7071_v54  ;;  %v1939_v19 = vld [vmem:[#allocation8 + $0x210] sm:$0xff]  ;;  %v7372_v54 = vsub.f32 %v7277_v2, %v9555_v52 }
 0x1fa   :  { %9544 = vst [vmem:[#allocation27_spill] sm:$0xff] %v7343_v32  ;;  %9547 = vst [vmem:[#allocation26_spill] sm:$0xff] %v7351_v23  ;;  %3291 = vmatmul.mubr.f32.vlgmr.msra.gmra.mxu1 %v9549_v55  ;;  %v9553_v17 = vand.u32 4294901760, %v9354_v57  ;;  %v9554_v31 = vand.u32 4294901760, %v7082_v38  ;;  %v7376_v22 = vsub.f32 %v1945_v50, %v7329_v13  ;;  %v1938_v14 = vld [vmem:[#allocation8 + $0x208] sm:$0xff]  ;;  %v9558_v57 = vand.u32 4294901760, %v9355_v36 }
 0x1fb   :  { %3118 = vmatpush2.msra.mxu0 %v9541_v1  ;;  %9548 = vst [vmem:[#allocation41_spill] sm:$0xff] %v7353_v56  ;;  %3447 = vmatprep.subr.mxu1 %v9550_v49  ;;  %v7363_v1 = vand.u32 4294901760, %v1942_v9  ;;  %v7386_v52 = vsub.f32 %v1944_v43, %v7343_v32  ;;  %v1937_v49 = vld [vmem:[#allocation8 + $0x200] sm:$0xff]  ;;  %v9561_v50 = vand.u32 4294901760, %v7114_v24  ;;  %v9562_v2 = vand.u32 4294901760, %v9356_v48 }
 0x1fc   :  { %3122 = vmatprep.subr.mxu0 %v9546_v25  ;;  %v7361_v25 = vsub.f32 %v1946_v47, %v7319_v51  ;;  %3453 = vmatpush1.msra.mxu1 %v9554_v31  ;;  %9556 = vst [vmem:[#allocation34_spill] sm:$0xff] %v7376_v22  ;;  %v7378_v47 = vand.u32 4294901760, %v1941_v33  ;;  %v7401_v38 = vsub.f32 %v1943_v59, %v7353_v56  ;;  %v7403_v43 = vand.u32 4294901760, %v1939_v19 }
 0x1fd   :  { %9552 = vst [vmem:[#allocation33_spill] sm:$0xff] %v7363_v1  ;;  %3126 = vmatpush2.msra.mxu0 %v9553_v17  ;;  %3827 = vmatprep.mubr.f32.mxu1 %v7255_v53  ;;  %9559 = vst [vmem:[#allocation35_spill] sm:$0xff] %v7386_v52  ;;  %v7388_v17 = vand.u32 4294901760, %v1940_v61  ;;  %v9563_v53 = vand.u32 4294901760, %v7303_v42  ;;  %v9566_v31 = vand.u32 4294901760, %v7146_v21  ;;  %v9567_v24 = vand.u32 4294901760, %v9357_v27 }
 0x1fe   :  { %9551 = vst [vmem:[#allocation31_spill] sm:$0xff] %v7361_v25  ;;  %9557 = vst [vmem:[#allocation43_spill] sm:$0xff] %v7378_v47  ;;  %3130 = vmatprep.subr.mxu0 %v9558_v57  ;;  %3459 = vmatprep.subr.mxu1 %v9561_v50  ;;  %v9568_v48 = vand.u32 4294901760, %v7308_v26  ;;  %v7414_v50 = vsub.f32 %v1942_v9, %v7363_v1  ;;  %v7416_v57 = vand.u32 4294901760, %v1938_v14  ;;  %v9571_v59 = vand.u32 4294901760, %v7172_v3 }
 0x1ff   :  { %9560 = vst [vmem:[#allocation45_spill] sm:$0xff] %v7388_v17  ;;  %3134 = vmatpush2.msra.mxu0 %v9562_v2  ;;  %v7397_v36 = vsub.f32 %v7303_v42, %v9563_v53  ;;  %9564 = vst [vmem:[#allocation37_spill] sm:$0xff] %v7401_v38  ;;  %3465 = vmatpush1.msra.mxu1 %v9566_v31  ;;  %v9572_v21 = vand.u32 4294901760, %v9358_v41  ;;  %v9573_v27 = vand.u32 4294901760, %v7327_v0  ;;  %v7431_v9 = vand.u32 4294901760, %v1937_v49 }
 0x200   :  { %9565 = vst [vmem:[#allocation28_spill] sm:$0xff] %v7403_v43  ;;  %3138 = vmatprep.subr.mxu0 %v9567_v24  ;;  %v3428_v2 = vsub.f32 %v7308_v26, %v9568_v48  ;;  %9569 = vst [vmem:[#allocation44_spill] sm:$0xff] %v7414_v50  ;;  %3471 = vmatprep.subr.mxu1 %v9571_v59  ;;  %v7429_v48 = vsub.f32 %v1941_v33, %v7378_v47  ;;  %v9576_v53 = vand.u32 4294901760, %v7184_v16 }
 0x201   :  { %9570 = vst [vmem:[#allocation46_spill] sm:$0xff] %v7416_v57  ;;  %3142 = vmatpush2.msra.mxu0 %v9572_v21  ;;  %v7425_v31 = vsub.f32 %v7327_v0, %v9573_v27  ;;  %9575 = vst [vmem:[#allocation58_spill] sm:$0xff] %v7431_v9  ;;  %v9577_v3 = vand.u32 4294901760, %v9359_v29  ;;  %v9578_v59 = vand.u32 4294901760, %v7341_v30  ;;  %v7445_v33 = vsub.f32 %v1940_v61, %v7388_v17  ;;  %v2000_v61 = vld [vmem:[#allocation8 + $0x3f8] sm:$0xff]  ;;  %v1999_v29 = vld [vmem:[#allocation8 + $0x3f0] sm:$0xff] }
 0x202   :  { %9574 = vst [vmem:[#allocation122_spill] sm:$0xff] %v7429_v48  ;;  %3477 = vmatpush1.msra.mxu1 %v9576_v53  ;;  %v9580_v24 = vand.u32 4294901760, %v7199_v15  ;;  %v9581_v16 = vand.u32 4294901760, %v9360_v39  ;;  %v9582_v53 = vand.u32 4294901760, %v7351_v23  ;;  %v7459_v41 = vsub.f32 %v1939_v19, %v7403_v43  ;;  %v9603_v0 = vld [vmem:[#allocation19_spill] sm:$0xff] }
 0x203   :  { %3146 = vmatprep.subr.mxu0 %v9577_v3  ;;  %v7441_v21 = vsub.f32 %v7341_v30, %v9578_v59  ;;  %9579 = vst [vmem:[#allocation60_spill] sm:$0xff] %v7445_v33  ;;  %v9584_v27 = vand.u32 4294901760, %v7212_v5  ;;  %v3429_v39 = vand.u32 4294901760, %v3428_v2  ;;  %v9585_v15 = vand.u32 4294901760, %v7361_v25  ;;  %v1997_v59 = vld [vmem:[#allocation8 + $0x3e0] sm:$0xff]  ;;  %v1996_v5 = vld [vmem:[#allocation8 + $0x3d8] sm:$0xff] }
 0x204   :  { %3483 = vmatprep.subr.mxu1 %v9580_v24  ;;  %3150 = vmatpush2.msra.mxu0 %v9581_v16  ;;  %v7455_v3 = vsub.f32 %v7351_v23, %v9582_v53  ;;  %9583 = vst [vmem:[#allocation54_spill] sm:$0xff] %v7459_v41  ;;  %v7471_v53 = vsub.f32 %v1938_v14, %v7416_v57  ;;  %v9587_v19 = vand.u32 4294901760, %v7225_v20  ;;  %v1998_v14 = vld [vmem:[#allocation8 + $0x3e8] sm:$0xff]  ;;  %v9590_v20 = vand.u32 4294901760, %v7386_v52  ;;  %v9599_v23 = vld [vmem:[#allocation16_spill] sm:$0xff] }
 0x205   :  { %3489 = vmatpush1.msra.mxu1 %v9584_v27  ;;  %3154 = vmatmul.mubr.f32.vlgmr.msra.gmra.mxu0 %v9549_v55  ;;  %v7467_v24 = vsub.f32 %v7361_v25, %v9585_v15  ;;  %v9588_v55 = vand.u32 4294901760, %v7376_v22  ;;  %v7484_v15 = vsub.f32 %v1937_v49, %v7431_v9  ;;  %v9592_v27 = vand.u32 4294901760, %v7237_v58 }
 0x206   :  { %9586 = vst [vmem:[#allocation62_spill] sm:$0xff] %v7471_v53  ;;  %3298 = vmatprep.subr.mxu0 %v7001_v10  ;;  %3495 = vmatprep.subr.mxu1 %v9587_v19  ;;  %v7491_v19 = vsub.f32 %v7386_v52, %v9590_v20  ;;  %v7506_v52 = vand.u32 4294901760, %v1999_v29  ;;  %v1995_v20 = vld [vmem:[#allocation8 + $0x3d0] sm:$0xff]  ;;  %v9598_v25 = vand.u32 4294901760, %v7264_v11  ;;  %v9602_v30 = vand.u32 4294901760, %v7274_v4  ;;  %v9608_v4 = vld [vmem:[#allocation20_spill] sm:$0xff] }
 0x207   :  { %v7480_v2 = vsub.f32 %v7376_v22, %v9588_v55  ;;  %9589 = vst [vmem:[#allocation55_spill] sm:$0xff] %v7484_v15  ;;  %3300 = vmatpush1.msra.mxu0 %v7006_v60  ;;  %3430 = vmatprep.mubr.f32.mxu0 %v3429_v39  ;;  %v7494_v55 = vand.u32 4294901760, %v2000_v61  ;;  %v9593_v39 = vand.u32 4294901760, %v7401_v38  ;;  %v9595_v22 = vand.u32 4294901760, %v7250_v35 }
 0x208   :  { %3501 = vmatpush1.msra.mxu1 %v9592_v27  ;;  %3302 = vmatprep.subr.mxu0 %v7021_v7  ;;  %9594 = vst [vmem:[#allocation57_spill] sm:$0xff] %v7506_v52  ;;  %v9596_v27 = vand.u32 4294901760, %v7414_v50  ;;  %v9607_v42 = vand.u32 4294901760, %v7288_v63  ;;  %v9609_v11 = vand.u32 4294901760, %v7459_v41  ;;  %v9613_v63 = vld [vmem:[#allocation23_spill] sm:$0xff] }
 0x209   :  { %9591 = vst [vmem:[#allocation65_spill] sm:$0xff] %v7494_v55  ;;  %v7503_v16 = vsub.f32 %v7401_v38, %v9593_v39  ;;  %3507 = vmatprep.subr.mxu1 %v9595_v22  ;;  %3304 = vmatpush1.msra.mxu0 %v7036_v44  ;;  %v7518_v38 = vand.u32 4294901760, %v1998_v14  ;;  %v9600_v22 = vand.u32 4294901760, %v7429_v48  ;;  %v1994_v39 = vld [vmem:[#allocation8 + $0x3c8] sm:$0xff]  ;;  %v9617_v44 = vand.u32 4294901760, %v7317_v45  ;;  %v1988_v45 = vld [vmem:[#allocation8 + $0x398] sm:$0xff] }
 0x20a   :  { %v7515_v49 = vsub.f32 %v7414_v50, %v9596_v27  ;;  %3513 = vmatpush1.msra.mxu1 %v9598_v25  ;;  %3306 = vmatprep.subr.mxu0 %v9599_v23  ;;  %v7530_v50 = vand.u32 4294901760, %v1997_v59  ;;  %v9604_v25 = vand.u32 4294901760, %v7445_v33  ;;  %v1993_v27 = vld [vmem:[#allocation8 + $0x3c0] sm:$0xff]  ;;  %v9612_v23 = vand.u32 4294901760, %v7300_v12 }
 0x20b   :  { %9597 = vst [vmem:[#allocation68_spill] sm:$0xff] %v7518_v38  ;;  %v7527_v58 = vsub.f32 %v7429_v48, %v9600_v22  ;;  %3519 = vmatprep.subr.mxu1 %v9602_v30  ;;  %3308 = vmatpush1.msra.mxu0 %v9603_v0  ;;  %v7542_v22 = vsub.f32 %v2000_v61, %v7494_v55  ;;  %v7544_v48 = vand.u32 4294901760, %v1996_v5  ;;  %v7558_v61 = vand.u32 4294901760, %v1995_v20 }
 0x20c   :  { %9601 = vst [vmem:[#allocation59_spill] sm:$0xff] %v7530_v50  ;;  %v7539_v35 = vsub.f32 %v7445_v33, %v9604_v25  ;;  %3525 = vmatpush1.msra.mxu1 %v9607_v42  ;;  %3310 = vmatprep.subr.mxu0 %v9608_v4  ;;  %v7553_v0 = vsub.f32 %v7459_v41, %v9609_v11  ;;  %v1992_v33 = vld [vmem:[#allocation8 + $0x3b8] sm:$0xff]  ;;  %v9614_v30 = vand.u32 4294901760, %v7471_v53  ;;  %v1991_v41 = vld [vmem:[#allocation8 + $0x3b0] sm:$0xff] }
 0x20d   :  { %9605 = vst [vmem:[#allocation70_spill] sm:$0xff] %v7542_v22  ;;  %9606 = vst [vmem:[#allocation61_spill] sm:$0xff] %v7544_v48  ;;  %v7556_v25 = vsub.f32 %v1999_v29, %v7506_v52  ;;  %3531 = vmatprep.subr.mxu1 %v9612_v23  ;;  %3312 = vmatpush1.msra.mxu0 %v9613_v63  ;;  %v7570_v11 = vsub.f32 %v1998_v14, %v7518_v38  ;;  %v7572_v29 = vand.u32 4294901760, %v1994_v39 }
 0x20e   :  { %9611 = vst [vmem:[#allocation63_spill] sm:$0xff] %v7558_v61  ;;  %v7567_v4 = vsub.f32 %v7471_v53, %v9614_v30  ;;  %3537 = vmatpush1.msra.mxu1 %v9617_v44  ;;  %3314 = vmatprep.subr.mxu0 %v7087_v18  ;;  %v9618_v23 = vand.u32 4294901760, %v7484_v15  ;;  %v7584_v30 = vsub.f32 %v1997_v59, %v7530_v50  ;;  %v7586_v14 = vand.u32 4294901760, %v1993_v27  ;;  %v1990_v53 = vld [vmem:[#allocation8 + $0x3a8] sm:$0xff] }
 0x20f   :  { %9610 = vst [vmem:[#allocation71_spill] sm:$0xff] %v7556_v25  ;;  %9615 = vst [vmem:[#allocation73_spill] sm:$0xff] %v7570_v11  ;;  %v9621_v63 = vand.u32 4294901760, %v7338_v40  ;;  %3316 = vmatpush1.msra.mxu0 %v7096_v37  ;;  %v7594_v12 = vsub.f32 %v1996_v5, %v7544_v48  ;;  %v9624_v59 = vand.u32 4294901760, %v7372_v54  ;;  %v7604_v37 = vsub.f32 %v1995_v20, %v7558_v61 }
 0x210   :  { %9616 = vst [vmem:[#allocation64_spill] sm:$0xff] %v7572_v29  ;;  %v7581_v42 = vsub.f32 %v7484_v15, %v9618_v23  ;;  %9619 = vst [vmem:[#allocation74_spill] sm:$0xff] %v7584_v30  ;;  %v7596_v23 = vand.u32 4294901760, %v1992_v33  ;;  %v1989_v15 = vld [vmem:[#allocation8 + $0x3a0] sm:$0xff]  ;;  %3318 = vmatprep.subr.mxu0 %v7105_v28  ;;  %v7606_v44 = vand.u32 4294901760, %v1991_v41  ;;  %v9627_v5 = vand.u32 4294901760, %v7397_v36 }
 0x211   :  { %9620 = vst [vmem:[#allocation66_spill] sm:$0xff] %v7586_v14  ;;  %3543 = vmatprep.subr.mxu1 %v9621_v63  ;;  %9622 = vst [vmem:[#allocation76_spill] sm:$0xff] %v7594_v12  ;;  %3320 = vmatpush1.msra.mxu0 %v7119_v34  ;;  %v7614_v28 = vsub.f32 %v1994_v39, %v7572_v29  ;;  %v7616_v40 = vand.u32 4294901760, %v1990_v53  ;;  %v1987_v63 = vld [vmem:[#allocation8 + $0x390] sm:$0xff]  ;;  %v9630_v20 = vand.u32 4294901760, %v7425_v31  ;;  %v7626_v54 = vand.u32 4294901760, %v1989_v15 }
 0x212   :  { %9623 = vst [vmem:[#allocation67_spill] sm:$0xff] %v7596_v23  ;;  %3549 = vmatpush1.msra.mxu1 %v9624_v59  ;;  %9625 = vst [vmem:[#allocation78_spill] sm:$0xff] %v7604_v37  ;;  %3322 = vmatprep.subr.mxu0 %v7129_v46  ;;  %v7624_v34 = vsub.f32 %v1993_v27, %v7586_v14  ;;  %v1986_v59 = vld [vmem:[#allocation8 + $0x388] sm:$0xff]  ;;  %v9633_v39 = vand.u32 4294901760, %v7441_v21  ;;  %v9634_v31 = vand.u32 4294901760, %v7542_v22  ;;  %v7640_v27 = vand.u32 4294901760, %v1988_v45 }
 0x213   :  { %9626 = vst [vmem:[#allocation69_spill] sm:$0xff] %v7606_v44  ;;  %3555 = vmatprep.subr.mxu1 %v9627_v5  ;;  %9628 = vst [vmem:[#allocation80_spill] sm:$0xff] %v7614_v28  ;;  %3324 = vmatpush1.msra.mxu0 %v7138_v8  ;;  %v7638_v5 = vsub.f32 %v1992_v33, %v7596_v23  ;;  %v1985_v46 = vld [vmem:[#allocation8 + $0x380] sm:$0xff]  ;;  %v9637_v18 = vand.u32 4294901760, %v7455_v3  ;;  %v9638_v21 = vand.u32 4294901760, %v7556_v25  ;;  %v7654_v33 = vand.u32 4294901760, %v1987_v63 }
 0x214   :  { %9629 = vst [vmem:[#allocation72_spill] sm:$0xff] %v7616_v40  ;;  %3561 = vmatpush1.msra.mxu1 %v9630_v20  ;;  %9631 = vst [vmem:[#allocation82_spill] sm:$0xff] %v7624_v34  ;;  %v7634_v20 = vsub.f32 %v7542_v22, %v9634_v31  ;;  %3326 = vmatprep.subr.mxu0 %v7152_v6  ;;  %v7652_v36 = vsub.f32 %v1991_v41, %v7606_v44  ;;  %v9641_v22 = vand.u32 4294901760, %v7467_v24  ;;  %v9646_v6 = vld [vmem:[#allocation102_spill] sm:$0xff] }
 0x215   :  { %9632 = vst [vmem:[#allocation75_spill] sm:$0xff] %v7626_v54  ;;  %3567 = vmatprep.subr.mxu1 %v9633_v39  ;;  %9635 = vst [vmem:[#allocation77_spill] sm:$0xff] %v7638_v5  ;;  %v7648_v39 = vsub.f32 %v7556_v25, %v9638_v21  ;;  %3328 = vmatpush1.msra.mxu0 %v7163_v62  ;;  %v7666_v25 = vsub.f32 %v1990_v53, %v7616_v40  ;;  %v7668_v31 = vand.u32 4294901760, %v1986_v59  ;;  %v9651_v62 = vld [vmem:[#allocation38_spill] sm:$0xff] }
 0x216   :  { %9636 = vst [vmem:[#allocation79_spill] sm:$0xff] %v7640_v27  ;;  %3573 = vmatpush1.msra.mxu1 %v9637_v18  ;;  %9639 = vst [vmem:[#allocation88_spill] sm:$0xff] %v7652_v36  ;;  %v9642_v18 = vand.u32 4294901760, %v7570_v11  ;;  %v9645_v41 = vand.u32 4294901760, %v7480_v2  ;;  %3330 = vmatprep.subr.mxu0 %v9646_v6  ;;  %v9647_v24 = vand.u32 4294901760, %v7584_v30  ;;  %v7682_v21 = vand.u32 4294901760, %v1985_v46 }
 0x217   :  { %9640 = vst [vmem:[#allocation81_spill] sm:$0xff] %v7654_v33  ;;  %3579 = vmatprep.subr.mxu1 %v9641_v22  ;;  %9643 = vst [vmem:[#allocation83_spill] sm:$0xff] %v7666_v25  ;;  %v9650_v53 = vand.u32 4294901760, %v7491_v19  ;;  %3332 = vmatpush1.msra.mxu0 %v9651_v62  ;;  %v3638_v2 = vand.u32 4294901760, %v7634_v20  ;;  %v3644_v19 = vand.u32 4294901760, %v7648_v39  ;;  %v9660_v39 = vand.u32 4294901760, %v7614_v28 }
 0x218   :  { %v7662_v3 = vsub.f32 %v7570_v11, %v9642_v18  ;;  %9644 = vst [vmem:[#allocation92_spill] sm:$0xff] %v7668_v31  ;;  %3585 = vmatpush1.msra.mxu1 %v9645_v41  ;;  %v7676_v22 = vsub.f32 %v7584_v30, %v9647_v24  ;;  %v7680_v11 = vsub.f32 %v1989_v15, %v7626_v54  ;;  %9649 = vst [vmem:[#allocation94_spill] sm:$0xff] %v7682_v21  ;;  %v9655_v30 = vld [vmem:[#allocation114_spill] sm:$0xff]  ;;  %v1984_v24 = vld [vmem:[#allocation8 + $0x378] sm:$0xff] }
 0x219   :  { %3591 = vmatprep.subr.mxu1 %v9650_v53  ;;  %v9652_v41 = vand.u32 4294901760, %v7594_v12  ;;  %v7695_v18 = vsub.f32 %v1988_v45, %v7640_v27  ;;  %v9654_v15 = vand.u32 4294901760, %v7503_v16  ;;  %3334 = vmatprep.subr.mxu0 %v9655_v30  ;;  %v9656_v53 = vand.u32 4294901760, %v7604_v37  ;;  %v9659_v16 = vld [vmem:[#allocation118_spill] sm:$0xff] }
 0x21a   :  { %9648 = vst [vmem:[#allocation85_spill] sm:$0xff] %v7680_v11  ;;  %v9658_v45 = vand.u32 4294901760, %v7515_v49  ;;  %3336 = vmatpush1.msra.mxu0 %v9659_v16  ;;  %v7717_v30 = vsub.f32 %v7614_v28, %v9660_v39  ;;  %v9663_v49 = vld [vmem:[#allocation119_spill] sm:$0xff]  ;;  %v9666_v28 = vand.u32 4294901760, %v7539_v35  ;;  %v1981_v39 = vld [vmem:[#allocation8 + $0x360] sm:$0xff]  ;;  %v9671_v35 = vand.u32 4294901760, %v7652_v36 }
 0x21b   :  { %v7691_v6 = vsub.f32 %v7594_v12, %v9652_v41  ;;  %9653 = vst [vmem:[#allocation87_spill] sm:$0xff] %v7695_v18  ;;  %3597 = vmatpush1.msra.mxu1 %v9654_v15  ;;  %v7704_v20 = vsub.f32 %v7604_v37, %v9656_v53  ;;  %v7708_v12 = vsub.f32 %v1987_v63, %v7654_v33  ;;  %v3650_v15 = vand.u32 4294901760, %v7662_v3  ;;  %v1983_v63 = vld [vmem:[#allocation8 + $0x370] sm:$0xff] }
 0x21c   :  { %3603 = vmatprep.subr.mxu1 %v9658_v45  ;;  %v7721_v41 = vsub.f32 %v1986_v59, %v7668_v31  ;;  %v9662_v37 = vand.u32 4294901760, %v7527_v58  ;;  %3338 = vmatprep.subr.mxu0 %v9663_v49  ;;  %v3656_v45 = vand.u32 4294901760, %v7676_v22  ;;  %v9664_v3 = vand.u32 4294901760, %v7624_v34  ;;  %v1982_v59 = vld [vmem:[#allocation8 + $0x368] sm:$0xff]  ;;  %v9667_v58 = vld [vmem:[#allocation17_spill] sm:$0xff] }
 0x21d   :  { %9657 = vst [vmem:[#allocation89_spill] sm:$0xff] %v7708_v12  ;;  %v7734_v53 = vsub.f32 %v1985_v46, %v7682_v21  ;;  %3340 = vmatpush1.msra.mxu0 %v9667_v58  ;;  %v9668_v22 = vand.u32 4294901760, %v7638_v5  ;;  %v9670_v46 = vand.u32 4294901760, %v7553_v0  ;;  %v9673_v58 = vand.u32 4294901760, %v7567_v4 }
 0x21e   :  { %9661 = vst [vmem:[#allocation91_spill] sm:$0xff] %v7721_v41  ;;  %3609 = vmatpush1.msra.mxu1 %v9662_v37  ;;  %v7730_v16 = vsub.f32 %v7624_v34, %v9664_v3  ;;  %v3662_v37 = vand.u32 4294901760, %v7691_v6  ;;  %v7746_v34 = vand.u32 4294901760, %v1984_v24  ;;  %3342 = vmatprep.subr.mxu0 %v7319_v51  ;;  %v7755_v6 = vsub.f32 %v7652_v36, %v9671_v35  ;;  %v1980_v3 = vld [vmem:[#allocation8 + $0x358] sm:$0xff]  ;;  %v1978_v35 = vld [vmem:[#allocation8 + $0x348] sm:$0xff] }
 0x21f   :  { %9665 = vst [vmem:[#allocation93_spill] sm:$0xff] %v7734_v53  ;;  %3615 = vmatprep.subr.mxu1 %v9666_v28  ;;  %v7743_v49 = vsub.f32 %v7638_v5, %v9668_v22  ;;  %v3668_v28 = vand.u32 4294901760, %v7704_v20  ;;  %v7758_v5 = vand.u32 4294901760, %v1983_v63  ;;  %3344 = vmatpush1.msra.mxu0 %v7329_v13  ;;  %v3674_v0 = vand.u32 4294901760, %v7717_v30  ;;  %v1979_v22 = vld [vmem:[#allocation8 + $0x350] sm:$0xff] }
 0x220   :  { %9669 = vst [vmem:[#allocation101_spill] sm:$0xff] %v7746_v34  ;;  %3621 = vmatpush1.msra.mxu1 %v9670_v46  ;;  %v9674_v46 = vand.u32 4294901760, %v7666_v25  ;;  %v7770_v36 = vand.u32 4294901760, %v1982_v59  ;;  %v9676_v51 = vand.u32 4294901760, %v7581_v42  ;;  %3346 = vmatprep.subr.mxu0 %v7343_v32  ;;  %v3680_v4 = vand.u32 4294901760, %v7730_v16 }
 0x221   :  { %9672 = vst [vmem:[#allocation97_spill] sm:$0xff] %v7758_v5  ;;  %3627 = vmatprep.subr.mxu1 %v9673_v58  ;;  %v9677_v58 = vand.u32 4294901760, %v7680_v11  ;;  %3348 = vmatpush1.msra.mxu0 %v7353_v56  ;;  %v3686_v42 = vand.u32 4294901760, %v7743_v49  ;;  %v7792_v16 = vsub.f32 %v1984_v24, %v7746_v34  ;;  %v7804_v56 = vsub.f32 %v1983_v63, %v7758_v5  ;;  %v1976_v24 = vld [vmem:[#allocation8 + $0x338] sm:$0xff]  ;;  %v1975_v63 = vld [vmem:[#allocation8 + $0x330] sm:$0xff] }
 0x222   :  { %v7767_v20 = vsub.f32 %v7666_v25, %v9674_v46  ;;  %9675 = vst [vmem:[#allocation98_spill] sm:$0xff] %v7770_v36  ;;  %3633 = vmatpush1.msra.mxu1 %v9676_v51  ;;  %v7782_v25 = vand.u32 4294901760, %v1981_v39  ;;  %v9679_v51 = vand.u32 4294901760, %v7695_v18  ;;  %3350 = vmatprep.subr.mxu0 %v7363_v1  ;;  %v9682_v46 = vand.u32 4294901760, %v7708_v12 }
 0x223   :  { %v7779_v30 = vsub.f32 %v7680_v11, %v9677_v58  ;;  %3639 = vmatprep.subr.mxu1 %v3638_v2  ;;  %9680 = vst [vmem:[#allocation107_spill] sm:$0xff] %v7792_v16  ;;  %v7794_v58 = vand.u32 4294901760, %v1980_v3  ;;  %v1977_v11 = vld [vmem:[#allocation8 + $0x340] sm:$0xff]  ;;  %v3692_v2 = vand.u32 4294901760, %v7755_v6  ;;  %9683 = vst [vmem:[#allocation109_spill] sm:$0xff] %v7804_v56  ;;  %3352 = vmatpush1.msra.mxu0 %v7378_v47 }
 0x224   :  { %9678 = vst [vmem:[#allocation105_spill] sm:$0xff] %v7782_v25  ;;  %v7789_v32 = vsub.f32 %v7695_v18, %v9679_v51  ;;  %3645 = vmatpush2.msra.mxu1 %v3644_v19  ;;  %v7801_v49 = vsub.f32 %v7708_v12, %v9682_v46  ;;  %v7806_v51 = vand.u32 4294901760, %v1979_v22  ;;  %v3698_v19 = vand.u32 4294901760, %v7767_v20  ;;  %3354 = vmatprep.subr.mxu0 %v7388_v17 }
 0x225   :  { %9681 = vst [vmem:[#allocation104_spill] sm:$0xff] %v7794_v58  ;;  %3651 = vmatprep.subr.mxu1 %v3650_v15  ;;  %v9684_v18 = vand.u32 4294901760, %v7721_v41  ;;  %v7816_v1 = vsub.f32 %v1982_v59, %v7770_v36  ;;  %v7818_v46 = vand.u32 4294901760, %v1978_v35  ;;  %v3704_v15 = vand.u32 4294901760, %v7779_v30  ;;  %v1974_v59 = vld [vmem:[#allocation8 + $0x328] sm:$0xff]  ;;  %3356 = vmatpush1.msra.mxu0 %v7403_v43 }
 0x226   :  { %3657 = vmatpush2.msra.mxu1 %v3656_v45  ;;  %v9686_v12 = vand.u32 4294901760, %v7734_v53  ;;  %v7828_v47 = vsub.f32 %v1981_v39, %v7782_v25  ;;  %v3710_v45 = vand.u32 4294901760, %v7789_v32  ;;  %v7836_v30 = vsub.f32 %v1980_v3, %v7794_v58  ;;  %3358 = vmatprep.subr.mxu0 %v7416_v57  ;;  %v1972_v32 = vld [vmem:[#allocation8 + $0x318] sm:$0xff] }
 0x227   :  { %v7813_v6 = vsub.f32 %v7721_v41, %v9684_v18  ;;  %9685 = vst [vmem:[#allocation106_spill] sm:$0xff] %v7816_v1  ;;  %v7830_v18 = vand.u32 4294901760, %v1977_v11  ;;  %3663 = vmatprep.subr.mxu1 %v3662_v37  ;;  %v7838_v17 = vand.u32 4294901760, %v1976_v24  ;;  %v3716_v39 = vand.u32 4294901760, %v7801_v49  ;;  %3360 = vmatpush1.msra.mxu0 %v7431_v9  ;;  %v1971_v49 = vld [vmem:[#allocation8 + $0x310] sm:$0xff] }
 0x228   :  { %v7825_v20 = vsub.f32 %v7734_v53, %v9686_v12  ;;  %v1973_v12 = vld [vmem:[#allocation8 + $0x320] sm:$0xff]  ;;  %3669 = vmatpush2.msra.mxu1 %v3668_v28  ;;  %v7844_v37 = vsub.f32 %v1979_v22, %v7806_v51  ;;  %v7846_v43 = vand.u32 4294901760, %v1975_v63  ;;  %v7852_v28 = vsub.f32 %v1978_v35, %v7818_v46  ;;  %3362 = vmatprep.subr.mxu0 %v7494_v55 }
 0x229   :  { %3675 = vmatprep.subr.mxu1 %v3674_v0  ;;  %v3722_v3 = vand.u32 4294901760, %v7813_v6  ;;  %v7854_v57 = vand.u32 4294901760, %v1974_v59  ;;  %v7860_v0 = vsub.f32 %v1977_v11, %v7830_v18  ;;  %v7862_v9 = vand.u32 4294901760, %v1973_v12  ;;  %v1970_v6 = vld [vmem:[#allocation8 + $0x308] sm:$0xff]  ;;  %3364 = vmatpush2.msra.mxu0 %v7506_v52  ;;  %v1969_v53 = vld [vmem:[#allocation8 + $0x300] sm:$0xff] }
 0x22a   :  { %9687 = vst [vmem:[#allocation111_spill] sm:$0xff] %v7846_v43  ;;  %9688 = vst [vmem:[#allocation108_spill] sm:$0xff] %v7852_v28  ;;  %3681 = vmatpush2.msra.mxu1 %v3680_v4  ;;  %v3728_v22 = vand.u32 4294901760, %v7825_v20  ;;  %v9691_v35 = vand.u32 4294901760, %v7792_v16  ;;  %v7870_v55 = vsub.f32 %v1976_v24, %v7838_v17  ;;  %v7872_v20 = vand.u32 4294901760, %v1972_v32  ;;  %3366 = vmatprep.subr.mxu0 %v7518_v38 }
 0x22b   :  { %9689 = vst [vmem:[#allocation110_spill] sm:$0xff] %v7860_v0  ;;  %9690 = vst [vmem:[#allocation112_spill] sm:$0xff] %v7862_v9  ;;  %3687 = vmatprep.subr.mxu1 %v3686_v42  ;;  %v9692_v11 = vand.u32 4294901760, %v7804_v56  ;;  %v7880_v13 = vsub.f32 %v1975_v63, %v7846_v43  ;;  %3368 = vmatpush2.msra.mxu0 %v7530_v50  ;;  %v9694_v24 = vand.u32 4294901760, %v7816_v1  ;;  %v9696_v63 = vand.u32 4294901760, %v7828_v47 }
 0x22c   :  { %v3733_v41 = vsub.f32 %v7792_v16, %v9691_v35  ;;  %3693 = vmatpush2.msra.mxu1 %v3692_v2  ;;  %v7882_v35 = vand.u32 4294901760, %v1971_v49  ;;  %v7890_v16 = vsub.f32 %v1974_v59, %v7854_v57  ;;  %3370 = vmatprep.subr.mxu0 %v7544_v48  ;;  %v9697_v4 = vand.u32 4294901760, %v7836_v30 }
 0x22d   :  { %v3739_v42 = vsub.f32 %v7804_v56, %v9692_v11  ;;  %3699 = vmatprep.subr.mxu1 %v3698_v19  ;;  %v3745_v2 = vsub.f32 %v7816_v1, %v9694_v24  ;;  %v7892_v11 = vand.u32 4294901760, %v1970_v6  ;;  %v3751_v19 = vsub.f32 %v7828_v47, %v9696_v63  ;;  %3372 = vmatpush2.msra.mxu0 %v7558_v61 }
 0x22e   :  { %9693 = vst [vmem:[#allocation123_spill] sm:$0xff] %v7882_v35  ;;  %9695 = vst [vmem:[#allocation124_spill] sm:$0xff] %v7890_v16  ;;  %3705 = vmatpush2.msra.mxu1 %v3704_v15  ;;  %v7900_v56 = vsub.f32 %v1973_v12, %v7862_v9  ;;  %v7902_v24 = vand.u32 4294901760, %v1969_v53  ;;  %v3734_v59 = vand.u32 4294901760, %v3733_v41  ;;  %v3757_v15 = vsub.f32 %v7836_v30, %v9697_v4 }
 0x22f   :  { %3711 = vmatprep.subr.mxu1 %v3710_v45  ;;  %v7910_v48 = vsub.f32 %v1972_v32, %v7872_v20  ;;  %3374 = vmatprep.subr.mxu0 %v7572_v29  ;;  %v3740_v12 = vand.u32 4294901760, %v3739_v42  ;;  %v9698_v63 = vand.u32 4294901760, %v7844_v37  ;;  %v7918_v41 = vsub.f32 %v1971_v49, %v7882_v35 }
 0x230   :  { %3717 = vmatpush2.msra.mxu1 %v3716_v39  ;;  %3376 = vmatpush2.msra.mxu0 %v7586_v14  ;;  %v3746_v4 = vand.u32 4294901760, %v3745_v2  ;;  %v9699_v32 = vand.u32 4294901760, %v7852_v28  ;;  %v7926_v42 = vsub.f32 %v1970_v6, %v7892_v11  ;;  %v9700_v49 = vand.u32 4294901760, %v7860_v0 }
 0x231   :  { %v3763_v45 = vsub.f32 %v7844_v37, %v9698_v63  ;;  %3723 = vmatprep.subr.mxu1 %v3722_v3  ;;  %3378 = vmatprep.subr.mxu0 %v7596_v23  ;;  %v3752_v63 = vand.u32 4294901760, %v3751_v19  ;;  %v7934_v2 = vsub.f32 %v1969_v53, %v7902_v24  ;;  %v9701_v6 = vand.u32 4294901760, %v7870_v55 }
 0x232   :  { %v3769_v39 = vsub.f32 %v7852_v28, %v9699_v32  ;;  %3729 = vmatpush2.msra.mxu1 %v3728_v22  ;;  %v3775_v3 = vsub.f32 %v7860_v0, %v9700_v49  ;;  %3380 = vmatpush2.msra.mxu0 %v7606_v44  ;;  %v3758_v32 = vand.u32 4294901760, %v3757_v15  ;;  %v9702_v49 = vand.u32 4294901760, %v7880_v13 }
 0x233   :  { %3735 = vmatprep.subr.mxu1 %v3734_v59  ;;  %v3781_v22 = vsub.f32 %v7870_v55, %v9701_v6  ;;  %3382 = vmatprep.subr.mxu0 %v7616_v40  ;;  %v3764_v19 = vand.u32 4294901760, %v3763_v45  ;;  %v9703_v59 = vld [vmem:[#allocation15_spill] sm:$0xff]  ;;  %v9704_v6 = vand.u32 4294901760, %v7890_v16 }
 0x234   :  { %3741 = vmatpush2.msra.mxu1 %v3740_v12  ;;  %v3787_v52 = vsub.f32 %v7880_v13, %v9702_v49  ;;  %v1871_v0 = vmax.f32 %v9703_v59, 0.0  ;;  %3384 = vmatpush2.msra.mxu0 %v7626_v54  ;;  %v3770_v15 = vand.u32 4294901760, %v3769_v39  ;;  %v3776_v45 = vand.u32 4294901760, %v3775_v3 }
 0x235   :  { %3747 = vmatprep.subr.mxu1 %v3746_v4  ;;  %v3793_v1 = vsub.f32 %v7890_v16, %v9704_v6  ;;  %3386 = vmatprep.subr.mxu0 %v7640_v27  ;;  %v9705_v49 = vand.u32 4294901760, %v7900_v56  ;;  %v8856_v59 = vand.u32 4294901760, %v7934_v2  ;;  %v3782_v4 = vand.u32 4294901760, %v3781_v22 }
 0x236   :  { %3753 = vmatpush2.msra.mxu1 %v3752_v63  ;;  %3388 = vmatpush2.msra.mxu0 %v7654_v33  ;;  %v9706_v39 = vand.u32 4294901760, %v7910_v48  ;;  %v3788_v63 = vand.u32 4294901760, %v3787_v52  ;;  %v9707_v3 = vand.u32 4294901760, %v7918_v41  ;;  %v7965_v16 = vand.u32 4294901760, %v1871_v0 }
 0x237   :  { %v3799_v53 = vsub.f32 %v7900_v56, %v9705_v49  ;;  %3759 = vmatprep.subr.mxu1 %v3758_v32  ;;  %3390 = vmatprep.subr.mxu0 %v7668_v31  ;;  %v3794_v32 = vand.u32 4294901760, %v3793_v1  ;;  %v9709_v22 = vand.u32 4294901760, %v7926_v42  ;;  %v3823_v52 = vsub.f32 %v7934_v2, %v8856_v59  ;;  %v9724_v59 = vld [vmem:[#allocation24_spill] sm:$0xff] }
 0x238   :  { %v3805_v6 = vsub.f32 %v7910_v48, %v9706_v39  ;;  %3765 = vmatpush2.msra.mxu1 %v3764_v19  ;;  %v3811_v12 = vsub.f32 %v7918_v41, %v9707_v3  ;;  %9708 = vst [vmem:[#allocation15_spill] sm:$0xff] %v7965_v16  ;;  %3392 = vmatpush2.msra.mxu0 %v7682_v21  ;;  %v9713_v3 = vld [vmem:[#allocation19_spill] sm:$0xff] }
 0x239   :  { %3771 = vmatprep.subr.mxu1 %v3770_v15  ;;  %v3817_v49 = vsub.f32 %v7926_v42, %v9709_v22  ;;  %3394 = vmatprep.subr.mxu0 %v7746_v34  ;;  %v3800_v19 = vand.u32 4294901760, %v3799_v53  ;;  %v7978_v15 = vsub.f32 %v1871_v0, %v7965_v16  ;;  %v3824_v53 = vand.u32 4294901760, %v3823_v52  ;;  %v9714_v22 = vld [vmem:[#allocation20_spill] sm:$0xff]  ;;  %v9717_v52 = vld [vmem:[#allocation29_spill] sm:$0xff] }
 0x23a   :  { %3777 = vmatpush2.msra.mxu1 %v3776_v45  ;;  %3396 = vmatpush2.msra.mxu0 %v7758_v5  ;;  %v3806_v39 = vand.u32 4294901760, %v3805_v6  ;;  %v3812_v1 = vand.u32 4294901760, %v3811_v12  ;;  %v9710_v12 = vand.u32 4294901760, %v7308_v26  ;;  %v9711_v6 = vld [vmem:[#allocation18_spill] sm:$0xff] }
 0x23b   :  { %3783 = vmatprep.subr.mxu1 %v3782_v4  ;;  %3398 = vmatprep.subr.mxu0 %v7770_v36  ;;  %v3818_v45 = vand.u32 4294901760, %v3817_v49  ;;  %v8857_v4 = vand.u32 4294901760, %v7978_v15  ;;  %v9715_v49 = vld [vmem:[#allocation23_spill] sm:$0xff] }
 0x23c   :  { %3789 = vmatpush2.msra.mxu1 %v3788_v63  ;;  %3400 = vmatpush2.msra.mxu0 %v7782_v25  ;;  %v9712_v63 = vld [vmem:[#allocation16_spill] sm:$0xff] }
 0x23d   :  { %3795 = vmatprep.subr.mxu1 %v3794_v32  ;;  %3402 = vmatprep.subr.mxu0 %v7794_v58  ;;  %v3434_v0 = vsub.f32 %v7978_v15, %v8857_v4  ;;  %v9726_v4 = vld [vmem:[#allocation42_spill] sm:$0xff] }
 0x23e   :  { %3801 = vmatpush2.msra.mxu1 %v3800_v19  ;;  %3404 = vmatpush2.msra.mxu0 %v7806_v51  ;;  %v9716_v19 = vld [vmem:[#allocation36_spill] sm:$0xff] }
 0x23f   :  { %3807 = vmatprep.subr.mxu1 %v3806_v39  ;;  %3406 = vmatprep.subr.mxu0 %v7818_v46  ;;  %v3435_v32 = vand.u32 4294901760, %v3434_v0  ;;  %v9718_v39 = vld [vmem:[#allocation25_spill] sm:$0xff] }
 0x240   :  { %3813 = vmatpush2.msra.mxu1 %v3812_v1  ;;  %3408 = vmatpush2.msra.mxu0 %v7830_v18  ;;  %v9719_v1 = vld [vmem:[#allocation47_spill] sm:$0xff]  ;;  %v9722_v0 = vld [vmem:[#allocation21_spill] sm:$0xff] }
 0x241   :  { %3819 = vmatprep.subr.mxu1 %v3818_v45  ;;  %3410 = vmatprep.subr.mxu0 %v7838_v17  ;;  %v9720_v45 = vld [vmem:[#allocation22_spill] sm:$0xff] }
 0x242   :  { %3825 = vmatpush2.msra.mxu1 %v3824_v53  ;;  %3412 = vmatpush2.msra.mxu0 %v7846_v43  ;;  %v9721_v53 = vld [vmem:[#allocation51_spill] sm:$0xff] }
 0x243   :  { %3829 = vmatmul.mubr.f32.vlgmr.msra.gmra.mxu1 %v7965_v16  ;;  %4039 = vmatprep.subr.mxu1 %v7001_v10  ;;  %v9727_v16 = vld [vmem:[#allocation49_spill] sm:$0xff] }
 0x244   :  { %4041 = vmatpush1.msra.mxu1 %v7006_v60  ;;  %4169 = vmatprep.mubr.f32.mxu1 %v9710_v12  ;;  %v9723_v12 = vld [vmem:[#allocation48_spill] sm:$0xff] }
 0x245   :  { %3414 = vmatprep.subr.mxu0 %v7854_v57  ;;  %4043 = vmatprep.subr.mxu1 %v7021_v7 }
 0x246   :  { %3416 = vmatpush2.msra.mxu0 %v7862_v9  ;;  %4045 = vmatpush1.msra.mxu1 %v9711_v6 }
 0x247   :  { %3418 = vmatprep.subr.mxu0 %v7872_v20  ;;  %4047 = vmatprep.subr.mxu1 %v9712_v63 }
 0x248   :  { %3420 = vmatpush2.msra.mxu0 %v7882_v35  ;;  %4049 = vmatpush1.msra.mxu1 %v9713_v3 }
 0x249   :  { %3422 = vmatprep.subr.mxu0 %v7892_v11  ;;  %4051 = vmatprep.subr.mxu1 %v9714_v22 }
 0x24a   :  { %3424 = vmatpush2.msra.mxu0 %v7902_v24  ;;  %4053 = vmatpush1.msra.mxu1 %v9715_v49 }
 0x24b   :  { %3436 = vmatmul.mubr.f32.vlgmr.msra.gmra.mxu0 %v3435_v32  ;;  %3837 = vmatprep.subr.mxu0 %v9716_v19  ;;  %v9725_v32 = vld [vmem:[#allocation50_spill] sm:$0xff] }
 0x24c   :  { %4055 = vmatprep.subr.mxu1 %v9717_v52  ;;  %3840 = vmatpush1.msra.mxu0 %v9718_v39 }
 0x24d   :  { %4029 = vmatprep.mubr.f32.mxu0 %v7308_v26  ;;  %4057 = vmatpush1.msra.mxu1 %v9719_v1  ;;  %v9728_v26 = vld [vmem:[#allocation90_spill] sm:$0xff]  ;;  %v9729_v1 = vld [vmem:[#allocation53_spill] sm:$0xff] }
 0x24e   :  { %3843 = vmatprep.subr.mxu0 %v9720_v45  ;;  %4059 = vmatprep.subr.mxu1 %v9721_v53  ;;  %v9730_v45 = vld [vmem:[#allocation95_spill] sm:$0xff]  ;;  %v9731_v53 = vld [vmem:[#allocation56_spill] sm:$0xff] }
 0x24f   :  { %3846 = vmatpush1.msra.mxu0 %v9722_v0  ;;  %4061 = vmatpush1.msra.mxu1 %v9723_v12  ;;  %v9732_v0 = vld [vmem:[#allocation102_spill] sm:$0xff]  ;;  %v9733_v12 = vld [vmem:[#allocation52_spill] sm:$0xff] }
 0x250   :  { %3849 = vmatprep.subr.mxu0 %v9724_v59  ;;  %4063 = vmatprep.subr.mxu1 %v9725_v32  ;;  %v9734_v32 = vld [vmem:[#allocation86_spill] sm:$0xff] }
 0x251   :  { %3852 = vmatpush1.msra.mxu0 %v9726_v4  ;;  %4065 = vmatpush1.msra.mxu1 %v7138_v8  ;;  %v9735_v4 = vld [vmem:[#allocation114_spill] sm:$0xff]  ;;  %v9736_v8 = vld [vmem:[#allocation99_spill] sm:$0xff] }
 0x252   :  { %3855 = vmatprep.subr.mxu0 %v9727_v16  ;;  %4067 = vmatprep.subr.mxu1 %v9728_v26  ;;  %v9737_v16 = vld [vmem:[#allocation118_spill] sm:$0xff]  ;;  %v9738_v26 = vld [vmem:[#allocation96_spill] sm:$0xff] }
 0x253   :  { %3858 = vmatpush1.msra.mxu0 %v9729_v1  ;;  %4069 = vmatpush1.msra.mxu1 %v9730_v45  ;;  %v9739_v1 = vld [vmem:[#allocation119_spill] sm:$0xff]  ;;  %v9740_v45 = vld [vmem:[#allocation100_spill] sm:$0xff] }
 0x254   :  { %3861 = vmatprep.subr.mxu0 %v9731_v53  ;;  %4071 = vmatprep.subr.mxu1 %v9732_v0  ;;  %v9741_v53 = vld [vmem:[#allocation17_spill] sm:$0xff]  ;;  %v9742_v0 = vld [vmem:[#allocation103_spill] sm:$0xff] }
 0x255   :  { %3864 = vmatpush1.msra.mxu0 %v9733_v12  ;;  %4073 = vmatpush1.msra.mxu1 %v9651_v62  ;;  %v9743_v12 = vld [vmem:[#allocation39_spill] sm:$0xff]  ;;  %v9744_v62 = vld [vmem:[#allocation116_spill] sm:$0xff] }
 0x256   :  { %3867 = vmatprep.subr.mxu0 %v9734_v32  ;;  %4075 = vmatprep.subr.mxu1 %v9735_v4  ;;  %v9745_v32 = vld [vmem:[#allocation40_spill] sm:$0xff]  ;;  %v9746_v4 = vld [vmem:[#allocation113_spill] sm:$0xff] }
 0x257   :  { %3870 = vmatpush1.msra.mxu0 %v9736_v8  ;;  %4077 = vmatpush1.msra.mxu1 %v9737_v16  ;;  %v9747_v8 = vld [vmem:[#allocation27_spill] sm:$0xff]  ;;  %v9748_v16 = vld [vmem:[#allocation117_spill] sm:$0xff] }
 0x258   :  { %3873 = vmatprep.subr.mxu0 %v9738_v26  ;;  %4079 = vmatprep.subr.mxu1 %v9739_v1  ;;  %v9749_v26 = vld [vmem:[#allocation41_spill] sm:$0xff]  ;;  %v9750_v1 = vld [vmem:[#allocation120_spill] sm:$0xff] }
 0x259   :  { %3876 = vmatpush1.msra.mxu0 %v9740_v45  ;;  %4081 = vmatpush1.msra.mxu1 %v9741_v53  ;;  %v9751_v45 = vld [vmem:[#allocation33_spill] sm:$0xff]  ;;  %v9752_v53 = vld [vmem:[#allocation32_spill] sm:$0xff] }
 0x25a   :  { %3879 = vmatprep.subr.mxu0 %v9742_v0  ;;  %4083 = vmatprep.subr.mxu1 %v9743_v12  ;;  %v9753_v0 = vld [vmem:[#allocation43_spill] sm:$0xff]  ;;  %v9754_v12 = vld [vmem:[#allocation30_spill] sm:$0xff] }
 0x25b   :  { %3882 = vmatpush1.msra.mxu0 %v9744_v62  ;;  %4085 = vmatpush1.msra.mxu1 %v9745_v32  ;;  %v9755_v62 = vld [vmem:[#allocation45_spill] sm:$0xff]  ;;  %v9756_v32 = vld [vmem:[#allocation26_spill] sm:$0xff] }
 0x25c   :  { %3885 = vmatprep.subr.mxu0 %v9746_v4  ;;  %4087 = vmatprep.subr.mxu1 %v9747_v8  ;;  %v9757_v4 = vld [vmem:[#allocation28_spill] sm:$0xff]  ;;  %v9758_v8 = vld [vmem:[#allocation31_spill] sm:$0xff] }
 0x25d   :  { %3888 = vmatpush1.msra.mxu0 %v9748_v16  ;;  %4089 = vmatpush1.msra.mxu1 %v9749_v26  ;;  %v9759_v16 = vld [vmem:[#allocation46_spill] sm:$0xff] }
 0x25e   :  { %3891 = vmatprep.subr.mxu0 %v9750_v1  ;;  %4091 = vmatprep.subr.mxu1 %v9751_v45  ;;  %v9760_v26 = vld [vmem:[#allocation34_spill] sm:$0xff]  ;;  %v9762_v45 = vld [vmem:[#allocation35_spill] sm:$0xff] }
 0x25f   :  { %3894 = vmatpush1.msra.mxu0 %v9752_v53  ;;  %4093 = vmatpush1.msra.mxu1 %v9753_v0  ;;  %v9761_v1 = vld [vmem:[#allocation58_spill] sm:$0xff]  ;;  %v9763_v53 = vld [vmem:[#allocation65_spill] sm:$0xff] }
 0x260   :  { %3897 = vmatprep.subr.mxu0 %v9754_v12  ;;  %4095 = vmatprep.subr.mxu1 %v9755_v62  ;;  %v9764_v0 = vld [vmem:[#allocation37_spill] sm:$0xff]  ;;  %v9766_v62 = vld [vmem:[#allocation44_spill] sm:$0xff] }
 0x261   :  { %3900 = vmatpush1.msra.mxu0 %v9756_v32  ;;  %4097 = vmatpush1.msra.mxu1 %v9757_v4  ;;  %v9765_v12 = vld [vmem:[#allocation57_spill] sm:$0xff]  ;;  %v9767_v4 = vld [vmem:[#allocation122_spill] sm:$0xff] }
 0x262   :  { %3903 = vmatprep.subr.mxu0 %v9758_v8  ;;  %4099 = vmatprep.subr.mxu1 %v9759_v16  ;;  %v9768_v16 = vld [vmem:[#allocation60_spill] sm:$0xff] }
 0x263   :  { %3906 = vmatpush1.msra.mxu0 %v9760_v26  ;;  %4101 = vmatpush1.msra.mxu1 %v9761_v1  ;;  %v9769_v26 = vld [vmem:[#allocation61_spill] sm:$0xff]  ;;  %v9770_v1 = vld [vmem:[#allocation54_spill] sm:$0xff] }
 0x264   :  { %3909 = vmatprep.subr.mxu0 %v9762_v45  ;;  %4103 = vmatprep.subr.mxu1 %v9763_v53  ;;  %v9771_v53 = vld [vmem:[#allocation62_spill] sm:$0xff] }
 0x265   :  { %3912 = vmatpush1.msra.mxu0 %v9764_v0  ;;  %4105 = vmatpush2.msra.mxu1 %v9765_v12  ;;  %v9772_v12 = vld [vmem:[#allocation55_spill] sm:$0xff] }
 0x266   :  { %3915 = vmatprep.subr.mxu0 %v9766_v62  ;;  %4107 = vmatprep.subr.mxu1 %v7518_v38  ;;  %v9773_v38 = vld [vmem:[#allocation70_spill] sm:$0xff] }
 0x267   :  { %3918 = vmatpush1.msra.mxu0 %v9767_v4  ;;  %4109 = vmatpush2.msra.mxu1 %v7530_v50  ;;  %v9774_v50 = vld [vmem:[#allocation71_spill] sm:$0xff] }
 0x268   :  { %3921 = vmatprep.subr.mxu0 %v9768_v16  ;;  %4111 = vmatprep.subr.mxu1 %v9769_v26  ;;  %v9775_v26 = vld [vmem:[#allocation73_spill] sm:$0xff] }
 0x269   :  { %3924 = vmatpush1.msra.mxu0 %v9770_v1  ;;  %4113 = vmatpush2.msra.mxu1 %v7558_v61  ;;  %v9776_v61 = vld [vmem:[#allocation74_spill] sm:$0xff] }
 0x26a   :  { %3927 = vmatprep.subr.mxu0 %v9771_v53  ;;  %4115 = vmatprep.subr.mxu1 %v7572_v29  ;;  %v9777_v29 = vld [vmem:[#allocation76_spill] sm:$0xff] }
 0x26b   :  { %3930 = vmatpush1.msra.mxu0 %v9772_v12  ;;  %4117 = vmatpush2.msra.mxu1 %v7586_v14  ;;  %v9778_v14 = vld [vmem:[#allocation78_spill] sm:$0xff] }
 0x26c   :  { %3933 = vmatprep.subr.mxu0 %v9773_v38  ;;  %4119 = vmatprep.subr.mxu1 %v7596_v23  ;;  %v9779_v23 = vld [vmem:[#allocation80_spill] sm:$0xff] }
 0x26d   :  { %3936 = vmatpush2.msra.mxu0 %v9774_v50  ;;  %4121 = vmatpush2.msra.mxu1 %v7606_v44  ;;  %v9780_v44 = vld [vmem:[#allocation82_spill] sm:$0xff] }
 0x26e   :  { %3939 = vmatprep.subr.mxu0 %v9775_v26  ;;  %4123 = vmatprep.subr.mxu1 %v7616_v40  ;;  %v9781_v40 = vld [vmem:[#allocation77_spill] sm:$0xff] }
 0x26f   :  { %3942 = vmatpush2.msra.mxu0 %v9776_v61  ;;  %4125 = vmatpush2.msra.mxu1 %v7626_v54  ;;  %v9782_v54 = vld [vmem:[#allocation88_spill] sm:$0xff] }
 0x270   :  { %3945 = vmatprep.subr.mxu0 %v9777_v29  ;;  %4127 = vmatprep.subr.mxu1 %v7640_v27  ;;  %v9783_v27 = vld [vmem:[#allocation83_spill] sm:$0xff] }
 0x271   :  { %3948 = vmatpush2.msra.mxu0 %v9778_v14  ;;  %4129 = vmatpush2.msra.mxu1 %v7654_v33  ;;  %v9784_v33 = vld [vmem:[#allocation85_spill] sm:$0xff] }
 0x272   :  { %3951 = vmatprep.subr.mxu0 %v9779_v23  ;;  %4131 = vmatprep.subr.mxu1 %v7668_v31  ;;  %v9785_v31 = vld [vmem:[#allocation87_spill] sm:$0xff] }
 0x273   :  { %3954 = vmatpush2.msra.mxu0 %v9780_v44  ;;  %4133 = vmatpush2.msra.mxu1 %v7682_v21  ;;  %v9786_v21 = vld [vmem:[#allocation89_spill] sm:$0xff] }
 0x274   :  { %3957 = vmatprep.subr.mxu0 %v9781_v40  ;;  %4135 = vmatprep.subr.mxu1 %v7746_v34  ;;  %v9787_v34 = vld [vmem:[#allocation91_spill] sm:$0xff] }
 0x275   :  { %3960 = vmatpush2.msra.mxu0 %v9782_v54  ;;  %4137 = vmatpush2.msra.mxu1 %v7758_v5  ;;  %v9788_v5 = vld [vmem:[#allocation93_spill] sm:$0xff] }
 0x276   :  { %3963 = vmatprep.subr.mxu0 %v9783_v27  ;;  %4139 = vmatprep.subr.mxu1 %v7770_v36  ;;  %v9789_v36 = vld [vmem:[#allocation107_spill] sm:$0xff] }
 0x277   :  { %3966 = vmatpush2.msra.mxu0 %v9784_v33  ;;  %4141 = vmatpush2.msra.mxu1 %v7782_v25  ;;  %v9790_v25 = vld [vmem:[#allocation109_spill] sm:$0xff] }
 0x278   :  { %3969 = vmatprep.subr.mxu0 %v9785_v31  ;;  %4143 = vmatprep.subr.mxu1 %v7794_v58  ;;  %v9791_v58 = vld [vmem:[#allocation106_spill] sm:$0xff] }
 0x279   :  { %3972 = vmatpush2.msra.mxu0 %v9786_v21  ;;  %4145 = vmatpush2.msra.mxu1 %v7806_v51 }
 0x27a   :  { %3975 = vmatprep.subr.mxu0 %v9787_v34  ;;  %4147 = vmatprep.subr.mxu1 %v7818_v46 }
 0x27b   :  { %3978 = vmatpush2.msra.mxu0 %v9788_v5  ;;  %4149 = vmatpush2.msra.mxu1 %v7830_v18 }
 0x27c   :  { %3981 = vmatprep.subr.mxu0 %v9789_v36  ;;  %4151 = vmatprep.subr.mxu1 %v7838_v17 }
 0x27d   :  { %3984 = vmatpush2.msra.mxu0 %v9790_v25  ;;  %4153 = vmatpush2.msra.mxu1 %v7846_v43  ;;  %v9792_v43 = vld [vmem:[#allocation110_spill] sm:$0xff] }
 0x27e   :  { %3987 = vmatprep.subr.mxu0 %v9791_v58  ;;  %4155 = vmatprep.subr.mxu1 %v7854_v57 }
 0x27f   :  { %3990 = vmatpush2.msra.mxu0 %v7828_v47  ;;  %4157 = vmatpush2.msra.mxu1 %v7862_v9  ;;  %v9793_v9 = vand.u32 4294901760, %v7978_v15 }
 0x280   :  { %3993 = vmatprep.subr.mxu0 %v7836_v30  ;;  %4159 = vmatprep.subr.mxu1 %v7872_v20 }
 0x281   :  { %3996 = vmatpush2.msra.mxu0 %v7844_v37  ;;  %4161 = vmatpush2.msra.mxu1 %v7882_v35  ;;  %v9794_v35 = vld [vmem:[#allocation115_spill] sm:$0xff] }
 0x282   :  { %3999 = vmatprep.subr.mxu0 %v7852_v28  ;;  %4163 = vmatprep.subr.mxu1 %v7892_v11  ;;  %v9795_v28 = vld [vmem:[#allocation124_spill] sm:$0xff] }
 0x283   :  { %4002 = vmatpush2.msra.mxu0 %v9792_v43  ;;  %4165 = vmatpush2.msra.mxu1 %v7902_v24 }
 0x284   :  { %4005 = vmatprep.subr.mxu0 %v7870_v55  ;;  %4173 = vmatmul.mubr.f32.vlgmr.msra.gmra.mxu1 %v9793_v9  ;;  %v9799_v9 = vld [vmem:[#allocation22_spill] sm:$0xff] }
 0x285   :  { %4445 = vmatprep.subr.mxu1 %v7001_v10  ;;  %4008 = vmatpush2.msra.mxu0 %v7880_v13  ;;  %v9796_v10 = vand.u32 4294901760, %v9716_v19  ;;  %v9806_v19 = vld [vmem:[#allocation50_spill] sm:$0xff] }
 0x286   :  { %4447 = vmatpush1.msra.mxu1 %v7006_v60  ;;  %4573 = vmatprep.mubr.f32.mxu1 %v9794_v35  ;;  %v9797_v60 = vand.u32 4294901760, %v9718_v39 }
 0x287   :  { %4011 = vmatprep.subr.mxu0 %v9795_v28  ;;  %4449 = vmatprep.subr.mxu1 %v7021_v7  ;;  %v9798_v7 = vld [vmem:[#allocation47_spill] sm:$0xff] }
 0x288   :  { %4014 = vmatpush2.msra.mxu0 %v7900_v56  ;;  %4451 = vmatpush1.msra.mxu1 %v9711_v6  ;;  %v9800_v6 = vand.u32 4294901760, %v9799_v9  ;;  %v9813_v9 = vld [vmem:[#allocation53_spill] sm:$0xff] }
 0x289   :  { %4017 = vmatprep.subr.mxu0 %v7910_v48  ;;  %4453 = vmatprep.subr.mxu1 %v9712_v63  ;;  %v9801_v63 = vld [vmem:[#allocation51_spill] sm:$0xff] }
 0x28a   :  { %4020 = vmatpush2.msra.mxu0 %v7918_v41  ;;  %4455 = vmatpush1.msra.mxu1 %v9713_v3  ;;  %v9802_v3 = vld [vmem:[#allocation21_spill] sm:$0xff] }
 0x28b   :  { %4023 = vmatprep.subr.mxu0 %v7926_v42  ;;  %4457 = vmatprep.subr.mxu1 %v9714_v22  ;;  %v9803_v22 = vand.u32 4294901760, %v9802_v3  ;;  %v9816_v3 = vld [vmem:[#allocation56_spill] sm:$0xff] }
 0x28c   :  { %4026 = vmatpush2.msra.mxu0 %v7934_v2  ;;  %4459 = vmatpush1.msra.mxu1 %v9715_v49  ;;  %v9805_v49 = vand.u32 4294901760, %v9724_v59  ;;  %v9817_v59 = vand.u32 4294901760, %v9816_v3  ;;  %v9831_v3 = vld [vmem:[#allocation100_spill] sm:$0xff] }
 0x28d   :  { %4032 = vmatmul.mubr.f32.vlgmr.msra.gmra.mxu0 %v7978_v15  ;;  %4182 = vmatprep.subr.mxu0 %v9796_v10  ;;  %v9804_v15 = vld [vmem:[#allocation48_spill] sm:$0xff]  ;;  %v9810_v10 = vld [vmem:[#allocation49_spill] sm:$0xff] }
 0x28e   :  { %4461 = vmatprep.subr.mxu1 %v9717_v52  ;;  %4186 = vmatpush1.msra.mxu0 %v9797_v60  ;;  %v9807_v52 = vld [vmem:[#allocation42_spill] sm:$0xff]  ;;  %v9811_v60 = vand.u32 4294901760, %v9810_v10  ;;  %v9825_v10 = vld [vmem:[#allocation99_spill] sm:$0xff] }
 0x28f   :  { %4436 = vmatprep.mubr.f32.mxu0 %v9794_v35  ;;  %4463 = vmatpush1.msra.mxu1 %v9798_v7  ;;  %v9808_v39 = vand.u32 4294901760, %v9807_v52  ;;  %v9809_v35 = vld [vmem:[#allocation84_spill] sm:$0xff]  ;;  %v9812_v7 = vld [vmem:[#allocation90_spill] sm:$0xff] }
 0x290   :  { %4190 = vmatprep.subr.mxu0 %v9800_v6  ;;  %4465 = vmatprep.subr.mxu1 %v9801_v63  ;;  %v9814_v6 = vand.u32 4294901760, %v9813_v9  ;;  %v9815_v63 = vld [vmem:[#allocation95_spill] sm:$0xff]  ;;  %v9822_v52 = vld [vmem:[#allocation86_spill] sm:$0xff]  ;;  %v9828_v9 = vld [vmem:[#allocation96_spill] sm:$0xff] }
 0x291   :  { %4194 = vmatpush1.msra.mxu0 %v9803_v22  ;;  %4467 = vmatpush1.msra.mxu1 %v9804_v15  ;;  %v9818_v22 = vld [vmem:[#allocation102_spill] sm:$0xff]  ;;  %v9819_v15 = vld [vmem:[#allocation52_spill] sm:$0xff] }
 0x292   :  { %4198 = vmatprep.subr.mxu0 %v9805_v49  ;;  %4469 = vmatprep.subr.mxu1 %v9806_v19  ;;  %v9820_v49 = vand.u32 4294901760, %v9819_v15  ;;  %v9821_v19 = vld [vmem:[#allocation38_spill] sm:$0xff]  ;;  %v9834_v15 = vld [vmem:[#allocation103_spill] sm:$0xff] }
 0x293   :  { %4202 = vmatpush1.msra.mxu0 %v9808_v39  ;;  %4471 = vmatpush1.msra.mxu1 %v9809_v35  ;;  %v9823_v39 = vand.u32 4294901760, %v9822_v52  ;;  %v9824_v35 = vld [vmem:[#allocation114_spill] sm:$0xff]  ;;  %v9837_v52 = vld [vmem:[#allocation116_spill] sm:$0xff] }
 0x294   :  { %4206 = vmatprep.subr.mxu0 %v9811_v60  ;;  %4473 = vmatprep.subr.mxu1 %v9812_v7  ;;  %v9826_v60 = vand.u32 4294901760, %v9825_v10  ;;  %v9827_v7 = vld [vmem:[#allocation118_spill] sm:$0xff]  ;;  %v9840_v10 = vld [vmem:[#allocation113_spill] sm:$0xff] }
 0x295   :  { %4210 = vmatpush1.msra.mxu0 %v9814_v6  ;;  %4475 = vmatpush1.msra.mxu1 %v9815_v63  ;;  %v9829_v6 = vand.u32 4294901760, %v9828_v9  ;;  %v9830_v63 = vld [vmem:[#allocation119_spill] sm:$0xff]  ;;  %v9843_v9 = vld [vmem:[#allocation117_spill] sm:$0xff] }
 0x296   :  { %4214 = vmatprep.subr.mxu0 %v9817_v59  ;;  %4477 = vmatprep.subr.mxu1 %v9818_v22  ;;  %v9832_v59 = vand.u32 4294901760, %v9831_v3  ;;  %v9833_v22 = vld [vmem:[#allocation17_spill] sm:$0xff]  ;;  %v9846_v3 = vld [vmem:[#allocation120_spill] sm:$0xff] }
 0x297   :  { %4218 = vmatpush1.msra.mxu0 %v9820_v49  ;;  %4479 = vmatpush1.msra.mxu1 %v9821_v19  ;;  %v9835_v49 = vand.u32 4294901760, %v9834_v15  ;;  %v9836_v19 = vld [vmem:[#allocation39_spill] sm:$0xff]  ;;  %v9849_v15 = vld [vmem:[#allocation32_spill] sm:$0xff] }
 0x298   :  { %4222 = vmatprep.subr.mxu0 %v9823_v39  ;;  %4481 = vmatprep.subr.mxu1 %v9824_v35  ;;  %v9838_v39 = vand.u32 4294901760, %v9837_v52  ;;  %v9839_v35 = vld [vmem:[#allocation40_spill] sm:$0xff]  ;;  %v9852_v52 = vld [vmem:[#allocation30_spill] sm:$0xff] }
 0x299   :  { %4226 = vmatpush1.msra.mxu0 %v9826_v60  ;;  %4483 = vmatpush1.msra.mxu1 %v9827_v7  ;;  %v9841_v60 = vand.u32 4294901760, %v9840_v10  ;;  %v9842_v7 = vld [vmem:[#allocation27_spill] sm:$0xff]  ;;  %v9855_v10 = vand.u32 4294901760, %v9756_v32  ;;  %v9864_v32 = vand.u32 4294901760, %v9764_v0  ;;  %v9872_v0 = vand.u32 4294901760, %v9770_v1 }
 0x29a   :  { %4230 = vmatprep.subr.mxu0 %v9829_v6  ;;  %4485 = vmatprep.subr.mxu1 %v9830_v63  ;;  %v9844_v6 = vand.u32 4294901760, %v9843_v9  ;;  %v9845_v63 = vld [vmem:[#allocation41_spill] sm:$0xff]  ;;  %v9858_v9 = vld [vmem:[#allocation46_spill] sm:$0xff]  ;;  %v9880_v1 = vand.u32 4294901760, %v9774_v50  ;;  %v9888_v50 = vand.u32 4294901760, %v9778_v14  ;;  %v9896_v14 = vand.u32 4294901760, %v9782_v54 }
 0x29b   :  { %4234 = vmatpush1.msra.mxu0 %v9832_v59  ;;  %4487 = vmatpush1.msra.mxu1 %v9833_v22  ;;  %v9847_v59 = vand.u32 4294901760, %v9846_v3  ;;  %v9848_v22 = vld [vmem:[#allocation33_spill] sm:$0xff]  ;;  %v9861_v3 = vld [vmem:[#allocation58_spill] sm:$0xff]  ;;  %v9904_v54 = vand.u32 4294901760, %v9786_v21  ;;  %v9908_v21 = vand.u32 4294901760, %v9790_v25  ;;  %v9915_v25 = vld [vmem:[#allocation123_spill] sm:$0xff] }
 0x29c   :  { %4238 = vmatprep.subr.mxu0 %v9835_v49  ;;  %4489 = vmatprep.subr.mxu1 %v9836_v19  ;;  %v9850_v49 = vand.u32 4294901760, %v9849_v15  ;;  %v9851_v19 = vld [vmem:[#allocation43_spill] sm:$0xff]  ;;  %v9865_v15 = vld [vmem:[#allocation57_spill] sm:$0xff] }
 0x29d   :  { %4242 = vmatpush1.msra.mxu0 %v9838_v39  ;;  %4491 = vmatpush1.msra.mxu1 %v9839_v35  ;;  %v9853_v39 = vand.u32 4294901760, %v9852_v52  ;;  %v9854_v35 = vld [vmem:[#allocation45_spill] sm:$0xff]  ;;  %v9869_v52 = vld [vmem:[#allocation59_spill] sm:$0xff] }
 0x29e   :  { %4246 = vmatprep.subr.mxu0 %v9841_v60  ;;  %4493 = vmatprep.subr.mxu1 %v9842_v7  ;;  %v9856_v60 = vld [vmem:[#allocation28_spill] sm:$0xff]  ;;  %v9857_v7 = vand.u32 4294901760, %v9758_v8  ;;  %v9866_v8 = vand.u32 4294901760, %v9766_v62  ;;  %v9874_v62 = vand.u32 4294901760, %v9771_v53  ;;  %v9882_v53 = vand.u32 4294901760, %v9775_v26 }
 0x29f   :  { %4250 = vmatpush1.msra.mxu0 %v9844_v6  ;;  %4495 = vmatpush1.msra.mxu1 %v9845_v63  ;;  %v9859_v6 = vld [vmem:[#allocation34_spill] sm:$0xff]  ;;  %v9890_v26 = vand.u32 4294901760, %v9779_v23  ;;  %v9898_v23 = vand.u32 4294901760, %v9783_v27  ;;  %v9905_v27 = vand.u32 4294901760, %v9787_v34  ;;  %v9910_v34 = vand.u32 4294901760, %v9791_v58 }
 0x2a0   :  { %4254 = vmatprep.subr.mxu0 %v9847_v59  ;;  %4497 = vmatprep.subr.mxu1 %v9848_v22  ;;  %v9860_v63 = vand.u32 4294901760, %v9859_v6  ;;  %v9862_v59 = vand.u32 4294901760, %v9762_v45  ;;  %v9863_v22 = vld [vmem:[#allocation65_spill] sm:$0xff]  ;;  %v9870_v45 = vand.u32 4294901760, %v9768_v16  ;;  %v9878_v16 = vand.u32 4294901760, %v9773_v38  ;;  %v9883_v6 = vld [vmem:[#allocation72_spill] sm:$0xff] }
 0x2a1   :  { %4258 = vmatpush1.msra.mxu0 %v9850_v49  ;;  %4499 = vmatpush1.msra.mxu1 %v9851_v19  ;;  %v9867_v49 = vld [vmem:[#allocation68_spill] sm:$0xff]  ;;  %v9868_v19 = vand.u32 4294901760, %v9767_v4  ;;  %v9876_v4 = vand.u32 4294901760, %v9772_v12  ;;  %v9884_v12 = vand.u32 4294901760, %v9776_v61  ;;  %v9886_v38 = vand.u32 4294901760, %v9777_v29 }
 0x2a2   :  { %4262 = vmatprep.subr.mxu0 %v9853_v39  ;;  %4501 = vmatprep.subr.mxu1 %v9854_v35  ;;  %v9871_v39 = vld [vmem:[#allocation61_spill] sm:$0xff]  ;;  %v9873_v35 = vld [vmem:[#allocation63_spill] sm:$0xff]  ;;  %v9892_v61 = vand.u32 4294901760, %v9780_v44  ;;  %v9894_v29 = vand.u32 4294901760, %v9781_v40  ;;  %v9900_v44 = vand.u32 4294901760, %v9784_v33  ;;  %v9902_v40 = vand.u32 4294901760, %v9785_v31 }
 0x2a3   :  { %4266 = vmatpush1.msra.mxu0 %v9855_v10  ;;  %4503 = vmatpush1.msra.mxu1 %v9856_v60  ;;  %v9875_v10 = vld [vmem:[#allocation64_spill] sm:$0xff]  ;;  %v9877_v60 = vld [vmem:[#allocation66_spill] sm:$0xff]  ;;  %v9906_v33 = vand.u32 4294901760, %v9788_v5  ;;  %v9907_v31 = vand.u32 4294901760, %v9789_v36  ;;  %v9911_v5 = vand.u32 4294901760, %v7828_v47  ;;  %v9913_v36 = vand.u32 4294901760, %v7836_v30 }
 0x2a4   :  { %4270 = vmatprep.subr.mxu0 %v9857_v7  ;;  %4505 = vmatprep.subr.mxu1 %v9858_v9  ;;  %v9879_v7 = vld [vmem:[#allocation67_spill] sm:$0xff]  ;;  %v9881_v9 = vld [vmem:[#allocation69_spill] sm:$0xff]  ;;  %v9918_v47 = vand.u32 4294901760, %v9792_v43  ;;  %v9921_v30 = vand.u32 4294901760, %v7880_v13  ;;  %v9925_v43 = vand.u32 4294901760, %v7918_v41 }
 0x2a5   :  { %4274 = vmatpush1.msra.mxu0 %v9860_v63  ;;  %4507 = vmatpush1.msra.mxu1 %v9861_v3  ;;  %v9885_v63 = vld [vmem:[#allocation75_spill] sm:$0xff] }
 0x2a6   :  { %4278 = vmatprep.subr.mxu0 %v9862_v59  ;;  %4509 = vmatprep.subr.mxu1 %v9863_v22  ;;  %v9887_v3 = vld [vmem:[#allocation79_spill] sm:$0xff]  ;;  %v9889_v59 = vld [vmem:[#allocation81_spill] sm:$0xff]  ;;  %v9891_v22 = vld [vmem:[#allocation92_spill] sm:$0xff] }
 0x2a7   :  { %4282 = vmatpush1.msra.mxu0 %v9864_v32  ;;  %4511 = vmatpush2.msra.mxu1 %v9865_v15  ;;  %v9893_v32 = vld [vmem:[#allocation94_spill] sm:$0xff]  ;;  %v9895_v15 = vld [vmem:[#allocation101_spill] sm:$0xff]  ;;  %v2001_v13 = vld [vmem:[%s8342_s4] sm:$0x3]  ;;  %s4727_s4 = smov [#allocation10]  }
 0x2a8   :  { %4286 = vmatprep.subr.mxu0 %v9866_v8  ;;  %4513 = vmatprep.subr.mxu1 %v9867_v49  ;;  %v9897_v8 = vld [vmem:[#allocation97_spill] sm:$0xff]  ;;  %v9899_v49 = vld [vmem:[#allocation98_spill] sm:$0xff]  ;;  %s4589_s15 = sshll.u32 %s4727_s4, 4  ;;  %s4590_s15 = int_to_ptr.vmem [resolvable:$true] %s4589_s15 }
 0x2a9   :  { %4290 = vmatpush1.msra.mxu0 %v9868_v19  ;;  %4515 = vmatpush2.msra.mxu1 %v9869_v52  ;;  %v9901_v19 = vld [vmem:[#allocation105_spill] sm:$0xff]  ;;  %v9903_v52 = vld [vmem:[#allocation104_spill] sm:$0xff]  ;;  %s4690_s16 = scalar_lea.vmem %s4590_s15, 256  ;;  %p4695_p7 = scmp.lt.s32.totalorder %s4590_s15, %s4590_s15 }
 0x2aa   :  { %4294 = vmatprep.subr.mxu0 %v9870_v45  ;;  %4517 = vmatprep.subr.mxu1 %v9871_v39  ;;  %v9909_v45 = vld [vmem:[#allocation111_spill] sm:$0xff]  ;;  %p4691_p6 = scmp.ne.s32.totalorder %s4590_s15, %s4690_s16  ;;  %p4696_p8 = scmp.lt.s32.totalorder %s4690_s16, %s4690_s16 }
 0x2ab   :  { %4298 = vmatpush1.msra.mxu0 %v9872_v0  ;;  %4519 = vmatpush2.msra.mxu1 %v9873_v35  ;;  %v2546_v35 = vpop.f32.mrf.mxu1 }
 0x2ac   :  { %4302 = vmatprep.subr.mxu0 %v9874_v62  ;;  %4521 = vmatprep.subr.mxu1 %v9875_v10  ;;  %p4697_p9 = por %p4696_p8, %p4695_p7 }
 0x2ad   :  { %4306 = vmatpush1.msra.mxu0 %v9876_v4  ;;  %4523 = vmatpush2.msra.mxu1 %v9877_v60 }
 0x2ae   :  { %4310 = vmatprep.subr.mxu0 %v9878_v16  ;;  %4525 = vmatprep.subr.mxu1 %v9879_v7  ;;  %p4698_p10 = pnand %p4697_p9, %p4691_p6 }
 0x2af   :  { %4314 = vmatpush2.msra.mxu0 %v9880_v1  ;;  %4527 = vmatpush2.msra.mxu1 %v9881_v9 }
 0x2b0   :  { %4318 = vmatprep.subr.mxu0 %v9882_v53  ;;  %4529 = vmatprep.subr.mxu1 %v9883_v6 }
 0x2b1   :  { %4322 = vmatpush2.msra.mxu0 %v9884_v12  ;;  %4531 = vmatpush2.msra.mxu1 %v9885_v63 }
 0x2b2   :  { %4326 = vmatprep.subr.mxu0 %v9886_v38  ;;  %4533 = vmatprep.subr.mxu1 %v9887_v3 }
 0x2b3   :  { %4330 = vmatpush2.msra.mxu0 %v9888_v50  ;;  %4535 = vmatpush2.msra.mxu1 %v9889_v59 }
 0x2b4   :  { %4334 = vmatprep.subr.mxu0 %v9890_v26  ;;  %4537 = vmatprep.subr.mxu1 %v9891_v22 }
 0x2b5   :  { %4338 = vmatpush2.msra.mxu0 %v9892_v61  ;;  %4539 = vmatpush2.msra.mxu1 %v9893_v32 }
 0x2b6   :  { %4342 = vmatprep.subr.mxu0 %v9894_v29  ;;  %4541 = vmatprep.subr.mxu1 %v9895_v15 }
 0x2b7   :  { %4346 = vmatpush2.msra.mxu0 %v9896_v14  ;;  %4543 = vmatpush2.msra.mxu1 %v9897_v8 }
 0x2b8   :  { %4350 = vmatprep.subr.mxu0 %v9898_v23  ;;  %4545 = vmatprep.subr.mxu1 %v9899_v49 }
 0x2b9   :  { %4354 = vmatpush2.msra.mxu0 %v9900_v44  ;;  %4547 = vmatpush2.msra.mxu1 %v9901_v19 }
 0x2ba   :  { %4358 = vmatprep.subr.mxu0 %v9902_v40  ;;  %4549 = vmatprep.subr.mxu1 %v9903_v52 }
 0x2bb   :  { %4362 = vmatpush2.msra.mxu0 %v9904_v54  ;;  %4551 = vmatpush2.msra.mxu1 %v7806_v51  ;;  %v9912_v51 = vld [vmem:[#allocation112_spill] sm:$0xff] }
 0x2bc   :  { %4366 = vmatprep.subr.mxu0 %v9905_v27  ;;  %4553 = vmatprep.subr.mxu1 %v7818_v46  ;;  %v9916_v46 = vld [vmem:[#allocation108_spill] sm:$0xff] }
 0x2bd   :  { %4370 = vmatpush2.msra.mxu0 %v9906_v33  ;;  %4555 = vmatpush2.msra.mxu1 %v7830_v18  ;;  %v9917_v58 = vand.u32 4294901760, %v9916_v46  ;;  %v9920_v18 = vld [vmem:[#allocation15_spill] sm:$0xff] }
 0x2be   :  { %4374 = vmatprep.subr.mxu0 %v9907_v31  ;;  %4557 = vmatprep.subr.mxu1 %v7838_v17  ;;  %v9914_v17 = vand.u32 4294901760, %v7844_v37  ;;  %v9922_v37 = vand.u32 4294901760, %v9795_v28  ;;  %v9928_v28 = vld [vmem:[#allocation121_spill] sm:$0xff] }
 0x2bf   :  { %4378 = vmatpush2.msra.mxu0 %v9908_v21  ;;  %4559 = vmatpush2.msra.mxu1 %v9909_v45  ;;  %v9929_v39 = vsub.s32 0, %v9928_v28  ;;  %v9930_v0 = vsub.s32 1, %v9928_v28 }
 0x2c0   :  { %4382 = vmatprep.subr.mxu0 %v9910_v34  ;;  %4561 = vmatprep.subr.mxu1 %v7854_v57  ;;  %v9919_v57 = vand.u32 4294901760, %v7870_v55  ;;  %v9926_v55 = vand.u32 4294901760, %v7926_v42 }
 0x2c1   :  { %4386 = vmatpush2.msra.mxu0 %v9911_v5  ;;  %4563 = vmatpush2.msra.mxu1 %v9912_v51  ;;  %v2010_v41 = vrot.slane %v2001_v13, %v9930_v0 }
 0x2c2   :  { %4390 = vmatprep.subr.mxu0 %v9913_v36  ;;  %4565 = vmatprep.subr.mxu1 %v7872_v20  ;;  %v9923_v20 = vand.u32 4294901760, %v7900_v56  ;;  %v2153_v56 = vpop.f32.mrf.mxu0 }
 0x2c3   :  { %4394 = vmatpush2.msra.mxu0 %v9914_v17  ;;  %4567 = vmatpush2.msra.mxu1 %v9915_v25 }
 0x2c4   :  { %4398 = vmatprep.subr.mxu0 %v9917_v58  ;;  %4569 = vmatprep.subr.mxu1 %v7892_v11  ;;  %v9924_v11 = vand.u32 4294901760, %v7910_v48  ;;  %v2006_v48 = vrot.slane %v2001_v13, %v9929_v39  ;;  %v2155_v62 = vpop.f32.mrf.mxu0 }
 0x2c5   :  { %4402 = vmatpush2.msra.mxu0 %v9918_v47  ;;  %4571 = vmatpush2.msra.mxu1 %v7902_v24  ;;  %v9927_v24 = vand.u32 4294901760, %v7934_v2  ;;  %v2156_v4 = vadd.f32 %v2155_v62, %v2010_v41  ;;  %v2548_v2 = vpop.f32.mrf.mxu1 }
 0x2c6   :  { %4406 = vmatprep.subr.mxu0 %v9919_v57  ;;  %4575 = vmatmul.mubr.f32.vlgmr.msra.gmra.mxu1 %v9920_v18  ;;  %v2154_v42 = vadd.f32 %v2153_v56, %v2006_v48  ;;  %v2749_v10 = vpop.f32.mrf.mxu0 }
 0x2c7   :  { %4410 = vmatpush2.msra.mxu0 %v9921_v30  ;;  %v2890_v16 = vpop.f32.mrf.mxu1  ;;  %v2549_v9 = vadd.f32 %v2548_v2, %v2156_v4 }
 0x2c8   :  { %4414 = vmatprep.subr.mxu0 %v9922_v37  ;;  %v2547_v60 = vadd.f32 %v2546_v35, %v2154_v42  ;;  %v2751_v7 = vpop.f32.mrf.mxu0 }
 0x2c9   :  { %4418 = vmatpush2.msra.mxu0 %v9923_v20  ;;  %v2752_v6 = vadd.f32 %v2751_v7, %v2549_v9  ;;  %v2892_v12 = vpop.f32.mrf.mxu1 }
 0x2ca   :  { %4422 = vmatprep.subr.mxu0 %v9924_v11  ;;  %v2750_v1 = vadd.f32 %v2749_v10, %v2547_v60  ;;  %v3155_v53 = vpop.f32.mrf.mxu0 }
 0x2cb   :  { %4426 = vmatpush2.msra.mxu0 %v9925_v43  ;;  %v3292_v38 = vpop.f32.mrf.mxu1  ;;  %v2893_v59 = vadd.f32 %v2892_v12, %v2752_v6 }
 0x2cc   :  { %4430 = vmatprep.subr.mxu0 %v9926_v55  ;;  %v2891_v63 = vadd.f32 %v2890_v16, %v2750_v1  ;;  %v3157_v3 = vpop.f32.mrf.mxu0 }
 0x2cd   :  { %4434 = vmatpush2.msra.mxu0 %v9927_v24  ;;  %v3158_v22 = vadd.f32 %v3157_v3, %v2893_v59  ;;  %v3294_v61 = vpop.f32.mrf.mxu1 }
 0x2ce   :  { %4438 = vmatmul.mubr.f32.vlgmr.msra.gmra.mxu0 %v9920_v18  ;;  %v3156_v50 = vadd.f32 %v3155_v53, %v2891_v63 }
 0x2cf   :  { %v3295_v8 = vadd.f32 %v3294_v61, %v3158_v22 }
 0x2d0   :  { %v3293_v32 = vadd.f32 %v3292_v38, %v3156_v50 }
 0x303   :  { %v3830_v29 = vpop.f32.mrf.mxu1 }
 0x305   :  { %v3832_v44 = vpop.f32.mrf.mxu1 }
 0x30b   :  { %v3437_v26 = vpop.f32.mrf.mxu0 }
 0x30c   :  { %v3438_v14 = vadd.f32 %v3437_v26, %v3293_v32 }
 0x30d   :  { %v3439_v15 = vpop.f32.mrf.mxu0 }
 0x30e   :  { %v3440_v49 = vadd.f32 %v3439_v15, %v3295_v8  ;;  %v3831_v19 = vadd.f32 %v3830_v29, %v3438_v14 }
 0x310   :  { %v3833_v27 = vadd.f32 %v3832_v44, %v3440_v49 }
 0x344   :  { %v4174_v40 = vpop.f32.mrf.mxu1 }
 0x346   :  { %v4176_v31 = vpop.f32.mrf.mxu1 }
 0x34d   :  { %v4033_v23 = vpop.f32.mrf.mxu0 }
 0x34e   :  { %v4034_v54 = vadd.f32 %v4033_v23, %v3831_v19 }
 0x34f   :  { %v4035_v52 = vpop.f32.mrf.mxu0 }
 0x350   :  { %v4036_v33 = vadd.f32 %v4035_v52, %v3833_v27  ;;  %v4175_v21 = vadd.f32 %v4174_v40, %v4034_v54 }
 0x352   :  { %v4177_v51 = vadd.f32 %v4176_v31, %v4036_v33 }
 0x386   :  { %v4576_v45 = vpop.f32.mrf.mxu1 }
 0x388   :  { %v4578_v46 = vpop.f32.mrf.mxu1 }
 0x38e   :  { %v4439_v34 = vpop.f32.mrf.mxu0 }
 0x38f   :  { %v4440_v5 = vadd.f32 %v4439_v34, %v4175_v21 }
 0x390   :  { %v4441_v36 = vpop.f32.mrf.mxu0 }
 0x391   :  { %v4577_v17 = vadd.f32 %v4576_v45, %v4440_v5  ;;  %v4442_v25 = vadd.f32 %v4441_v36, %v4177_v51 }
 0x393   :  { %4581 = vst [vmem:[#allocation10] sm:$0xff] %v4577_v17  ;;  %v4579_v58 = vadd.f32 %v4578_v46, %v4442_v25 }
 0x395   :  { %4582 = vst [vmem:[#allocation10 + $0x8] sm:$0xff] %v4579_v58 }
 0x396   :  { %4701 = shalt.err (!%p4698_p10)
}
 0x397   :  { %4592 = dma.vmem_to_hbm [thread:$0]  %s4590_s15, 256, %s8343_s5, [#allocation4]  }
 0x398   :  { %4716 = dma.done.wait [#allocation4], 256  }
 0x399   :  { %4717 = vsyncadd [#allocation4], 4294967040 }
 0x39a   :  { %4596 = vsyncpa [#allocation3], 1 }
 0x39b   :  { %4597 = vsyncpa [#allocation6], 1 }
 0x39c   :  { %4598 = vsyncpa [#allocation9], 1 }
 0x39d   :  { %4599 = vsyncpa [#allocation4], 1 }

</bundles_post_ra>
